<compile_context>
chip_gen: v6e
topology: v6e:2x2x1
jax: 0.10.0
libtpu: 0.0.40
codegen_flags: <defaults>
</compile_context>

<pallas_src>
import math
import jax
import jax.numpy as jnp
from jax.experimental import pallas as pl
from jax.experimental.pallas import tpu as pltpu

# ----------------------- synthetic "config" constants ------------------------
SEQUENCE_LENGTH = 8                               # LOB sequence length
LOB_TOKEN_DIM = 4
LOB_INPUT_DIM = SEQUENCE_LENGTH * LOB_TOKEN_DIM   # 32
CANDLE_TOTAL_HOURS = 1
CANDLE_INTERVAL_MIN = 15
CANDLE_COUNT = int(CANDLE_TOTAL_HOURS * 60 / CANDLE_INTERVAL_MIN)  # 4
CANDLE_TOKEN_DIM = 8
CANDLE_INPUT_DIM = CANDLE_COUNT * CANDLE_TOKEN_DIM                 # 32
TOTAL_INPUT_DIM = LOB_INPUT_DIM + CANDLE_INPUT_DIM                 # 64

MODEL_DIM = 32
NUM_LAYERS = 2
NHEAD = 4
HEAD_DIM = MODEL_DIM // NHEAD
DIM_FF = 2048                                     # nn.TransformerEncoderLayer default
S_TOTAL = SEQUENCE_LENGTH + CANDLE_COUNT          # 12
LN_EPS = 1e-5
DROPOUT = 0.1                                     # identity at inference

EMB_IN = LOB_TOKEN_DIM + CANDLE_TOKEN_DIM + S_TOTAL   # 24 (tokens + position one-hot)
MAX_BATCH_TILE = 16                                   # TB*S = 192 rows per MXU matmul

LAYER_PARAM_ORDER = ("wq", "bq", "wk", "bk", "wv", "bv", "wo", "bo",
                     "g1", "be1", "w1", "b1", "w2", "b2", "g2", "be2")


# --------------------------------- kernel ------------------------------------
def _layer_norm(x, gamma, beta):
    mu = jnp.mean(x, axis=-1, keepdims=True)
    xc = x - mu
    var = jnp.mean(xc * xc, axis=-1, keepdims=True)
    return xc * jax.lax.rsqrt(var + LN_EPS) * gamma + beta


def combined_forward_kernel(tok_ref, bias_ref, pool_ref, wemb_ref, *rest):
    """Fused forward for one batch tile.

    tok_ref : (TB*S, EMB_IN)  lane-dense tokens [lob | candle | pos one-hot]
    bias_ref: (TB*S, TB*S)    additive block-diagonal attention mask (0 / -1e30)
    pool_ref: (TB, TB*S)      mean-pool matrix (1/S on each batch's rows)
    wemb_ref: (EMB_IN, D)     folded embedding weight (W_lob; W_can; bias+PE)
    rest    : 16*NUM_LAYERS layer refs, fc_w, fc_b, out_ref
    """
    layer_refs = rest[:16 * NUM_LAYERS]
    fcw_ref, fcb_ref, out_ref = rest[16 * NUM_LAYERS:]

    scale = 1.0 / math.sqrt(HEAD_DIM)
    nt_dims = (((1,), (1,)), ((), ()))          # q @ k^T without explicit transpose
    attn_bias = bias_ref[...]                   # (R, R), shared by all heads/layers

    # Token embedding + per-stream bias + positional encoding in one matmul.
    x = jnp.dot(tok_ref[...], wemb_ref[...], preferred_element_type=jnp.float32)

    for l in range(NUM_LAYERS):
        (wq, bq, wk, bk, wv, bv, wo, bo,
         g1, be1, w1, b1, w2, b2, g2, be2) = layer_refs[16 * l:16 * (l + 1)]

        q = jnp.dot(x, wq[...], preferred_element_type=jnp.float32) + bq[...]
        k = jnp.dot(x, wk[...], preferred_element_type=jnp.float32) + bk[...]
        v = jnp.dot(x, wv[...], preferred_element_type=jnp.float32) + bv[...]

        heads = []
        for h in range(NHEAD):                  # static 4-way unroll
            lo = h * HEAD_DIM
            qh = q[:, lo:lo + HEAD_DIM]
            kh = k[:, lo:lo + HEAD_DIM]
            vh = v[:, lo:lo + HEAD_DIM]
            s = jax.lax.dot_general(qh, kh, nt_dims,
                                    preferred_element_type=jnp.float32)
            s = s * scale + attn_bias           # mask out cross-batch pairs
            s = s - jnp.max(s, axis=-1, keepdims=True)
            p = jnp.exp(s)
            p = p / jnp.sum(p, axis=-1, keepdims=True)
            heads.append(jnp.dot(p, vh, preferred_element_type=jnp.float32))
        attn = jnp.concatenate(heads, axis=-1)
        attn = jnp.dot(attn, wo[...], preferred_element_type=jnp.float32) + bo[...]

        # post-norm residual block 1
        x1 = _layer_norm(x + attn, g1[...], be1[...])

        # feed-forward (ReLU) with bf16 MXU inputs, f32 accumulation
        hid = jnp.dot(x1.astype(jnp.bfloat16), w1[...],
                      preferred_element_type=jnp.float32) + b1[...]
        hid = jnp.maximum(hid, 0.0).astype(jnp.bfloat16)
        ff = jnp.dot(hid, w2[...], preferred_element_type=jnp.float32) + b2[...]

        x = _layer_norm(x1 + ff, g2[...], be2[...])

    # mean pool over each batch element's S rows (as a matmul) + final linear
    pooled = jnp.dot(pool_ref[...], x, preferred_element_type=jnp.float32)   # (TB, D)
    out_ref[...] = (jnp.sum(pooled * fcw_ref[...], axis=-1, keepdims=True)
                    + fcb_ref[...])                                          # (TB, 1)


# ------------------------------ pallas wrapper --------------------------------
def _const_spec(shape):
    return pl.BlockSpec(shape, lambda i: (0,) * len(shape))


def _build_token_matrix(x, b_pad):
    """(B, 64) -> (B_pad*S, 24): [lob(4) | candle(8) | position one-hot(12)]."""
    b = x.shape[0]
    lob = x[:, :LOB_INPUT_DIM].reshape(b, SEQUENCE_LENGTH, LOB_TOKEN_DIM)
    can = x[:, LOB_INPUT_DIM:].reshape(b, CANDLE_COUNT, CANDLE_TOKEN_DIM)
    tok = jnp.zeros((b_pad, S_TOTAL, EMB_IN), jnp.float32)
    tok = tok.at[:b, :SEQUENCE_LENGTH, :LOB_TOKEN_DIM].set(lob)
    tok = tok.at[:b, SEQUENCE_LENGTH:,
                 LOB_TOKEN_DIM:LOB_TOKEN_DIM + CANDLE_TOKEN_DIM].set(can)
    pos = jnp.broadcast_to(jnp.eye(S_TOTAL, dtype=jnp.float32),
                           (b_pad, S_TOTAL, S_TOTAL))
    tok = tok.at[:, :, LOB_TOKEN_DIM + CANDLE_TOKEN_DIM:].set(pos)
    return tok.reshape(b_pad * S_TOTAL, EMB_IN)


def _block_diag_bias(tb):
    r = tb * S_TOTAL
    seg = jnp.arange(r) // S_TOTAL
    same = seg[:, None] == seg[None, :]
    return jnp.where(same, 0.0, -1e30).astype(jnp.float32)       # (R, R)


def _pool_matrix(tb):
    r = tb * S_TOTAL
    seg = jnp.arange(r) // S_TOTAL
    rows = jnp.arange(tb)
    return (rows[:, None] == seg[None, :]).astype(jnp.float32) / S_TOTAL  # (TB, R)


def combined_model_forward(params, x):
    """x: (batch, TOTAL_INPUT_DIM) float32 -> (batch,) float32."""
    B = x.shape[0]
    if B <= MAX_BATCH_TILE:
        TB, B_pad = B, B
    else:
        TB = MAX_BATCH_TILE
        B_pad = pl.cdiv(B, TB) * TB
    R = TB * S_TOTAL

    tok = _build_token_matrix(x, B_pad)          # (B_pad*S, 24)
    attn_bias = _block_diag_bias(TB)             # (R, R)
    pool_mat = _pool_matrix(TB)                  # (TB, R)

    weights = [params["w_emb"]]
    for lyr in params["layers"]:
        weights += [lyr[name] for name in LAYER_PARAM_ORDER]
    weights += [params["fc_w"], params["fc_b"]]

    in_specs = [pl.BlockSpec((R, EMB_IN), lambda i: (i, 0)),
                _const_spec(attn_bias.shape),
                _const_spec(pool_mat.shape)]
    in_specs += [_const_spec(w.shape) for w in weights]

    out = pl.pallas_call(
        combined_forward_kernel,
        out_shape=jax.ShapeDtypeStruct((B_pad, 1), jnp.float32),
        grid=(B_pad // TB,),
        in_specs=in_specs,
        out_specs=pl.BlockSpec((TB, 1), lambda i: (i, 0)),
        compiler_params=pltpu.CompilerParams(
            dimension_semantics=("parallel",),
            vmem_limit_bytes=32 * 1024 * 1024),
    )(tok, attn_bias, pool_mat, *weights)
    return out[:B, 0]                            # squeeze(-1)


# ------------------------------ parameter setup -------------------------------
def _make_positional_encoding(max_len, d_model):
    position = jnp.arange(max_len, dtype=jnp.float32)[:, None]
    div_term = jnp.exp(jnp.arange(0, d_model, 2, dtype=jnp.float32)
                       * (-math.log(10000.0) / d_model))
    pe = jnp.zeros((max_len, d_model), dtype=jnp.float32)
    pe = pe.at[:, 0::2].set(jnp.sin(position * div_term))
    pe = pe.at[:, 1::2].set(jnp.cos(position * div_term))
    return pe


def _dense(key, shape):
    return 0.02 * jax.random.normal(key, shape, dtype=jnp.float32)


def _build_embedding_weight(w_lob, b_lob, w_can, b_can, pe):
    # rows 0:4   -> LOB token weight, rows 4:12 -> candle token weight,
    # rows 12:24 -> per-position (stream bias + positional encoding), one-hot selected.
    bias_pe = jnp.concatenate(
        [b_lob[None, :] + pe[:SEQUENCE_LENGTH],
         b_can[None, :] + pe[SEQUENCE_LENGTH:]], axis=0)          # (S_TOTAL, D)
    return jnp.concatenate([w_lob, w_can, bias_pe], axis=0)       # (EMB_IN, D)


def _init_layer(key):
    ks = jax.random.split(key, 6)
    D = MODEL_DIM
    z = lambda s: jnp.zeros(s, jnp.float32)
    o = lambda s: jnp.ones(s, jnp.float32)
    return dict(
        wq=_dense(ks[0], (D, D)), bq=z((1, D)),
        wk=_dense(ks[1], (D, D)), bk=z((1, D)),
        wv=_dense(ks[2], (D, D)), bv=z((1, D)),
        wo=_dense(ks[3], (D, D)), bo=z((1, D)),
        g1=o((1, D)), be1=z((1, D)),
        w1=_dense(ks[4], (D, DIM_FF)).astype(jnp.bfloat16), b1=z((1, DIM_FF)),
        w2=_dense(ks[5], (DIM_FF, D)).astype(jnp.bfloat16), b2=z((1, D)),
        g2=o((1, D)), be2=z((1, D)),
    )


def init_params(key):
    keys = jax.random.split(key, 3 + NUM_LAYERS)
    D = MODEL_DIM
    w_lob = _dense(keys[0], (LOB_TOKEN_DIM, D))
    w_can = _dense(keys[1], (CANDLE_TOKEN_DIM, D))
    b_lob = jnp.zeros((D,), jnp.float32)
    b_can = jnp.zeros((D,), jnp.float32)
    pe = _make_positional_encoding(S_TOTAL, D)
    return dict(
        w_emb=_build_embedding_weight(w_lob, b_lob, w_can, b_can, pe),
        fc_w=_dense(keys[2], (1, D)),
        fc_b=jnp.zeros((1, 1), jnp.float32),
        layers=[_init_layer(keys[3 + i]) for i in range(NUM_LAYERS)],
    )


# ----------------------------------- main --------------------------------------
if __name__ == "__main__":
    key = jax.random.PRNGKey(0)
    pkey, xkey = jax.random.split(key)
    params = init_params(pkey)

    batch = 2
    x = jax.random.normal(xkey, (batch, TOTAL_INPUT_DIM), dtype=jnp.float32)

    out = combined_model_forward(params, x)
    out = jax.block_until_ready(out)

    assert out.shape == (batch,), out.shape
    assert bool(jnp.all(jnp.isfinite(out)))
    print("KERNEL_OK")
</pallas_src>

<mosaic_0001>
module attributes {stable_mosaic.version = 11 : i64} {
  func.func @combined_forward_kernel(%arg0: i32, %arg1: memref<24x24xf32, #tpu.memory_space<vmem>>, %arg2: memref<24x24xf32, #tpu.memory_space<vmem>>, %arg3: memref<2x24xf32, #tpu.memory_space<vmem>>, %arg4: memref<24x32xf32, #tpu.memory_space<vmem>>, %arg5: memref<32x32xf32, #tpu.memory_space<vmem>>, %arg6: memref<1x32xf32, #tpu.memory_space<vmem>>, %arg7: memref<32x32xf32, #tpu.memory_space<vmem>>, %arg8: memref<1x32xf32, #tpu.memory_space<vmem>>, %arg9: memref<32x32xf32, #tpu.memory_space<vmem>>, %arg10: memref<1x32xf32, #tpu.memory_space<vmem>>, %arg11: memref<32x32xf32, #tpu.memory_space<vmem>>, %arg12: memref<1x32xf32, #tpu.memory_space<vmem>>, %arg13: memref<1x32xf32, #tpu.memory_space<vmem>>, %arg14: memref<1x32xf32, #tpu.memory_space<vmem>>, %arg15: memref<32x2048xbf16, #tpu.memory_space<vmem>>, %arg16: memref<1x2048xf32, #tpu.memory_space<vmem>>, %arg17: memref<2048x32xbf16, #tpu.memory_space<vmem>>, %arg18: memref<1x32xf32, #tpu.memory_space<vmem>>, %arg19: memref<1x32xf32, #tpu.memory_space<vmem>>, %arg20: memref<1x32xf32, #tpu.memory_space<vmem>>, %arg21: memref<32x32xf32, #tpu.memory_space<vmem>>, %arg22: memref<1x32xf32, #tpu.memory_space<vmem>>, %arg23: memref<32x32xf32, #tpu.memory_space<vmem>>, %arg24: memref<1x32xf32, #tpu.memory_space<vmem>>, %arg25: memref<32x32xf32, #tpu.memory_space<vmem>>, %arg26: memref<1x32xf32, #tpu.memory_space<vmem>>, %arg27: memref<32x32xf32, #tpu.memory_space<vmem>>, %arg28: memref<1x32xf32, #tpu.memory_space<vmem>>, %arg29: memref<1x32xf32, #tpu.memory_space<vmem>>, %arg30: memref<1x32xf32, #tpu.memory_space<vmem>>, %arg31: memref<32x2048xbf16, #tpu.memory_space<vmem>>, %arg32: memref<1x2048xf32, #tpu.memory_space<vmem>>, %arg33: memref<2048x32xbf16, #tpu.memory_space<vmem>>, %arg34: memref<1x32xf32, #tpu.memory_space<vmem>>, %arg35: memref<1x32xf32, #tpu.memory_space<vmem>>, %arg36: memref<1x32xf32, #tpu.memory_space<vmem>>, %arg37: memref<1x32xf32, #tpu.memory_space<vmem>>, %arg38: memref<1x1xf32, #tpu.memory_space<vmem>>, %arg39: memref<2x1xf32, #tpu.memory_space<vmem>>) attributes {dimension_semantics = [#tpu.dimension_semantics<parallel>], iteration_bounds = array<i64: 1>, scalar_prefetch = 0 : i64, scratch_operands = 0 : i64, tpu.core_type = #tpu.core_type<tc>, window_params = [{transform_indices = @transform_0, window_bounds = array<i64: 24, 24>}, {pipeline_mode = #tpu.pipeline_mode<synchronous>, transform_indices = @transform_1, window_bounds = array<i64: 24, 24>}, {pipeline_mode = #tpu.pipeline_mode<synchronous>, transform_indices = @transform_2, window_bounds = array<i64: 2, 24>}, {pipeline_mode = #tpu.pipeline_mode<synchronous>, transform_indices = @transform_3, window_bounds = array<i64: 24, 32>}, {pipeline_mode = #tpu.pipeline_mode<synchronous>, transform_indices = @transform_4, window_bounds = array<i64: 32, 32>}, {pipeline_mode = #tpu.pipeline_mode<synchronous>, transform_indices = @transform_5, window_bounds = array<i64: 1, 32>}, {pipeline_mode = #tpu.pipeline_mode<synchronous>, transform_indices = @transform_6, window_bounds = array<i64: 32, 32>}, {pipeline_mode = #tpu.pipeline_mode<synchronous>, transform_indices = @transform_7, window_bounds = array<i64: 1, 32>}, {pipeline_mode = #tpu.pipeline_mode<synchronous>, transform_indices = @transform_8, window_bounds = array<i64: 32, 32>}, {pipeline_mode = #tpu.pipeline_mode<synchronous>, transform_indices = @transform_9, window_bounds = array<i64: 1, 32>}, {pipeline_mode = #tpu.pipeline_mode<synchronous>, transform_indices = @transform_10, window_bounds = array<i64: 32, 32>}, {pipeline_mode = #tpu.pipeline_mode<synchronous>, transform_indices = @transform_11, window_bounds = array<i64: 1, 32>}, {pipeline_mode = #tpu.pipeline_mode<synchronous>, transform_indices = @transform_12, window_bounds = array<i64: 1, 32>}, {pipeline_mode = #tpu.pipeline_mode<synchronous>, transform_indices = @transform_13, window_bounds = array<i64: 1, 32>}, {pipeline_mode = #tpu.pipeline_mode<synchronous>, transform_indices = @transform_14, window_bounds = array<i64: 32, 2048>}, {pipeline_mode = #tpu.pipeline_mode<synchronous>, transform_indices = @transform_15, window_bounds = array<i64: 1, 2048>}, {pipeline_mode = #tpu.pipeline_mode<synchronous>, transform_indices = @transform_16, window_bounds = array<i64: 2048, 32>}, {pipeline_mode = #tpu.pipeline_mode<synchronous>, transform_indices = @transform_17, window_bounds = array<i64: 1, 32>}, {pipeline_mode = #tpu.pipeline_mode<synchronous>, transform_indices = @transform_18, window_bounds = array<i64: 1, 32>}, {pipeline_mode = #tpu.pipeline_mode<synchronous>, transform_indices = @transform_19, window_bounds = array<i64: 1, 32>}, {pipeline_mode = #tpu.pipeline_mode<synchronous>, transform_indices = @transform_20, window_bounds = array<i64: 32, 32>}, {pipeline_mode = #tpu.pipeline_mode<synchronous>, transform_indices = @transform_21, window_bounds = array<i64: 1, 32>}, {pipeline_mode = #tpu.pipeline_mode<synchronous>, transform_indices = @transform_22, window_bounds = array<i64: 32, 32>}, {pipeline_mode = #tpu.pipeline_mode<synchronous>, transform_indices = @transform_23, window_bounds = array<i64: 1, 32>}, {pipeline_mode = #tpu.pipeline_mode<synchronous>, transform_indices = @transform_24, window_bounds = array<i64: 32, 32>}, {pipeline_mode = #tpu.pipeline_mode<synchronous>, transform_indices = @transform_25, window_bounds = array<i64: 1, 32>}, {pipeline_mode = #tpu.pipeline_mode<synchronous>, transform_indices = @transform_26, window_bounds = array<i64: 32, 32>}, {pipeline_mode = #tpu.pipeline_mode<synchronous>, transform_indices = @transform_27, window_bounds = array<i64: 1, 32>}, {pipeline_mode = #tpu.pipeline_mode<synchronous>, transform_indices = @transform_28, window_bounds = array<i64: 1, 32>}, {pipeline_mode = #tpu.pipeline_mode<synchronous>, transform_indices = @transform_29, window_bounds = array<i64: 1, 32>}, {pipeline_mode = #tpu.pipeline_mode<synchronous>, transform_indices = @transform_30, window_bounds = array<i64: 32, 2048>}, {pipeline_mode = #tpu.pipeline_mode<synchronous>, transform_indices = @transform_31, window_bounds = array<i64: 1, 2048>}, {pipeline_mode = #tpu.pipeline_mode<synchronous>, transform_indices = @transform_32, window_bounds = array<i64: 2048, 32>}, {pipeline_mode = #tpu.pipeline_mode<synchronous>, transform_indices = @transform_33, window_bounds = array<i64: 1, 32>}, {pipeline_mode = #tpu.pipeline_mode<synchronous>, transform_indices = @transform_34, window_bounds = array<i64: 1, 32>}, {pipeline_mode = #tpu.pipeline_mode<synchronous>, transform_indices = @transform_35, window_bounds = array<i64: 1, 32>}, {pipeline_mode = #tpu.pipeline_mode<synchronous>, transform_indices = @transform_36, window_bounds = array<i64: 1, 32>}, {pipeline_mode = #tpu.pipeline_mode<synchronous>, transform_indices = @transform_37, window_bounds = array<i64: 1, 1>}, {transform_indices = @transform_38, window_bounds = array<i64: 2, 1>}]} {
    %c0 = arith.constant 0 : index
    %c0_0 = arith.constant 0 : index
    %0 = vector.load %arg2[%c0, %c0_0] : memref<24x24xf32, #tpu.memory_space<vmem>>, vector<24x24xf32>
    %c0_1 = arith.constant 0 : index
    %c0_2 = arith.constant 0 : index
    %1 = vector.load %arg1[%c0_1, %c0_2] : memref<24x24xf32, #tpu.memory_space<vmem>>, vector<24x24xf32>
    %c0_3 = arith.constant 0 : index
    %c0_4 = arith.constant 0 : index
    %2 = vector.load %arg4[%c0_3, %c0_4] : memref<24x32xf32, #tpu.memory_space<vmem>>, vector<24x32xf32>
    %cst = arith.constant dense<0.000000e+00> : vector<24x32xf32>
    %3 = tpu.matmul %1, %2, %cst {dimension_numbers = #tpu.dot_dimension_numbers<[1], [0], [0], [1], [0, 0, 1, 1], [], []>} : vector<24x24xf32>, vector<24x32xf32>, vector<24x32xf32> -> vector<24x32xf32>
    %c0_5 = arith.constant 0 : index
    %c0_6 = arith.constant 0 : index
    %4 = vector.load %arg5[%c0_5, %c0_6] : memref<32x32xf32, #tpu.memory_space<vmem>>, vector<32x32xf32>
    %cst_7 = arith.constant dense<0.000000e+00> : vector<24x32xf32>
    %5 = tpu.matmul %3, %4, %cst_7 {dimension_numbers = #tpu.dot_dimension_numbers<[1], [0], [0], [1], [0, 0, 1, 1], [], []>} : vector<24x32xf32>, vector<32x32xf32>, vector<24x32xf32> -> vector<24x32xf32>
    %c0_8 = arith.constant 0 : index
    %c0_9 = arith.constant 0 : index
    %6 = vector.load %arg6[%c0_8, %c0_9] : memref<1x32xf32, #tpu.memory_space<vmem>>, vector<1x32xf32>
    %7 = vector.broadcast %6 : vector<1x32xf32> to vector<24x32xf32>
    %8 = arith.addf %5, %7 : vector<24x32xf32>
    %c0_10 = arith.constant 0 : index
    %c0_11 = arith.constant 0 : index
    %9 = vector.load %arg7[%c0_10, %c0_11] : memref<32x32xf32, #tpu.memory_space<vmem>>, vector<32x32xf32>
    %cst_12 = arith.constant dense<0.000000e+00> : vector<24x32xf32>
    %10 = tpu.matmul %3, %9, %cst_12 {dimension_numbers = #tpu.dot_dimension_numbers<[1], [0], [0], [1], [0, 0, 1, 1], [], []>} : vector<24x32xf32>, vector<32x32xf32>, vector<24x32xf32> -> vector<24x32xf32>
    %c0_13 = arith.constant 0 : index
    %c0_14 = arith.constant 0 : index
    %11 = vector.load %arg8[%c0_13, %c0_14] : memref<1x32xf32, #tpu.memory_space<vmem>>, vector<1x32xf32>
    %12 = vector.broadcast %11 : vector<1x32xf32> to vector<24x32xf32>
    %13 = arith.addf %10, %12 : vector<24x32xf32>
    %c0_15 = arith.constant 0 : index
    %c0_16 = arith.constant 0 : index
    %14 = vector.load %arg9[%c0_15, %c0_16] : memref<32x32xf32, #tpu.memory_space<vmem>>, vector<32x32xf32>
    %cst_17 = arith.constant dense<0.000000e+00> : vector<24x32xf32>
    %15 = tpu.matmul %3, %14, %cst_17 {dimension_numbers = #tpu.dot_dimension_numbers<[1], [0], [0], [1], [0, 0, 1, 1], [], []>} : vector<24x32xf32>, vector<32x32xf32>, vector<24x32xf32> -> vector<24x32xf32>
    %c0_18 = arith.constant 0 : index
    %c0_19 = arith.constant 0 : index
    %16 = vector.load %arg10[%c0_18, %c0_19] : memref<1x32xf32, #tpu.memory_space<vmem>>, vector<1x32xf32>
    %17 = vector.broadcast %16 : vector<1x32xf32> to vector<24x32xf32>
    %18 = arith.addf %15, %17 : vector<24x32xf32>
    %19 = vector.extract_strided_slice %8 {offsets = [0, 0], sizes = [24, 8], strides = [1, 1]} : vector<24x32xf32> to vector<24x8xf32>
    %20 = vector.extract_strided_slice %13 {offsets = [0, 0], sizes = [24, 8], strides = [1, 1]} : vector<24x32xf32> to vector<24x8xf32>
    %21 = vector.extract_strided_slice %18 {offsets = [0, 0], sizes = [24, 8], strides = [1, 1]} : vector<24x32xf32> to vector<24x8xf32>
    %cst_20 = arith.constant dense<0.000000e+00> : vector<24x24xf32>
    %22 = tpu.matmul %19, %20, %cst_20 {dimension_numbers = #tpu.dot_dimension_numbers<[1], [1], [0], [0], [0, 0, 1, 0], [], []>} : vector<24x8xf32>, vector<24x8xf32>, vector<24x24xf32> -> vector<24x24xf32>
    %cst_21 = arith.constant 0.353553385 : f32
    %23 = vector.broadcast %cst_21 : f32 to vector<24x24xf32>
    %24 = arith.mulf %22, %23 : vector<24x24xf32>
    %25 = arith.addf %24, %0 : vector<24x24xf32>
    %cst_22 = arith.constant dense<0xFF800000> : vector<24xf32>
    %26 = vector.multi_reduction <maximumf>, %25, %cst_22 [1] : vector<24x24xf32> to vector<24xf32>
    %27 = vector.shape_cast %26 : vector<24xf32> to vector<24x1xf32>
    %28 = vector.broadcast %27 : vector<24x1xf32> to vector<24x24xf32>
    %29 = arith.subf %25, %28 : vector<24x24xf32>
    %30 = math.exp %29 : vector<24x24xf32>
    %cst_23 = arith.constant dense<0.000000e+00> : vector<24xf32>
    %31 = vector.multi_reduction <add>, %30, %cst_23 [1] : vector<24x24xf32> to vector<24xf32>
    %32 = vector.shape_cast %31 : vector<24xf32> to vector<24x1xf32>
    %33 = vector.broadcast %32 : vector<24x1xf32> to vector<24x24xf32>
    %34 = arith.divf %30, %33 : vector<24x24xf32>
    %cst_24 = arith.constant dense<0.000000e+00> : vector<24x8xf32>
    %35 = tpu.matmul %34, %21, %cst_24 {dimension_numbers = #tpu.dot_dimension_numbers<[1], [0], [0], [1], [0, 0, 1, 1], [], []>} : vector<24x24xf32>, vector<24x8xf32>, vector<24x8xf32> -> vector<24x8xf32>
    %36 = vector.extract_strided_slice %8 {offsets = [0, 8], sizes = [24, 8], strides = [1, 1]} : vector<24x32xf32> to vector<24x8xf32>
    %37 = vector.extract_strided_slice %13 {offsets = [0, 8], sizes = [24, 8], strides = [1, 1]} : vector<24x32xf32> to vector<24x8xf32>
    %38 = vector.extract_strided_slice %18 {offsets = [0, 8], sizes = [24, 8], strides = [1, 1]} : vector<24x32xf32> to vector<24x8xf32>
    %cst_25 = arith.constant dense<0.000000e+00> : vector<24x24xf32>
    %39 = tpu.matmul %36, %37, %cst_25 {dimension_numbers = #tpu.dot_dimension_numbers<[1], [1], [0], [0], [0, 0, 1, 0], [], []>} : vector<24x8xf32>, vector<24x8xf32>, vector<24x24xf32> -> vector<24x24xf32>
    %cst_26 = arith.constant 0.353553385 : f32
    %40 = vector.broadcast %cst_26 : f32 to vector<24x24xf32>
    %41 = arith.mulf %39, %40 : vector<24x24xf32>
    %42 = arith.addf %41, %0 : vector<24x24xf32>
    %cst_27 = arith.constant dense<0xFF800000> : vector<24xf32>
    %43 = vector.multi_reduction <maximumf>, %42, %cst_27 [1] : vector<24x24xf32> to vector<24xf32>
    %44 = vector.shape_cast %43 : vector<24xf32> to vector<24x1xf32>
    %45 = vector.broadcast %44 : vector<24x1xf32> to vector<24x24xf32>
    %46 = arith.subf %42, %45 : vector<24x24xf32>
    %47 = math.exp %46 : vector<24x24xf32>
    %cst_28 = arith.constant dense<0.000000e+00> : vector<24xf32>
    %48 = vector.multi_reduction <add>, %47, %cst_28 [1] : vector<24x24xf32> to vector<24xf32>
    %49 = vector.shape_cast %48 : vector<24xf32> to vector<24x1xf32>
    %50 = vector.broadcast %49 : vector<24x1xf32> to vector<24x24xf32>
    %51 = arith.divf %47, %50 : vector<24x24xf32>
    %cst_29 = arith.constant dense<0.000000e+00> : vector<24x8xf32>
    %52 = tpu.matmul %51, %38, %cst_29 {dimension_numbers = #tpu.dot_dimension_numbers<[1], [0], [0], [1], [0, 0, 1, 1], [], []>} : vector<24x24xf32>, vector<24x8xf32>, vector<24x8xf32> -> vector<24x8xf32>
    %53 = vector.extract_strided_slice %8 {offsets = [0, 16], sizes = [24, 8], strides = [1, 1]} : vector<24x32xf32> to vector<24x8xf32>
    %54 = vector.extract_strided_slice %13 {offsets = [0, 16], sizes = [24, 8], strides = [1, 1]} : vector<24x32xf32> to vector<24x8xf32>
    %55 = vector.extract_strided_slice %18 {offsets = [0, 16], sizes = [24, 8], strides = [1, 1]} : vector<24x32xf32> to vector<24x8xf32>
    %cst_30 = arith.constant dense<0.000000e+00> : vector<24x24xf32>
    %56 = tpu.matmul %53, %54, %cst_30 {dimension_numbers = #tpu.dot_dimension_numbers<[1], [1], [0], [0], [0, 0, 1, 0], [], []>} : vector<24x8xf32>, vector<24x8xf32>, vector<24x24xf32> -> vector<24x24xf32>
    %cst_31 = arith.constant 0.353553385 : f32
    %57 = vector.broadcast %cst_31 : f32 to vector<24x24xf32>
    %58 = arith.mulf %56, %57 : vector<24x24xf32>
    %59 = arith.addf %58, %0 : vector<24x24xf32>
    %cst_32 = arith.constant dense<0xFF800000> : vector<24xf32>
    %60 = vector.multi_reduction <maximumf>, %59, %cst_32 [1] : vector<24x24xf32> to vector<24xf32>
    %61 = vector.shape_cast %60 : vector<24xf32> to vector<24x1xf32>
    %62 = vector.broadcast %61 : vector<24x1xf32> to vector<24x24xf32>
    %63 = arith.subf %59, %62 : vector<24x24xf32>
    %64 = math.exp %63 : vector<24x24xf32>
    %cst_33 = arith.constant dense<0.000000e+00> : vector<24xf32>
    %65 = vector.multi_reduction <add>, %64, %cst_33 [1] : vector<24x24xf32> to vector<24xf32>
    %66 = vector.shape_cast %65 : vector<24xf32> to vector<24x1xf32>
    %67 = vector.broadcast %66 : vector<24x1xf32> to vector<24x24xf32>
    %68 = arith.divf %64, %67 : vector<24x24xf32>
    %cst_34 = arith.constant dense<0.000000e+00> : vector<24x8xf32>
    %69 = tpu.matmul %68, %55, %cst_34 {dimension_numbers = #tpu.dot_dimension_numbers<[1], [0], [0], [1], [0, 0, 1, 1], [], []>} : vector<24x24xf32>, vector<24x8xf32>, vector<24x8xf32> -> vector<24x8xf32>
    %70 = vector.extract_strided_slice %8 {offsets = [0, 24], sizes = [24, 8], strides = [1, 1]} : vector<24x32xf32> to vector<24x8xf32>
    %71 = vector.extract_strided_slice %13 {offsets = [0, 24], sizes = [24, 8], strides = [1, 1]} : vector<24x32xf32> to vector<24x8xf32>
    %72 = vector.extract_strided_slice %18 {offsets = [0, 24], sizes = [24, 8], strides = [1, 1]} : vector<24x32xf32> to vector<24x8xf32>
    %cst_35 = arith.constant dense<0.000000e+00> : vector<24x24xf32>
    %73 = tpu.matmul %70, %71, %cst_35 {dimension_numbers = #tpu.dot_dimension_numbers<[1], [1], [0], [0], [0, 0, 1, 0], [], []>} : vector<24x8xf32>, vector<24x8xf32>, vector<24x24xf32> -> vector<24x24xf32>
    %cst_36 = arith.constant 0.353553385 : f32
    %74 = vector.broadcast %cst_36 : f32 to vector<24x24xf32>
    %75 = arith.mulf %73, %74 : vector<24x24xf32>
    %76 = arith.addf %75, %0 : vector<24x24xf32>
    %cst_37 = arith.constant dense<0xFF800000> : vector<24xf32>
    %77 = vector.multi_reduction <maximumf>, %76, %cst_37 [1] : vector<24x24xf32> to vector<24xf32>
    %78 = vector.shape_cast %77 : vector<24xf32> to vector<24x1xf32>
    %79 = vector.broadcast %78 : vector<24x1xf32> to vector<24x24xf32>
    %80 = arith.subf %76, %79 : vector<24x24xf32>
    %81 = math.exp %80 : vector<24x24xf32>
    %cst_38 = arith.constant dense<0.000000e+00> : vector<24xf32>
    %82 = vector.multi_reduction <add>, %81, %cst_38 [1] : vector<24x24xf32> to vector<24xf32>
    %83 = vector.shape_cast %82 : vector<24xf32> to vector<24x1xf32>
    %84 = vector.broadcast %83 : vector<24x1xf32> to vector<24x24xf32>
    %85 = arith.divf %81, %84 : vector<24x24xf32>
    %cst_39 = arith.constant dense<0.000000e+00> : vector<24x8xf32>
    %86 = tpu.matmul %85, %72, %cst_39 {dimension_numbers = #tpu.dot_dimension_numbers<[1], [0], [0], [1], [0, 0, 1, 1], [], []>} : vector<24x24xf32>, vector<24x8xf32>, vector<24x8xf32> -> vector<24x8xf32>
    %87 = tpu.concatenate %35, %52, %69, %86 in 1 : vector<24x8xf32>, vector<24x8xf32>, vector<24x8xf32>, vector<24x8xf32> -> vector<24x32xf32>
    %c0_40 = arith.constant 0 : index
    %c0_41 = arith.constant 0 : index
    %88 = vector.load %arg11[%c0_40, %c0_41] : memref<32x32xf32, #tpu.memory_space<vmem>>, vector<32x32xf32>
    %cst_42 = arith.constant dense<0.000000e+00> : vector<24x32xf32>
    %89 = tpu.matmul %87, %88, %cst_42 {dimension_numbers = #tpu.dot_dimension_numbers<[1], [0], [0], [1], [0, 0, 1, 1], [], []>} : vector<24x32xf32>, vector<32x32xf32>, vector<24x32xf32> -> vector<24x32xf32>
    %c0_43 = arith.constant 0 : index
    %c0_44 = arith.constant 0 : index
    %90 = vector.load %arg12[%c0_43, %c0_44] : memref<1x32xf32, #tpu.memory_space<vmem>>, vector<1x32xf32>
    %91 = vector.broadcast %90 : vector<1x32xf32> to vector<24x32xf32>
    %92 = arith.addf %89, %91 : vector<24x32xf32>
    %93 = arith.addf %3, %92 : vector<24x32xf32>
    %c0_45 = arith.constant 0 : index
    %c0_46 = arith.constant 0 : index
    %94 = vector.load %arg13[%c0_45, %c0_46] : memref<1x32xf32, #tpu.memory_space<vmem>>, vector<1x32xf32>
    %c0_47 = arith.constant 0 : index
    %c0_48 = arith.constant 0 : index
    %95 = vector.load %arg14[%c0_47, %c0_48] : memref<1x32xf32, #tpu.memory_space<vmem>>, vector<1x32xf32>
    %cst_49 = arith.constant dense<0.000000e+00> : vector<24xf32>
    %96 = vector.multi_reduction <add>, %93, %cst_49 [1] : vector<24x32xf32> to vector<24xf32>
    %97 = vector.shape_cast %96 : vector<24xf32> to vector<24x1xf32>
    %cst_50 = arith.constant 3.200000e+01 : f32
    %98 = vector.broadcast %cst_50 : f32 to vector<24x1xf32>
    %99 = arith.divf %97, %98 : vector<24x1xf32>
    %100 = vector.broadcast %99 : vector<24x1xf32> to vector<24x32xf32>
    %101 = arith.subf %93, %100 : vector<24x32xf32>
    %102 = arith.mulf %101, %101 : vector<24x32xf32>
    %cst_51 = arith.constant dense<0.000000e+00> : vector<24xf32>
    %103 = vector.multi_reduction <add>, %102, %cst_51 [1] : vector<24x32xf32> to vector<24xf32>
    %104 = vector.shape_cast %103 : vector<24xf32> to vector<24x1xf32>
    %cst_52 = arith.constant 3.200000e+01 : f32
    %105 = vector.broadcast %cst_52 : f32 to vector<24x1xf32>
    %106 = arith.divf %104, %105 : vector<24x1xf32>
    %cst_53 = arith.constant 9.99999974E-6 : f32
    %107 = vector.broadcast %cst_53 : f32 to vector<24x1xf32>
    %108 = arith.addf %106, %107 : vector<24x1xf32>
    %109 = math.rsqrt %108 : vector<24x1xf32>
    %110 = vector.broadcast %109 : vector<24x1xf32> to vector<24x32xf32>
    %111 = arith.mulf %101, %110 : vector<24x32xf32>
    %112 = vector.broadcast %94 : vector<1x32xf32> to vector<24x32xf32>
    %113 = arith.mulf %111, %112 : vector<24x32xf32>
    %114 = vector.broadcast %95 : vector<1x32xf32> to vector<24x32xf32>
    %115 = arith.addf %113, %114 : vector<24x32xf32>
    %116 = arith.truncf %115 : vector<24x32xf32> to vector<24x32xbf16>
    %c0_54 = arith.constant 0 : index
    %c0_55 = arith.constant 0 : index
    %117 = vector.load %arg15[%c0_54, %c0_55] : memref<32x2048xbf16, #tpu.memory_space<vmem>>, vector<32x2048xbf16>
    %cst_56 = arith.constant dense<0.000000e+00> : vector<24x2048xf32>
    %118 = tpu.matmul %116, %117, %cst_56 {dimension_numbers = #tpu.dot_dimension_numbers<[1], [0], [0], [1], [0, 0, 1, 1], [], []>} : vector<24x32xbf16>, vector<32x2048xbf16>, vector<24x2048xf32> -> vector<24x2048xf32>
    %c0_57 = arith.constant 0 : index
    %c0_58 = arith.constant 0 : index
    %119 = vector.load %arg16[%c0_57, %c0_58] : memref<1x2048xf32, #tpu.memory_space<vmem>>, vector<1x2048xf32>
    %120 = vector.broadcast %119 : vector<1x2048xf32> to vector<24x2048xf32>
    %121 = arith.addf %118, %120 : vector<24x2048xf32>
    %cst_59 = arith.constant 0.000000e+00 : f32
    %122 = vector.broadcast %cst_59 : f32 to vector<24x2048xf32>
    %123 = arith.maximumf %121, %122 : vector<24x2048xf32>
    %124 = arith.truncf %123 : vector<24x2048xf32> to vector<24x2048xbf16>
    %c0_60 = arith.constant 0 : index
    %c0_61 = arith.constant 0 : index
    %125 = vector.load %arg17[%c0_60, %c0_61] : memref<2048x32xbf16, #tpu.memory_space<vmem>>, vector<2048x32xbf16>
    %cst_62 = arith.constant dense<0.000000e+00> : vector<24x32xf32>
    %126 = tpu.matmul %124, %125, %cst_62 {dimension_numbers = #tpu.dot_dimension_numbers<[1], [0], [0], [1], [0, 0, 1, 1], [], []>} : vector<24x2048xbf16>, vector<2048x32xbf16>, vector<24x32xf32> -> vector<24x32xf32>
    %c0_63 = arith.constant 0 : index
    %c0_64 = arith.constant 0 : index
    %127 = vector.load %arg18[%c0_63, %c0_64] : memref<1x32xf32, #tpu.memory_space<vmem>>, vector<1x32xf32>
    %128 = vector.broadcast %127 : vector<1x32xf32> to vector<24x32xf32>
    %129 = arith.addf %126, %128 : vector<24x32xf32>
    %130 = arith.addf %115, %129 : vector<24x32xf32>
    %c0_65 = arith.constant 0 : index
    %c0_66 = arith.constant 0 : index
    %131 = vector.load %arg19[%c0_65, %c0_66] : memref<1x32xf32, #tpu.memory_space<vmem>>, vector<1x32xf32>
    %c0_67 = arith.constant 0 : index
    %c0_68 = arith.constant 0 : index
    %132 = vector.load %arg20[%c0_67, %c0_68] : memref<1x32xf32, #tpu.memory_space<vmem>>, vector<1x32xf32>
    %cst_69 = arith.constant dense<0.000000e+00> : vector<24xf32>
    %133 = vector.multi_reduction <add>, %130, %cst_69 [1] : vector<24x32xf32> to vector<24xf32>
    %134 = vector.shape_cast %133 : vector<24xf32> to vector<24x1xf32>
    %cst_70 = arith.constant 3.200000e+01 : f32
    %135 = vector.broadcast %cst_70 : f32 to vector<24x1xf32>
    %136 = arith.divf %134, %135 : vector<24x1xf32>
    %137 = vector.broadcast %136 : vector<24x1xf32> to vector<24x32xf32>
    %138 = arith.subf %130, %137 : vector<24x32xf32>
    %139 = arith.mulf %138, %138 : vector<24x32xf32>
    %cst_71 = arith.constant dense<0.000000e+00> : vector<24xf32>
    %140 = vector.multi_reduction <add>, %139, %cst_71 [1] : vector<24x32xf32> to vector<24xf32>
    %141 = vector.shape_cast %140 : vector<24xf32> to vector<24x1xf32>
    %cst_72 = arith.constant 3.200000e+01 : f32
    %142 = vector.broadcast %cst_72 : f32 to vector<24x1xf32>
    %143 = arith.divf %141, %142 : vector<24x1xf32>
    %cst_73 = arith.constant 9.99999974E-6 : f32
    %144 = vector.broadcast %cst_73 : f32 to vector<24x1xf32>
    %145 = arith.addf %143, %144 : vector<24x1xf32>
    %146 = math.rsqrt %145 : vector<24x1xf32>
    %147 = vector.broadcast %146 : vector<24x1xf32> to vector<24x32xf32>
    %148 = arith.mulf %138, %147 : vector<24x32xf32>
    %149 = vector.broadcast %131 : vector<1x32xf32> to vector<24x32xf32>
    %150 = arith.mulf %148, %149 : vector<24x32xf32>
    %151 = vector.broadcast %132 : vector<1x32xf32> to vector<24x32xf32>
    %152 = arith.addf %150, %151 : vector<24x32xf32>
    %c0_74 = arith.constant 0 : index
    %c0_75 = arith.constant 0 : index
    %153 = vector.load %arg21[%c0_74, %c0_75] : memref<32x32xf32, #tpu.memory_space<vmem>>, vector<32x32xf32>
    %cst_76 = arith.constant dense<0.000000e+00> : vector<24x32xf32>
    %154 = tpu.matmul %152, %153, %cst_76 {dimension_numbers = #tpu.dot_dimension_numbers<[1], [0], [0], [1], [0, 0, 1, 1], [], []>} : vector<24x32xf32>, vector<32x32xf32>, vector<24x32xf32> -> vector<24x32xf32>
    %c0_77 = arith.constant 0 : index
    %c0_78 = arith.constant 0 : index
    %155 = vector.load %arg22[%c0_77, %c0_78] : memref<1x32xf32, #tpu.memory_space<vmem>>, vector<1x32xf32>
    %156 = vector.broadcast %155 : vector<1x32xf32> to vector<24x32xf32>
    %157 = arith.addf %154, %156 : vector<24x32xf32>
    %c0_79 = arith.constant 0 : index
    %c0_80 = arith.constant 0 : index
    %158 = vector.load %arg23[%c0_79, %c0_80] : memref<32x32xf32, #tpu.memory_space<vmem>>, vector<32x32xf32>
    %cst_81 = arith.constant dense<0.000000e+00> : vector<24x32xf32>
    %159 = tpu.matmul %152, %158, %cst_81 {dimension_numbers = #tpu.dot_dimension_numbers<[1], [0], [0], [1], [0, 0, 1, 1], [], []>} : vector<24x32xf32>, vector<32x32xf32>, vector<24x32xf32> -> vector<24x32xf32>
    %c0_82 = arith.constant 0 : index
    %c0_83 = arith.constant 0 : index
    %160 = vector.load %arg24[%c0_82, %c0_83] : memref<1x32xf32, #tpu.memory_space<vmem>>, vector<1x32xf32>
    %161 = vector.broadcast %160 : vector<1x32xf32> to vector<24x32xf32>
    %162 = arith.addf %159, %161 : vector<24x32xf32>
    %c0_84 = arith.constant 0 : index
    %c0_85 = arith.constant 0 : index
    %163 = vector.load %arg25[%c0_84, %c0_85] : memref<32x32xf32, #tpu.memory_space<vmem>>, vector<32x32xf32>
    %cst_86 = arith.constant dense<0.000000e+00> : vector<24x32xf32>
    %164 = tpu.matmul %152, %163, %cst_86 {dimension_numbers = #tpu.dot_dimension_numbers<[1], [0], [0], [1], [0, 0, 1, 1], [], []>} : vector<24x32xf32>, vector<32x32xf32>, vector<24x32xf32> -> vector<24x32xf32>
    %c0_87 = arith.constant 0 : index
    %c0_88 = arith.constant 0 : index
    %165 = vector.load %arg26[%c0_87, %c0_88] : memref<1x32xf32, #tpu.memory_space<vmem>>, vector<1x32xf32>
    %166 = vector.broadcast %165 : vector<1x32xf32> to vector<24x32xf32>
    %167 = arith.addf %164, %166 : vector<24x32xf32>
    %168 = vector.extract_strided_slice %157 {offsets = [0, 0], sizes = [24, 8], strides = [1, 1]} : vector<24x32xf32> to vector<24x8xf32>
    %169 = vector.extract_strided_slice %162 {offsets = [0, 0], sizes = [24, 8], strides = [1, 1]} : vector<24x32xf32> to vector<24x8xf32>
    %170 = vector.extract_strided_slice %167 {offsets = [0, 0], sizes = [24, 8], strides = [1, 1]} : vector<24x32xf32> to vector<24x8xf32>
    %cst_89 = arith.constant dense<0.000000e+00> : vector<24x24xf32>
    %171 = tpu.matmul %168, %169, %cst_89 {dimension_numbers = #tpu.dot_dimension_numbers<[1], [1], [0], [0], [0, 0, 1, 0], [], []>} : vector<24x8xf32>, vector<24x8xf32>, vector<24x24xf32> -> vector<24x24xf32>
    %cst_90 = arith.constant 0.353553385 : f32
    %172 = vector.broadcast %cst_90 : f32 to vector<24x24xf32>
    %173 = arith.mulf %171, %172 : vector<24x24xf32>
    %174 = arith.addf %173, %0 : vector<24x24xf32>
    %cst_91 = arith.constant dense<0xFF800000> : vector<24xf32>
    %175 = vector.multi_reduction <maximumf>, %174, %cst_91 [1] : vector<24x24xf32> to vector<24xf32>
    %176 = vector.shape_cast %175 : vector<24xf32> to vector<24x1xf32>
    %177 = vector.broadcast %176 : vector<24x1xf32> to vector<24x24xf32>
    %178 = arith.subf %174, %177 : vector<24x24xf32>
    %179 = math.exp %178 : vector<24x24xf32>
    %cst_92 = arith.constant dense<0.000000e+00> : vector<24xf32>
    %180 = vector.multi_reduction <add>, %179, %cst_92 [1] : vector<24x24xf32> to vector<24xf32>
    %181 = vector.shape_cast %180 : vector<24xf32> to vector<24x1xf32>
    %182 = vector.broadcast %181 : vector<24x1xf32> to vector<24x24xf32>
    %183 = arith.divf %179, %182 : vector<24x24xf32>
    %cst_93 = arith.constant dense<0.000000e+00> : vector<24x8xf32>
    %184 = tpu.matmul %183, %170, %cst_93 {dimension_numbers = #tpu.dot_dimension_numbers<[1], [0], [0], [1], [0, 0, 1, 1], [], []>} : vector<24x24xf32>, vector<24x8xf32>, vector<24x8xf32> -> vector<24x8xf32>
    %185 = vector.extract_strided_slice %157 {offsets = [0, 8], sizes = [24, 8], strides = [1, 1]} : vector<24x32xf32> to vector<24x8xf32>
    %186 = vector.extract_strided_slice %162 {offsets = [0, 8], sizes = [24, 8], strides = [1, 1]} : vector<24x32xf32> to vector<24x8xf32>
    %187 = vector.extract_strided_slice %167 {offsets = [0, 8], sizes = [24, 8], strides = [1, 1]} : vector<24x32xf32> to vector<24x8xf32>
    %cst_94 = arith.constant dense<0.000000e+00> : vector<24x24xf32>
    %188 = tpu.matmul %185, %186, %cst_94 {dimension_numbers = #tpu.dot_dimension_numbers<[1], [1], [0], [0], [0, 0, 1, 0], [], []>} : vector<24x8xf32>, vector<24x8xf32>, vector<24x24xf32> -> vector<24x24xf32>
    %cst_95 = arith.constant 0.353553385 : f32
    %189 = vector.broadcast %cst_95 : f32 to vector<24x24xf32>
    %190 = arith.mulf %188, %189 : vector<24x24xf32>
    %191 = arith.addf %190, %0 : vector<24x24xf32>
    %cst_96 = arith.constant dense<0xFF800000> : vector<24xf32>
    %192 = vector.multi_reduction <maximumf>, %191, %cst_96 [1] : vector<24x24xf32> to vector<24xf32>
    %193 = vector.shape_cast %192 : vector<24xf32> to vector<24x1xf32>
    %194 = vector.broadcast %193 : vector<24x1xf32> to vector<24x24xf32>
    %195 = arith.subf %191, %194 : vector<24x24xf32>
    %196 = math.exp %195 : vector<24x24xf32>
    %cst_97 = arith.constant dense<0.000000e+00> : vector<24xf32>
    %197 = vector.multi_reduction <add>, %196, %cst_97 [1] : vector<24x24xf32> to vector<24xf32>
    %198 = vector.shape_cast %197 : vector<24xf32> to vector<24x1xf32>
    %199 = vector.broadcast %198 : vector<24x1xf32> to vector<24x24xf32>
    %200 = arith.divf %196, %199 : vector<24x24xf32>
    %cst_98 = arith.constant dense<0.000000e+00> : vector<24x8xf32>
    %201 = tpu.matmul %200, %187, %cst_98 {dimension_numbers = #tpu.dot_dimension_numbers<[1], [0], [0], [1], [0, 0, 1, 1], [], []>} : vector<24x24xf32>, vector<24x8xf32>, vector<24x8xf32> -> vector<24x8xf32>
    %202 = vector.extract_strided_slice %157 {offsets = [0, 16], sizes = [24, 8], strides = [1, 1]} : vector<24x32xf32> to vector<24x8xf32>
    %203 = vector.extract_strided_slice %162 {offsets = [0, 16], sizes = [24, 8], strides = [1, 1]} : vector<24x32xf32> to vector<24x8xf32>
    %204 = vector.extract_strided_slice %167 {offsets = [0, 16], sizes = [24, 8], strides = [1, 1]} : vector<24x32xf32> to vector<24x8xf32>
    %cst_99 = arith.constant dense<0.000000e+00> : vector<24x24xf32>
    %205 = tpu.matmul %202, %203, %cst_99 {dimension_numbers = #tpu.dot_dimension_numbers<[1], [1], [0], [0], [0, 0, 1, 0], [], []>} : vector<24x8xf32>, vector<24x8xf32>, vector<24x24xf32> -> vector<24x24xf32>
    %cst_100 = arith.constant 0.353553385 : f32
    %206 = vector.broadcast %cst_100 : f32 to vector<24x24xf32>
    %207 = arith.mulf %205, %206 : vector<24x24xf32>
    %208 = arith.addf %207, %0 : vector<24x24xf32>
    %cst_101 = arith.constant dense<0xFF800000> : vector<24xf32>
    %209 = vector.multi_reduction <maximumf>, %208, %cst_101 [1] : vector<24x24xf32> to vector<24xf32>
    %210 = vector.shape_cast %209 : vector<24xf32> to vector<24x1xf32>
    %211 = vector.broadcast %210 : vector<24x1xf32> to vector<24x24xf32>
    %212 = arith.subf %208, %211 : vector<24x24xf32>
    %213 = math.exp %212 : vector<24x24xf32>
    %cst_102 = arith.constant dense<0.000000e+00> : vector<24xf32>
    %214 = vector.multi_reduction <add>, %213, %cst_102 [1] : vector<24x24xf32> to vector<24xf32>
    %215 = vector.shape_cast %214 : vector<24xf32> to vector<24x1xf32>
    %216 = vector.broadcast %215 : vector<24x1xf32> to vector<24x24xf32>
    %217 = arith.divf %213, %216 : vector<24x24xf32>
    %cst_103 = arith.constant dense<0.000000e+00> : vector<24x8xf32>
    %218 = tpu.matmul %217, %204, %cst_103 {dimension_numbers = #tpu.dot_dimension_numbers<[1], [0], [0], [1], [0, 0, 1, 1], [], []>} : vector<24x24xf32>, vector<24x8xf32>, vector<24x8xf32> -> vector<24x8xf32>
    %219 = vector.extract_strided_slice %157 {offsets = [0, 24], sizes = [24, 8], strides = [1, 1]} : vector<24x32xf32> to vector<24x8xf32>
    %220 = vector.extract_strided_slice %162 {offsets = [0, 24], sizes = [24, 8], strides = [1, 1]} : vector<24x32xf32> to vector<24x8xf32>
    %221 = vector.extract_strided_slice %167 {offsets = [0, 24], sizes = [24, 8], strides = [1, 1]} : vector<24x32xf32> to vector<24x8xf32>
    %cst_104 = arith.constant dense<0.000000e+00> : vector<24x24xf32>
    %222 = tpu.matmul %219, %220, %cst_104 {dimension_numbers = #tpu.dot_dimension_numbers<[1], [1], [0], [0], [0, 0, 1, 0], [], []>} : vector<24x8xf32>, vector<24x8xf32>, vector<24x24xf32> -> vector<24x24xf32>
    %cst_105 = arith.constant 0.353553385 : f32
    %223 = vector.broadcast %cst_105 : f32 to vector<24x24xf32>
    %224 = arith.mulf %222, %223 : vector<24x24xf32>
    %225 = arith.addf %224, %0 : vector<24x24xf32>
    %cst_106 = arith.constant dense<0xFF800000> : vector<24xf32>
    %226 = vector.multi_reduction <maximumf>, %225, %cst_106 [1] : vector<24x24xf32> to vector<24xf32>
    %227 = vector.shape_cast %226 : vector<24xf32> to vector<24x1xf32>
    %228 = vector.broadcast %227 : vector<24x1xf32> to vector<24x24xf32>
    %229 = arith.subf %225, %228 : vector<24x24xf32>
    %230 = math.exp %229 : vector<24x24xf32>
    %cst_107 = arith.constant dense<0.000000e+00> : vector<24xf32>
    %231 = vector.multi_reduction <add>, %230, %cst_107 [1] : vector<24x24xf32> to vector<24xf32>
    %232 = vector.shape_cast %231 : vector<24xf32> to vector<24x1xf32>
    %233 = vector.broadcast %232 : vector<24x1xf32> to vector<24x24xf32>
    %234 = arith.divf %230, %233 : vector<24x24xf32>
    %cst_108 = arith.constant dense<0.000000e+00> : vector<24x8xf32>
    %235 = tpu.matmul %234, %221, %cst_108 {dimension_numbers = #tpu.dot_dimension_numbers<[1], [0], [0], [1], [0, 0, 1, 1], [], []>} : vector<24x24xf32>, vector<24x8xf32>, vector<24x8xf32> -> vector<24x8xf32>
    %236 = tpu.concatenate %184, %201, %218, %235 in 1 : vector<24x8xf32>, vector<24x8xf32>, vector<24x8xf32>, vector<24x8xf32> -> vector<24x32xf32>
    %c0_109 = arith.constant 0 : index
    %c0_110 = arith.constant 0 : index
    %237 = vector.load %arg27[%c0_109, %c0_110] : memref<32x32xf32, #tpu.memory_space<vmem>>, vector<32x32xf32>
    %cst_111 = arith.constant dense<0.000000e+00> : vector<24x32xf32>
    %238 = tpu.matmul %236, %237, %cst_111 {dimension_numbers = #tpu.dot_dimension_numbers<[1], [0], [0], [1], [0, 0, 1, 1], [], []>} : vector<24x32xf32>, vector<32x32xf32>, vector<24x32xf32> -> vector<24x32xf32>
    %c0_112 = arith.constant 0 : index
    %c0_113 = arith.constant 0 : index
    %239 = vector.load %arg28[%c0_112, %c0_113] : memref<1x32xf32, #tpu.memory_space<vmem>>, vector<1x32xf32>
    %240 = vector.broadcast %239 : vector<1x32xf32> to vector<24x32xf32>
    %241 = arith.addf %238, %240 : vector<24x32xf32>
    %242 = arith.addf %152, %241 : vector<24x32xf32>
    %c0_114 = arith.constant 0 : index
    %c0_115 = arith.constant 0 : index
    %243 = vector.load %arg29[%c0_114, %c0_115] : memref<1x32xf32, #tpu.memory_space<vmem>>, vector<1x32xf32>
    %c0_116 = arith.constant 0 : index
    %c0_117 = arith.constant 0 : index
    %244 = vector.load %arg30[%c0_116, %c0_117] : memref<1x32xf32, #tpu.memory_space<vmem>>, vector<1x32xf32>
    %cst_118 = arith.constant dense<0.000000e+00> : vector<24xf32>
    %245 = vector.multi_reduction <add>, %242, %cst_118 [1] : vector<24x32xf32> to vector<24xf32>
    %246 = vector.shape_cast %245 : vector<24xf32> to vector<24x1xf32>
    %cst_119 = arith.constant 3.200000e+01 : f32
    %247 = vector.broadcast %cst_119 : f32 to vector<24x1xf32>
    %248 = arith.divf %246, %247 : vector<24x1xf32>
    %249 = vector.broadcast %248 : vector<24x1xf32> to vector<24x32xf32>
    %250 = arith.subf %242, %249 : vector<24x32xf32>
    %251 = arith.mulf %250, %250 : vector<24x32xf32>
    %cst_120 = arith.constant dense<0.000000e+00> : vector<24xf32>
    %252 = vector.multi_reduction <add>, %251, %cst_120 [1] : vector<24x32xf32> to vector<24xf32>
    %253 = vector.shape_cast %252 : vector<24xf32> to vector<24x1xf32>
    %cst_121 = arith.constant 3.200000e+01 : f32
    %254 = vector.broadcast %cst_121 : f32 to vector<24x1xf32>
    %255 = arith.divf %253, %254 : vector<24x1xf32>
    %cst_122 = arith.constant 9.99999974E-6 : f32
    %256 = vector.broadcast %cst_122 : f32 to vector<24x1xf32>
    %257 = arith.addf %255, %256 : vector<24x1xf32>
    %258 = math.rsqrt %257 : vector<24x1xf32>
    %259 = vector.broadcast %258 : vector<24x1xf32> to vector<24x32xf32>
    %260 = arith.mulf %250, %259 : vector<24x32xf32>
    %261 = vector.broadcast %243 : vector<1x32xf32> to vector<24x32xf32>
    %262 = arith.mulf %260, %261 : vector<24x32xf32>
    %263 = vector.broadcast %244 : vector<1x32xf32> to vector<24x32xf32>
    %264 = arith.addf %262, %263 : vector<24x32xf32>
    %265 = arith.truncf %264 : vector<24x32xf32> to vector<24x32xbf16>
    %c0_123 = arith.constant 0 : index
    %c0_124 = arith.constant 0 : index
    %266 = vector.load %arg31[%c0_123, %c0_124] : memref<32x2048xbf16, #tpu.memory_space<vmem>>, vector<32x2048xbf16>
    %cst_125 = arith.constant dense<0.000000e+00> : vector<24x2048xf32>
    %267 = tpu.matmul %265, %266, %cst_125 {dimension_numbers = #tpu.dot_dimension_numbers<[1], [0], [0], [1], [0, 0, 1, 1], [], []>} : vector<24x32xbf16>, vector<32x2048xbf16>, vector<24x2048xf32> -> vector<24x2048xf32>
    %c0_126 = arith.constant 0 : index
    %c0_127 = arith.constant 0 : index
    %268 = vector.load %arg32[%c0_126, %c0_127] : memref<1x2048xf32, #tpu.memory_space<vmem>>, vector<1x2048xf32>
    %269 = vector.broadcast %268 : vector<1x2048xf32> to vector<24x2048xf32>
    %270 = arith.addf %267, %269 : vector<24x2048xf32>
    %cst_128 = arith.constant 0.000000e+00 : f32
    %271 = vector.broadcast %cst_128 : f32 to vector<24x2048xf32>
    %272 = arith.maximumf %270, %271 : vector<24x2048xf32>
    %273 = arith.truncf %272 : vector<24x2048xf32> to vector<24x2048xbf16>
    %c0_129 = arith.constant 0 : index
    %c0_130 = arith.constant 0 : index
    %274 = vector.load %arg33[%c0_129, %c0_130] : memref<2048x32xbf16, #tpu.memory_space<vmem>>, vector<2048x32xbf16>
    %cst_131 = arith.constant dense<0.000000e+00> : vector<24x32xf32>
    %275 = tpu.matmul %273, %274, %cst_131 {dimension_numbers = #tpu.dot_dimension_numbers<[1], [0], [0], [1], [0, 0, 1, 1], [], []>} : vector<24x2048xbf16>, vector<2048x32xbf16>, vector<24x32xf32> -> vector<24x32xf32>
    %c0_132 = arith.constant 0 : index
    %c0_133 = arith.constant 0 : index
    %276 = vector.load %arg34[%c0_132, %c0_133] : memref<1x32xf32, #tpu.memory_space<vmem>>, vector<1x32xf32>
    %277 = vector.broadcast %276 : vector<1x32xf32> to vector<24x32xf32>
    %278 = arith.addf %275, %277 : vector<24x32xf32>
    %279 = arith.addf %264, %278 : vector<24x32xf32>
    %c0_134 = arith.constant 0 : index
    %c0_135 = arith.constant 0 : index
    %280 = vector.load %arg35[%c0_134, %c0_135] : memref<1x32xf32, #tpu.memory_space<vmem>>, vector<1x32xf32>
    %c0_136 = arith.constant 0 : index
    %c0_137 = arith.constant 0 : index
    %281 = vector.load %arg36[%c0_136, %c0_137] : memref<1x32xf32, #tpu.memory_space<vmem>>, vector<1x32xf32>
    %cst_138 = arith.constant dense<0.000000e+00> : vector<24xf32>
    %282 = vector.multi_reduction <add>, %279, %cst_138 [1] : vector<24x32xf32> to vector<24xf32>
    %283 = vector.shape_cast %282 : vector<24xf32> to vector<24x1xf32>
    %cst_139 = arith.constant 3.200000e+01 : f32
    %284 = vector.broadcast %cst_139 : f32 to vector<24x1xf32>
    %285 = arith.divf %283, %284 : vector<24x1xf32>
    %286 = vector.broadcast %285 : vector<24x1xf32> to vector<24x32xf32>
    %287 = arith.subf %279, %286 : vector<24x32xf32>
    %288 = arith.mulf %287, %287 : vector<24x32xf32>
    %cst_140 = arith.constant dense<0.000000e+00> : vector<24xf32>
    %289 = vector.multi_reduction <add>, %288, %cst_140 [1] : vector<24x32xf32> to vector<24xf32>
    %290 = vector.shape_cast %289 : vector<24xf32> to vector<24x1xf32>
    %cst_141 = arith.constant 3.200000e+01 : f32
    %291 = vector.broadcast %cst_141 : f32 to vector<24x1xf32>
    %292 = arith.divf %290, %291 : vector<24x1xf32>
    %cst_142 = arith.constant 9.99999974E-6 : f32
    %293 = vector.broadcast %cst_142 : f32 to vector<24x1xf32>
    %294 = arith.addf %292, %293 : vector<24x1xf32>
    %295 = math.rsqrt %294 : vector<24x1xf32>
    %296 = vector.broadcast %295 : vector<24x1xf32> to vector<24x32xf32>
    %297 = arith.mulf %287, %296 : vector<24x32xf32>
    %298 = vector.broadcast %280 : vector<1x32xf32> to vector<24x32xf32>
    %299 = arith.mulf %297, %298 : vector<24x32xf32>
    %300 = vector.broadcast %281 : vector<1x32xf32> to vector<24x32xf32>
    %301 = arith.addf %299, %300 : vector<24x32xf32>
    %c0_143 = arith.constant 0 : index
    %c0_144 = arith.constant 0 : index
    %302 = vector.load %arg3[%c0_143, %c0_144] : memref<2x24xf32, #tpu.memory_space<vmem>>, vector<2x24xf32>
    %cst_145 = arith.constant dense<0.000000e+00> : vector<2x32xf32>
    %303 = tpu.matmul %302, %301, %cst_145 {dimension_numbers = #tpu.dot_dimension_numbers<[1], [0], [0], [1], [0, 0, 1, 1], [], []>} : vector<2x24xf32>, vector<24x32xf32>, vector<2x32xf32> -> vector<2x32xf32>
    %c0_146 = arith.constant 0 : index
    %c0_147 = arith.constant 0 : index
    %304 = vector.load %arg37[%c0_146, %c0_147] : memref<1x32xf32, #tpu.memory_space<vmem>>, vector<1x32xf32>
    %305 = vector.broadcast %304 : vector<1x32xf32> to vector<2x32xf32>
    %306 = arith.mulf %303, %305 : vector<2x32xf32>
    %cst_148 = arith.constant dense<0.000000e+00> : vector<2xf32>
    %307 = vector.multi_reduction <add>, %306, %cst_148 [1] : vector<2x32xf32> to vector<2xf32>
    %308 = vector.shape_cast %307 : vector<2xf32> to vector<2x1xf32>
    %c0_149 = arith.constant 0 : index
    %c0_150 = arith.constant 0 : index
    %309 = vector.load %arg38[%c0_149, %c0_150] : memref<1x1xf32, #tpu.memory_space<vmem>>, vector<1x1xf32>
    %310 = vector.broadcast %309 : vector<1x1xf32> to vector<2x1xf32>
    %311 = arith.addf %308, %310 : vector<2x1xf32>
    %c0_151 = arith.constant 0 : index
    %c0_152 = arith.constant 0 : index
    %312 = vector.load %arg39[%c0_151, %c0_152] : memref<2x1xf32, #tpu.memory_space<vmem>>, vector<2x1xf32>
    tpu.vector_store %arg39[%c0_151, %c0_152], %311 {strides = array<i32>} : memref<2x1xf32, #tpu.memory_space<vmem>>, vector<2x1xf32>,
    return
  }
  func.func @transform_0(%arg0: i32) -> (i32, i32) {
    %c0_i32 = arith.constant 0 : i32
    %c0_i32_0 = arith.constant 0 : i32
    return %arg0, %c0_i32 : i32, i32
  }
  func.func @transform_1(%arg0: i32) -> (i32, i32) {
    %c0_i32 = arith.constant 0 : i32
    %c0_i32_0 = arith.constant 0 : i32
    %c0_i32_1 = arith.constant 0 : i32
    return %c0_i32, %c0_i32_0 : i32, i32
  }
  func.func @transform_2(%arg0: i32) -> (i32, i32) {
    %c0_i32 = arith.constant 0 : i32
    %c0_i32_0 = arith.constant 0 : i32
    %c0_i32_1 = arith.constant 0 : i32
    return %c0_i32, %c0_i32_0 : i32, i32
  }
  func.func @transform_3(%arg0: i32) -> (i32, i32) {
    %c0_i32 = arith.constant 0 : i32
    %c0_i32_0 = arith.constant 0 : i32
    %c0_i32_1 = arith.constant 0 : i32
    return %c0_i32, %c0_i32_0 : i32, i32
  }
  func.func @transform_4(%arg0: i32) -> (i32, i32) {
    %c0_i32 = arith.constant 0 : i32
    %c0_i32_0 = arith.constant 0 : i32
    %c0_i32_1 = arith.constant 0 : i32
    return %c0_i32, %c0_i32_0 : i32, i32
  }
  func.func @transform_5(%arg0: i32) -> (i32, i32) {
    %c0_i32 = arith.constant 0 : i32
    %c0_i32_0 = arith.constant 0 : i32
    %c0_i32_1 = arith.constant 0 : i32
    return %c0_i32, %c0_i32_0 : i32, i32
  }
  func.func @transform_6(%arg0: i32) -> (i32, i32) {
    %c0_i32 = arith.constant 0 : i32
    %c0_i32_0 = arith.constant 0 : i32
    %c0_i32_1 = arith.constant 0 : i32
    return %c0_i32, %c0_i32_0 : i32, i32
  }
  func.func @transform_7(%arg0: i32) -> (i32, i32) {
    %c0_i32 = arith.constant 0 : i32
    %c0_i32_0 = arith.constant 0 : i32
    %c0_i32_1 = arith.constant 0 : i32
    return %c0_i32, %c0_i32_0 : i32, i32
  }
  func.func @transform_8(%arg0: i32) -> (i32, i32) {
    %c0_i32 = arith.constant 0 : i32
    %c0_i32_0 = arith.constant 0 : i32
    %c0_i32_1 = arith.constant 0 : i32
    return %c0_i32, %c0_i32_0 : i32, i32
  }
  func.func @transform_9(%arg0: i32) -> (i32, i32) {
    %c0_i32 = arith.constant 0 : i32
    %c0_i32_0 = arith.constant 0 : i32
    %c0_i32_1 = arith.constant 0 : i32
    return %c0_i32, %c0_i32_0 : i32, i32
  }
  func.func @transform_10(%arg0: i32) -> (i32, i32) {
    %c0_i32 = arith.constant 0 : i32
    %c0_i32_0 = arith.constant 0 : i32
    %c0_i32_1 = arith.constant 0 : i32
    return %c0_i32, %c0_i32_0 : i32, i32
  }
  func.func @transform_11(%arg0: i32) -> (i32, i32) {
    %c0_i32 = arith.constant 0 : i32
    %c0_i32_0 = arith.constant 0 : i32
    %c0_i32_1 = arith.constant 0 : i32
    return %c0_i32, %c0_i32_0 : i32, i32
  }
  func.func @transform_12(%arg0: i32) -> (i32, i32) {
    %c0_i32 = arith.constant 0 : i32
    %c0_i32_0 = arith.constant 0 : i32
    %c0_i32_1 = arith.constant 0 : i32
    return %c0_i32, %c0_i32_0 : i32, i32
  }
  func.func @transform_13(%arg0: i32) -> (i32, i32) {
    %c0_i32 = arith.constant 0 : i32
    %c0_i32_0 = arith.constant 0 : i32
    %c0_i32_1 = arith.constant 0 : i32
    return %c0_i32, %c0_i32_0 : i32, i32
  }
  func.func @transform_14(%arg0: i32) -> (i32, i32) {
    %c0_i32 = arith.constant 0 : i32
    %c0_i32_0 = arith.constant 0 : i32
    %c0_i32_1 = arith.constant 0 : i32
    return %c0_i32, %c0_i32_0 : i32, i32
  }
  func.func @transform_15(%arg0: i32) -> (i32, i32) {
    %c0_i32 = arith.constant 0 : i32
    %c0_i32_0 = arith.constant 0 : i32
    %c0_i32_1 = arith.constant 0 : i32
    return %c0_i32, %c0_i32_0 : i32, i32
  }
  func.func @transform_16(%arg0: i32) -> (i32, i32) {
    %c0_i32 = arith.constant 0 : i32
    %c0_i32_0 = arith.constant 0 : i32
    %c0_i32_1 = arith.constant 0 : i32
    return %c0_i32, %c0_i32_0 : i32, i32
  }
  func.func @transform_17(%arg0: i32) -> (i32, i32) {
    %c0_i32 = arith.constant 0 : i32
    %c0_i32_0 = arith.constant 0 : i32
    %c0_i32_1 = arith.constant 0 : i32
    return %c0_i32, %c0_i32_0 : i32, i32
  }
  func.func @transform_18(%arg0: i32) -> (i32, i32) {
    %c0_i32 = arith.constant 0 : i32
    %c0_i32_0 = arith.constant 0 : i32
    %c0_i32_1 = arith.constant 0 : i32
    return %c0_i32, %c0_i32_0 : i32, i32
  }
  func.func @transform_19(%arg0: i32) -> (i32, i32) {
    %c0_i32 = arith.constant 0 : i32
    %c0_i32_0 = arith.constant 0 : i32
    %c0_i32_1 = arith.constant 0 : i32
    return %c0_i32, %c0_i32_0 : i32, i32
  }
  func.func @transform_20(%arg0: i32) -> (i32, i32) {
    %c0_i32 = arith.constant 0 : i32
    %c0_i32_0 = arith.constant 0 : i32
    %c0_i32_1 = arith.constant 0 : i32
    return %c0_i32, %c0_i32_0 : i32, i32
  }
  func.func @transform_21(%arg0: i32) -> (i32, i32) {
    %c0_i32 = arith.constant 0 : i32
    %c0_i32_0 = arith.constant 0 : i32
    %c0_i32_1 = arith.constant 0 : i32
    return %c0_i32, %c0_i32_0 : i32, i32
  }
  func.func @transform_22(%arg0: i32) -> (i32, i32) {
    %c0_i32 = arith.constant 0 : i32
    %c0_i32_0 = arith.constant 0 : i32
    %c0_i32_1 = arith.constant 0 : i32
    return %c0_i32, %c0_i32_0 : i32, i32
  }
  func.func @transform_23(%arg0: i32) -> (i32, i32) {
    %c0_i32 = arith.constant 0 : i32
    %c0_i32_0 = arith.constant 0 : i32
    %c0_i32_1 = arith.constant 0 : i32
    return %c0_i32, %c0_i32_0 : i32, i32
  }
  func.func @transform_24(%arg0: i32) -> (i32, i32) {
    %c0_i32 = arith.constant 0 : i32
    %c0_i32_0 = arith.constant 0 : i32
    %c0_i32_1 = arith.constant 0 : i32
    return %c0_i32, %c0_i32_0 : i32, i32
  }
  func.func @transform_25(%arg0: i32) -> (i32, i32) {
    %c0_i32 = arith.constant 0 : i32
    %c0_i32_0 = arith.constant 0 : i32
    %c0_i32_1 = arith.constant 0 : i32
    return %c0_i32, %c0_i32_0 : i32, i32
  }
  func.func @transform_26(%arg0: i32) -> (i32, i32) {
    %c0_i32 = arith.constant 0 : i32
    %c0_i32_0 = arith.constant 0 : i32
    %c0_i32_1 = arith.constant 0 : i32
    return %c0_i32, %c0_i32_0 : i32, i32
  }
  func.func @transform_27(%arg0: i32) -> (i32, i32) {
    %c0_i32 = arith.constant 0 : i32
    %c0_i32_0 = arith.constant 0 : i32
    %c0_i32_1 = arith.constant 0 : i32
    return %c0_i32, %c0_i32_0 : i32, i32
  }
  func.func @transform_28(%arg0: i32) -> (i32, i32) {
    %c0_i32 = arith.constant 0 : i32
    %c0_i32_0 = arith.constant 0 : i32
    %c0_i32_1 = arith.constant 0 : i32
    return %c0_i32, %c0_i32_0 : i32, i32
  }
  func.func @transform_29(%arg0: i32) -> (i32, i32) {
    %c0_i32 = arith.constant 0 : i32
    %c0_i32_0 = arith.constant 0 : i32
    %c0_i32_1 = arith.constant 0 : i32
    return %c0_i32, %c0_i32_0 : i32, i32
  }
  func.func @transform_30(%arg0: i32) -> (i32, i32) {
    %c0_i32 = arith.constant 0 : i32
    %c0_i32_0 = arith.constant 0 : i32
    %c0_i32_1 = arith.constant 0 : i32
    return %c0_i32, %c0_i32_0 : i32, i32
  }
  func.func @transform_31(%arg0: i32) -> (i32, i32) {
    %c0_i32 = arith.constant 0 : i32
    %c0_i32_0 = arith.constant 0 : i32
    %c0_i32_1 = arith.constant 0 : i32
    return %c0_i32, %c0_i32_0 : i32, i32
  }
  func.func @transform_32(%arg0: i32) -> (i32, i32) {
    %c0_i32 = arith.constant 0 : i32
    %c0_i32_0 = arith.constant 0 : i32
    %c0_i32_1 = arith.constant 0 : i32
    return %c0_i32, %c0_i32_0 : i32, i32
  }
  func.func @transform_33(%arg0: i32) -> (i32, i32) {
    %c0_i32 = arith.constant 0 : i32
    %c0_i32_0 = arith.constant 0 : i32
    %c0_i32_1 = arith.constant 0 : i32
    return %c0_i32, %c0_i32_0 : i32, i32
  }
  func.func @transform_34(%arg0: i32) -> (i32, i32) {
    %c0_i32 = arith.constant 0 : i32
    %c0_i32_0 = arith.constant 0 : i32
    %c0_i32_1 = arith.constant 0 : i32
    return %c0_i32, %c0_i32_0 : i32, i32
  }
  func.func @transform_35(%arg0: i32) -> (i32, i32) {
    %c0_i32 = arith.constant 0 : i32
    %c0_i32_0 = arith.constant 0 : i32
    %c0_i32_1 = arith.constant 0 : i32
    return %c0_i32, %c0_i32_0 : i32, i32
  }
  func.func @transform_36(%arg0: i32) -> (i32, i32) {
    %c0_i32 = arith.constant 0 : i32
    %c0_i32_0 = arith.constant 0 : i32
    %c0_i32_1 = arith.constant 0 : i32
    return %c0_i32, %c0_i32_0 : i32, i32
  }
  func.func @transform_37(%arg0: i32) -> (i32, i32) {
    %c0_i32 = arith.constant 0 : i32
    %c0_i32_0 = arith.constant 0 : i32
    %c0_i32_1 = arith.constant 0 : i32
    return %c0_i32, %c0_i32_0 : i32, i32
  }
  func.func @transform_38(%arg0: i32) -> (i32, i32) {
    %c0_i32 = arith.constant 0 : i32
    %c0_i32_0 = arith.constant 0 : i32
    return %arg0, %c0_i32 : i32, i32
  }
}

</mosaic_0001>

<bundles_post_ra>
// kernel: tpu_custom_call.1
= control target key start
LH: loop header
LB: loop body
LE: loop exit
PB: predicated region body
PF: predicated region fallthrough
CT: control target
= control target key end

     0   :  { %v9687_v0 = vmov 0.0   ;;  %s9688_s3 = smov 3   ;;  %vm9689_vm0 = vmmov 0   ;;  %s9690_s10 = smov 4   ;;  %vm170_vm1 = vcmask 195584   ;;  %vm271_vm2 = vcmask 261120   ;;  %s11432_s0 = inlined_call_operand.smem [shape: u32[39], index: -1, kind: input, shape index: {}] }
   0x1   :  { %8864 = vmatprep.subr.mxu0 %v9687_v0  ;;  %s7746_s6 = sld [smem:[%s11432_s0 + %s9688_s3]]   ;;  %8870 = vmatprep.mubr.msk.f32.mxu0 %vm9689_vm0, %v9687_v0  ;;  %s9691_s14 = smov 6   ;;  %vm543_vm3 = vcmask 64512   ;;  %vm1535_vm4 = vcmask 130048   ;;  %vm7726_vm5 = vcmask 254976   ;;  %vm7738_vm6 = vcmask 1024  }
   0x2   :  { %s9745_s9 = sld [smem:[%s11432_s0]]   ;;  %8879 = vmatprep.subr.mxu1 %v9687_v0  ;;  %8887 = vmatprep.mubr.msk.f32.mxu1 %vm9689_vm0, %v9687_v0  ;;  %s9692_s18 = smov 8  }
   0x3   :  { %s9753_s13 = sld [smem:[%s11432_s0 + %s9690_s10]]   ;;  %s9693_s22 = smov 7  }
   0x4   :  { %s9758_s17 = sld [smem:[%s11432_s0 + %s9691_s14]]   ;;  %s9694_s26 = smov 5  }
   0x5   :  { %s7751_s21 = sld [smem:[%s11432_s0 + %s9692_s18]]   ;;  %s9695_s30 = smov 120  }
   0x6   :  { %s7750_s25 = sld [smem:[%s11432_s0 + %s9693_s22]]   ;;  %s9696_s1 = smov 9  }
   0x7   :  { %v169_v1 = vld [vmem:[%s7746_s6 + $0x10] sm:$0xff]  ;;  %v168_v2 = vld [vmem:[%s7746_s6 + $0x8] sm:$0xff]  ;;  %v167_v3 = vld [vmem:[%s7746_s6] sm:$0xff]  ;;  %s7748_s29 = sld [smem:[%s11432_s0 + %s9694_s26]]   ;;  %s9697_s5 = smov 112  }
   0x8   :  { %8865 = vmatpush3.msra.mxu0 %v169_v1  ;;  %v164_v6 = vld [vmem:[%s9745_s9] sm:$0xff]  ;;  %v165_v10 = vld [vmem:[%s9745_s9 + $0x8] sm:$0xff]  ;;  %v166_v12 = vld [vmem:[%s9745_s9 + $0x10] sm:$0xff]  ;;  %s7752_s4 = sld [smem:[%s11432_s0 + %s9696_s1]]   ;;  %s9698_s6 = smov 104  }
   0x9   :  { %8866 = vmatprep.subr.mxu0 %v9687_v0  ;;  %v263_v4 = vld [vmem:[%s9753_s13 + $0x18] sm:$0xff]  ;;  %v262_v5 = vld [vmem:[%s9753_s13 + $0x10] sm:$0xff]  ;;  %v261_v9 = vld [vmem:[%s9753_s13 + $0x8] sm:$0xff]  ;;  %s9699_s7 = smov 1   ;;  %s9700_s11 = smov 16  }
   0xa   :  { %8867 = vmatpush3.msra.mxu0 %v168_v2  ;;  %8880 = vmatpush3.msra.mxu1 %v263_v4  ;;  %v364_v7 = vld [vmem:[%s9758_s17 + $0x18] sm:$0xff]  ;;  %v363_v8 = vld [vmem:[%s9758_s17 + $0x10] sm:$0xff]  ;;  %v362_v11 = vld [vmem:[%s9758_s17 + $0x8] sm:$0xff]  ;;  %s9949_s10 = sld [smem:[%s11432_s0 + %s9699_s7]]   ;;  %s9701_s15 = smov 10  }
   0xb   :  { %8868 = vmatprep.subr.mxu0 %v9687_v0  ;;  %8881 = vmatprep.subr.mxu1 %v9687_v0  ;;  %v260_v13 = vld [vmem:[%s9753_s13] sm:$0xff]  ;;  %v455_v16 = vld [vmem:[%s7751_s21 + $0x18] sm:$0xff]  ;;  %v454_v19 = vld [vmem:[%s7751_s21 + $0x10] sm:$0xff]  ;;  %s10138_s14 = sld [smem:[%s11432_s0 + %s9700_s11]]   ;;  %s9702_s20 = smov 24  }
   0xc   :  { %8869 = vmatpush3.msra.mxu0 %v167_v3  ;;  %8882 = vmatpush3.msra.mxu1 %v262_v5  ;;  %v361_v14 = vld [vmem:[%s9758_s17] sm:$0xff]  ;;  %v453_v21 = vld [vmem:[%s7751_s21 + $0x8] sm:$0xff]  ;;  %s7753_s19 = sld [smem:[%s11432_s0 + %s9701_s15]]   ;;  %s9708_s12 = smov 15  }
   0xd   :  { %8871 = vmatmul.mubr.msk.f32.vlgmr.msra.gmra.mxu0 %vm170_vm1, %v164_v6  ;;  %8896 = vmatprep.subr.mxu0 %v9687_v0  ;;  %v452_v23 = vld [vmem:[%s7751_s21] sm:$0xff]  ;;  %s9703_s21 = smov 11   ;;  %s10344_s16 = sld [smem:[%s11432_s0 + %s9708_s12]]  }
   0xe   :  { %8873 = vmatprep.mubr.msk.f32.mxu0 %vm9689_vm0, %v9687_v0  ;;  %8897 = vmatpush3.msra.mxu0 %v364_v7  ;;  %v7789_v25 = vld [vmem:[%s7750_s25] ss:$0 sm:$0xff]  ;;  %s7754_s24 = sld [smem:[%s11432_s0 + %s9703_s21]]   ;;  %s9704_s25 = smov 14  }
   0xf   :  { %8898 = vmatprep.subr.mxu0 %v9687_v0  ;;  %8883 = vmatprep.subr.mxu1 %v9687_v0  ;;  %v7785_v29 = vld [vmem:[%s7748_s29] ss:$0 sm:$0xff]  ;;  %s10197_s28 = sld [smem:[%s11432_s0 + %s9704_s25]]   ;;  %s9706_s29 = smov 12  }
  0x10   :  { %8899 = vmatpush3.msra.mxu0 %v363_v8  ;;  %8884 = vmatpush3.msra.mxu1 %v261_v9  ;;  %v7793_v49 = vld [vmem:[%s7752_s4] ss:$0 sm:$0xff]  ;;  %s7755_s3 = sld [smem:[%s11432_s0 + %s9706_s29]]   ;;  %s9707_s4 = smov 13  }
  0x11   :  { %8874 = vmatmul.mubr.msk.f32.gmra.mxu0 %vm170_vm1, %v165_v10  ;;  %8900 = vmatprep.subr.mxu0 %v9687_v0  ;;  %s7756_s9 = sld [smem:[%s11432_s0 + %s9707_s4]]   ;;  %s9710_s22 = smov 20  }
  0x12   :  { %8876 = vmatprep.mubr.msk.f32.mxu0 %vm9689_vm0, %v9687_v0  ;;  %8901 = vmatpush3.msra.mxu0 %v362_v11  ;;  %v161_v11 = vld [vmem:[%s9949_s10] sm:$0xff]  ;;  %s7763_s25 = sld [smem:[%s11432_s0 + %s9710_s22]]   ;;  %s9711_s26 = smov 22  }
  0x13   :  { %8885 = vmatprep.subr.mxu1 %v9687_v0  ;;  %8902 = vmatprep.subr.mxu0 %v9687_v0  ;;  %s7765_s29 = sld [smem:[%s11432_s0 + %s9711_s26]]   ;;  %s9712_s1 = smov 18  }
  0x14   :  { %8886 = vmatpush3.msra.mxu1 %v260_v13  ;;  %8903 = vmatpush3.msra.mxu0 %v361_v14  ;;  %s7761_s4 = sld [smem:[%s11432_s0 + %s9712_s1]]   ;;  %s9713_s7 = smov 19  }
  0x15   :  { %8877 = vmatmul.mubr.msk.f32.gmra.mxu0 %vm170_vm1, %v166_v12  ;;  %8913 = vmatprep.subr.mxu1 %v9687_v0  ;;  %s7762_s12 = sld [smem:[%s11432_s0 + %s9713_s7]]   ;;  %s9715_s22 = smov 21  }
  0x16   :  { %8904 = vmatprep.mubr.msk.f32.mxu0 %vm9689_vm0, %v9687_v0  ;;  %8930 = vmatprep.subr.mxu0 %v9687_v0  ;;  %s9716_s26 = smov 25   ;;  %s9719_s2 = smov 30  }
  0x17   :  { %s11030_s7 = sld [smem:[%s11432_s0 + %s9719_s2]]   ;;  %s9720_s8 = smov 28  }
  0x18   :  { %s7771_s13 = sld [smem:[%s11432_s0 + %s9720_s8]]   ;;  %s9721_s15 = smov 32  }
  0x19   :  { %s11055_s17 = sld [smem:[%s11432_s0 + %s9721_s15]]  }
  0xcd   :  { %v9795_v15 = vpop.f32.mrf.mxu0 }
  0xce   :  { %8888 = vmatmul.mubr.msk.f32.vlgmr.msra.gmra.mxu1 %vm271_vm2, %v9795_v15  ;;  %8905 = vmatmul.mubr.msk.f32.vlgmr.msra.gmra.mxu0 %vm271_vm2, %v9795_v15 }
  0xcf   :  { %v8872_v17 = vpop.f32.mrf.mxu0  ;;  %8890 = vmatprep.mubr.msk.f32.mxu1 %vm9689_vm0, %v9687_v0  ;;  %8907 = vmatprep.mubr.msk.f32.mxu0 %vm9689_vm0, %v9687_v0 }
  0xd0   :  { %8914 = vmatpush3.msra.mxu1 %v455_v16  ;;  %v162_v17 = vld [vmem:[%s9949_s10 + $0x8] sm:$0xff] }
  0xd1   :  { %v9805_v18 = vpop.f32.mrf.mxu0  ;;  %8915 = vmatprep.subr.mxu1 %v9687_v0 }
  0xd2   :  { %8891 = vmatmul.mubr.msk.f32.gmra.mxu1 %vm271_vm2, %v9805_v18  ;;  %8908 = vmatmul.mubr.msk.f32.gmra.mxu0 %vm271_vm2, %v9805_v18 }
  0xd3   :  { %v8875_v20 = vpop.f32.mrf.mxu0  ;;  %8893 = vmatprep.mubr.msk.f32.mxu1 %vm9689_vm0, %v9687_v0  ;;  %8910 = vmatprep.mubr.msk.f32.mxu0 %vm9689_vm0, %v9687_v0 }
  0xd4   :  { %8916 = vmatpush3.msra.mxu1 %v454_v19 }
  0xd5   :  { %v9816_v22 = vpop.f32.mrf.mxu0  ;;  %8917 = vmatprep.subr.mxu1 %v9687_v0 }
  0xd6   :  { %8894 = vmatmul.mubr.msk.f32.gmra.mxu1 %vm271_vm2, %v9816_v22  ;;  %8911 = vmatmul.mubr.msk.f32.gmra.mxu0 %vm271_vm2, %v9816_v22 }
  0xd7   :  { %v8878_v24 = vpop.f32.mrf.mxu0  ;;  %8918 = vmatpush3.msra.mxu1 %v453_v21  ;;  %8921 = vmatprep.mubr.msk.f32.mxu1 %vm9689_vm0, %v9687_v0 }
  0xd8   :  { %8919 = vmatprep.subr.mxu1 %v9687_v0  ;;  %8936 = vmatprep.mubr.msk.f32.mxu0 %vm9689_vm0, %v9687_v0 }
  0xd9   :  { %8920 = vmatpush3.msra.mxu1 %v452_v23 }
  0xda   :  { %8922 = vmatmul.mubr.msk.f32.vlgmr.msra.gmra.mxu1 %vm271_vm2, %v9795_v15  ;;  %8945 = vmatprep.subr.mxu1 %v9687_v0 }
  0xdb   :  { %8924 = vmatprep.mubr.msk.f32.mxu1 %vm9689_vm0, %v9687_v0 }
  0xde   :  { %8925 = vmatmul.mubr.msk.f32.gmra.mxu1 %vm271_vm2, %v9805_v18 }
  0xdf   :  { %8927 = vmatprep.mubr.msk.f32.mxu1 %vm9689_vm0, %v9687_v0 }
  0xe2   :  { %8928 = vmatmul.mubr.msk.f32.gmra.mxu1 %vm271_vm2, %v9816_v22 }
  0xe3   :  { %8951 = vmatprep.mubr.msk.f32.mxu1 %vm9689_vm0, %v9687_v0 }
 0x18e   :  { %v347_v26 = vpop.f32.mrf.mxu1  ;;  %v438_v27 = vpop.f32.mrf.mxu0 }
 0x18f   :  { %v9847_v28 = vadd.f32 %v7789_v25, %v438_v27  ;;  %v348_v34 = vadd.f32 %v7785_v29, %v347_v26 }
 0x190   :  { %v8889_v30 = vpop.f32.mrf.mxu1  ;;  %v8906_v31 = vpop.f32.mrf.mxu0 }
 0x191   :  { %776 = vrot.lane.b32.xlu1 %v9847_v28, %s9695_s30 }
 0x192   :  { %v352_v32 = vpop.f32.mrf.mxu1  ;;  %v443_v33 = vpop.f32.mrf.mxu0 }
 0x193   :  { %v353_v39 = vadd.f32 %v7785_v29, %v352_v32  ;;  %v444_v44 = vadd.f32 %v7789_v25, %v443_v33 }
 0x194   :  { %v8892_v35 = vpop.f32.mrf.mxu1  ;;  %v8909_v36 = vpop.f32.mrf.mxu0 }
 0x195   :  { %770 = vrot.lane.b32.xlu1 %v348_v34, %s9695_s30 }
 0x196   :  { %v357_v37 = vpop.f32.mrf.mxu1  ;;  %v448_v38 = vpop.f32.mrf.mxu0 }
 0x197   :  { %v449_v40 = vadd.f32 %v7789_v25, %v448_v38  ;;  %v358_v45 = vadd.f32 %v7785_v29, %v357_v37  ;;  %v9960_v25 = vld [vmem:[%s9949_s10 + $0x10] sm:$0xff] }
 0x198   :  { %v8895_v41 = vpop.f32.mrf.mxu1  ;;  %v8912_v42 = vpop.f32.mrf.mxu0 }
 0x199   :  { %772 = vrot.lane.b32.xlu1 %v353_v39, %s9695_s30  ;;  %780 = vrot.lane.b32.xlu0 %v449_v40, %s9695_s30 }
 0x19a   :  { %8931 = vmatpush3.xpose.msk.msra.mxu0 %vm543_vm3, %v449_v40  ;;  %v529_v43 = vpop.f32.mrf.mxu1 }
 0x19b   :  { %8932 = vmatprep.subr.mxu0 %v9687_v0  ;;  %v9879_v54 = vadd.f32 %v7793_v49, %v529_v43 }
 0x19c   :  { %v8923_v46 = vpop.f32.mrf.mxu1 }
 0x19d   :  { %774 = vrot.lane.b32.xlu1 %v358_v45, %s9695_s30  ;;  %778 = vrot.lane.b32.xlu0 %v444_v44, %s9695_s30 }
 0x19e   :  { %8933 = vmatpush3.xpose.msk.msra.mxu0 %vm543_vm3, %v444_v44  ;;  %v534_v47 = vpop.f32.mrf.mxu1 }
 0x19f   :  { %8934 = vmatprep.subr.mxu0 %v9687_v0  ;;  %v9872_v53 = vadd.f32 %v7793_v49, %v534_v47 }
 0x1a0   :  { %v8926_v48 = vpop.f32.mrf.mxu1 }
 0x1a1   :  { %1014 = vrot.lane.b32.xlu1 %v348_v34, %s9697_s5  ;;  %1024 = vrot.lane.b32.xlu0 %v449_v40, %s9697_s5 }
 0x1a2   :  { %8935 = vmatpush3.xpose.msk.msra.mxu0 %vm543_vm3, %v9847_v28  ;;  %v539_v50 = vpop.f32.mrf.mxu1 }
 0x1a3   :  { %v9867_v51 = vadd.f32 %v7793_v49, %v539_v50  ;;  %8960 = vmatprep.subr.mxu0 %v9687_v0 }
 0x1a4   :  { %v8929_v52 = vpop.f32.mrf.mxu1 }
 0x1a5   :  { %8937 = vmatmul.mubr.msk.f32.vlgmr.msra.gmra.mxu0 %vm543_vm3, %v348_v34  ;;  %8946 = vmatpush3.msra.mxu1 %v9867_v51 }
 0x1a6   :  { %1016 = vrot.lane.b32.xlu1 %v353_v39, %s9697_s5  ;;  %1022 = vrot.lane.b32.xlu0 %v444_v44, %s9697_s5 }
 0x1a7   :  { %8947 = vmatprep.subr.mxu1 %v9687_v0  ;;  %8939 = vmatprep.mubr.msk.f32.mxu0 %vm9689_vm0, %v9687_v0 }
 0x1a8   :  { %8948 = vmatpush3.msra.mxu1 %v9872_v53 }
 0x1a9   :  { %8940 = vmatmul.mubr.msk.f32.gmra.mxu0 %vm543_vm3, %v353_v39  ;;  %8949 = vmatprep.subr.mxu1 %v9687_v0 }
 0x1aa   :  { %8950 = vmatpush3.msra.mxu1 %v9879_v54  ;;  %1018 = vrot.lane.b32.xlu1 %v358_v45, %s9697_s5 }
 0x1ab   :  { %1020 = vrot.lane.b32.xlu0 %v9847_v28, %s9697_s5  ;;  %8942 = vmatprep.mubr.msk.f32.mxu0 %vm9689_vm0, %v9687_v0 }
 0x1ac   :  { %8975 = vmatprep.subr.mxu1 %v9687_v0 }
 0x1ad   :  { %8943 = vmatmul.mubr.msk.f32.gmra.mxu0 %vm543_vm3, %v358_v45 }
 0x1ae   :  { %1255 = vrot.lane.b32.xlu1 %v348_v34, %s9698_s6  ;;  %8966 = vmatprep.mubr.msk.f32.mxu0 %vm9689_vm0, %v9687_v0 }
 0x1af   :  { %1265 = vrot.lane.b32.xlu0 %v449_v40, %s9698_s6 }
 0x1b2   :  { %1259 = vrot.lane.b32.xlu1 %v358_v45, %s9698_s6 }
 0x1b3   :  { %1263 = vrot.lane.b32.xlu0 %v444_v44, %s9698_s6 }
 0x1b7   :  { %1261 = vrot.lane.b32.xlu0 %v9847_v28, %s9698_s6 }
 0x1bb   :  { %1257 = vrot.lane.b32.xlu0 %v353_v39, %s9698_s6 }
 0x203   :  { %v777_v55 = vpop.permute.xlu1 %776 }
 0x207   :  { %v771_v56 = vpop.permute.xlu1 %770 }
 0x20b   :  { %v781_v57 = vpop.permute.xlu0 %780  ;;  %v773_v59 = vpop.permute.xlu1 %772 }
 0x20c   :  { %8961 = vmatpush3.xpose.msk.msra.mxu0 %vm543_vm3, %v781_v57 }
 0x20d   :  { %8962 = vmatprep.subr.mxu0 %v9687_v0 }
 0x20f   :  { %v779_v58 = vpop.permute.xlu0 %778  ;;  %v775_v61 = vpop.permute.xlu1 %774 }
 0x210   :  { %8963 = vmatpush3.xpose.msk.msra.mxu0 %vm543_vm3, %v779_v58 }
 0x211   :  { %8964 = vmatprep.subr.mxu0 %v9687_v0 }
 0x213   :  { %v1025_v60 = vpop.permute.xlu0 %1024  ;;  %v1015_v63 = vpop.permute.xlu1 %1014 }
 0x214   :  { %8965 = vmatpush3.xpose.msk.msra.mxu0 %vm543_vm3, %v777_v55 }
 0x215   :  { %8990 = vmatprep.subr.mxu0 %v9687_v0 }
 0x217   :  { %8967 = vmatmul.mubr.msk.f32.vlgmr.msra.gmra.mxu0 %vm543_vm3, %v771_v56 }
 0x218   :  { %v1023_v62 = vpop.permute.xlu0 %1022  ;;  %8991 = vmatpush3.xpose.msk.msra.mxu0 %vm543_vm3, %v1025_v60  ;;  %8969 = vmatprep.mubr.msk.f32.mxu0 %vm9689_vm0, %v9687_v0  ;;  %v1017_v3 = vpop.permute.xlu1 %1016 }
 0x219   :  { %8992 = vmatprep.subr.mxu0 %v9687_v0 }
 0x21b   :  { %8970 = vmatmul.mubr.msk.f32.gmra.mxu0 %vm543_vm3, %v773_v59 }
 0x21c   :  { %8993 = vmatpush3.xpose.msk.msra.mxu0 %vm543_vm3, %v1023_v62  ;;  %8972 = vmatprep.mubr.msk.f32.mxu0 %vm9689_vm0, %v9687_v0  ;;  %v1019_v5 = vpop.permute.xlu1 %1018 }
 0x21d   :  { %v1021_v1 = vpop.permute.xlu0 %1020  ;;  %8994 = vmatprep.subr.mxu0 %v9687_v0 }
 0x21f   :  { %8973 = vmatmul.mubr.msk.f32.gmra.mxu0 %vm543_vm3, %v775_v61 }
 0x220   :  { %8995 = vmatpush3.xpose.msk.msra.mxu0 %vm543_vm3, %v1021_v1  ;;  %8996 = vmatprep.mubr.msk.f32.mxu0 %vm9689_vm0, %v9687_v0  ;;  %v1256_v7 = vpop.permute.xlu1 %1255 }
 0x221   :  { %v1266_v2 = vpop.permute.xlu0 %1265  ;;  %9020 = vmatprep.subr.mxu0 %v9687_v0 }
 0x223   :  { %8997 = vmatmul.mubr.msk.f32.vlgmr.msra.gmra.mxu0 %vm543_vm3, %v1015_v63 }
 0x224   :  { %9021 = vmatpush3.xpose.msk.msra.mxu0 %vm543_vm3, %v1266_v2  ;;  %8999 = vmatprep.mubr.msk.f32.mxu0 %vm9689_vm0, %v9687_v0  ;;  %v1260_v9 = vpop.permute.xlu1 %1259 }
 0x225   :  { %v1264_v4 = vpop.permute.xlu0 %1263  ;;  %9022 = vmatprep.subr.mxu0 %v9687_v0 }
 0x227   :  { %9000 = vmatmul.mubr.msk.f32.gmra.mxu0 %vm543_vm3, %v1017_v3 }
 0x228   :  { %9023 = vmatpush3.xpose.msk.msra.mxu0 %vm543_vm3, %v1264_v4  ;;  %9002 = vmatprep.mubr.msk.f32.mxu0 %vm9689_vm0, %v9687_v0 }
 0x229   :  { %9024 = vmatprep.subr.mxu0 %v9687_v0  ;;  %v1262_v6 = vpop.permute.xlu0 %1261 }
 0x22b   :  { %9003 = vmatmul.mubr.msk.f32.gmra.mxu0 %vm543_vm3, %v1019_v5 }
 0x22c   :  { %9025 = vmatpush3.xpose.msk.msra.mxu0 %vm543_vm3, %v1262_v6  ;;  %9026 = vmatprep.mubr.msk.f32.mxu0 %vm9689_vm0, %v9687_v0 }
 0x22d   :  { %9050 = vmatprep.subr.mxu0 %v9687_v0  ;;  %v1258_v8 = vpop.permute.xlu0 %1257 }
 0x22f   :  { %9027 = vmatmul.mubr.msk.f32.vlgmr.msra.gmra.mxu0 %vm543_vm3, %v1256_v7 }
 0x230   :  { %9029 = vmatprep.mubr.msk.f32.mxu0 %vm9689_vm0, %v9687_v0 }
 0x233   :  { %9030 = vmatmul.mubr.msk.f32.gmra.mxu0 %vm543_vm3, %v1258_v8 }
 0x234   :  { %9032 = vmatprep.mubr.msk.f32.mxu0 %vm9689_vm0, %v9687_v0 }
 0x237   :  { %9033 = vmatmul.mubr.msk.f32.gmra.mxu0 %vm543_vm3, %v1260_v9 }
 0x238   :  { %9058 = vmatprep.mubr.msk.f32.mxu0 %vm9689_vm0, %v9687_v0 }
 0x265   :  { %v628_v10 = vpop.f32.mrf.mxu0 }
 0x266   :  { %v642_v12 = vmul.f32 0.35355338, %v628_v10 }
 0x267   :  { %v8938_v13 = vpop.f32.mrf.mxu0 }
 0x268   :  { %v9952_v14 = vadd.f32 %v642_v12, %v161_v11 }
 0x269   :  { %v633_v16 = vpop.f32.mrf.mxu0 }
 0x26a   :  { %v643_v19 = vmul.f32 0.35355338, %v633_v16  ;;  %v648_v20 = vsel %vm170_vm1, %v9952_v14, -inf }
 0x26b   :  { %649 = vmax.xlane.f32.xlu0 %v648_v20  ;;  %v8941_v21 = vpop.f32.mrf.mxu0 }
 0x26c   :  { %v9957_v23 = vadd.f32 %v643_v19, %v162_v17 }
 0x26d   :  { %v638_v24 = vpop.f32.mrf.mxu0 }
 0x26e   :  { %v644_v26 = vmul.f32 0.35355338, %v638_v24  ;;  %v651_v27 = vsel %vm170_vm1, %v9957_v23, -inf }
 0x26f   :  { %652 = vmax.xlane.f32.xlu1 %v651_v27  ;;  %v8944_v28 = vpop.f32.mrf.mxu0 }
 0x270   :  { %v647_v29 = vadd.f32 %v644_v26, %v9960_v25 }
 0x272   :  { %v654_v30 = vsel %vm170_vm1, %v647_v29, -inf }
 0x273   :  { %655 = vmax.xlane.f32.xlu0 %v654_v30 }
 0x2d7   :  { %v860_v31 = vpop.f32.mrf.mxu0 }
 0x2d8   :  { %v874_v32 = vmul.f32 0.35355338, %v860_v31 }
 0x2d9   :  { %v8968_v33 = vpop.f32.mrf.mxu0 }
 0x2da   :  { %v9966_v34 = vadd.f32 %v874_v32, %v161_v11 }
 0x2db   :  { %v865_v35 = vpop.f32.mrf.mxu0 }
 0x2dc   :  { %v875_v36 = vmul.f32 0.35355338, %v865_v35  ;;  %v880_v37 = vsel %vm170_vm1, %v9966_v34, -inf }
 0x2dd   :  { %881 = vmax.xlane.f32.xlu0 %v880_v37  ;;  %v8971_v38 = vpop.f32.mrf.mxu0 }
 0x2de   :  { %v9970_v39 = vadd.f32 %v875_v36, %v162_v17 }
 0x2df   :  { %v870_v40 = vpop.f32.mrf.mxu0 }
 0x2e0   :  { %v876_v41 = vmul.f32 0.35355338, %v870_v40  ;;  %v883_v42 = vsel %vm170_vm1, %v9970_v39, -inf }
 0x2e1   :  { %884 = vmax.xlane.f32.xlu1 %v883_v42  ;;  %v8974_v43 = vpop.f32.mrf.mxu0 }
 0x2e2   :  { %v9975_v44 = vadd.f32 %v876_v41, %v9960_v25 }
 0x2e3   :  { %v1104_v45 = vpop.f32.mrf.mxu0 }
 0x2e4   :  { %v1118_v46 = vmul.f32 0.35355338, %v1104_v45  ;;  %v886_v47 = vsel %vm170_vm1, %v9975_v44, -inf }
 0x2e5   :  { %887 = vmax.xlane.f32.xlu0 %v886_v47  ;;  %v8998_v48 = vpop.f32.mrf.mxu0 }
 0x2e6   :  { %v9979_v49 = vadd.f32 %v1118_v46, %v161_v11 }
 0x2e7   :  { %v1109_v50 = vpop.f32.mrf.mxu0 }
 0x2e8   :  { %v1119_v52 = vmul.f32 0.35355338, %v1109_v50  ;;  %v1124_v55 = vsel %vm170_vm1, %v9979_v49, -inf }
 0x2e9   :  { %1125 = vmax.xlane.f32.xlu1 %v1124_v55  ;;  %v9001_v56 = vpop.f32.mrf.mxu0 }
 0x2ea   :  { %v9983_v57 = vadd.f32 %v1119_v52, %v162_v17 }
 0x2eb   :  { %v1114_v58 = vpop.f32.mrf.mxu0 }
 0x2ec   :  { %v1120_v59 = vmul.f32 0.35355338, %v1114_v58  ;;  %v1127_v60 = vsel %vm170_vm1, %v9983_v57, -inf }
 0x2ed   :  { %1128 = vmax.xlane.f32.xlu0 %v1127_v60  ;;  %v9004_v61 = vpop.f32.mrf.mxu0 }
 0x2ee   :  { %v9988_v62 = vadd.f32 %v1120_v59, %v9960_v25 }
 0x2ef   :  { %v1345_v63 = vpop.f32.mrf.mxu0 }
 0x2f0   :  { %v1359_v1 = vmul.f32 0.35355338, %v1345_v63  ;;  %v1130_v2 = vsel %vm170_vm1, %v9988_v62, -inf }
 0x2f1   :  { %1131 = vmax.xlane.f32.xlu1 %v1130_v2  ;;  %v9028_v3 = vpop.f32.mrf.mxu0 }
 0x2f2   :  { %v9992_v4 = vadd.f32 %v1359_v1, %v161_v11 }
 0x2f3   :  { %v1350_v5 = vpop.f32.mrf.mxu0 }
 0x2f4   :  { %v650_v6 = vpop.xlane.xlu0 %649  ;;  %v1360_v7 = vmul.f32 0.35355338, %v1350_v5  ;;  %v1365_v8 = vsel %vm170_vm1, %v9992_v4, -inf }
 0x2f5   :  { %v657_v9 = vsub.f32 %v9952_v14, %v650_v6  ;;  %1366 = vmax.xlane.f32.xlu0 %v1365_v8  ;;  %v9031_v10 = vpop.f32.mrf.mxu0 }
 0x2f6   :  { %v9997_v12 = vadd.f32 %v1360_v7, %v162_v17 }
 0x2f7   :  { %v660_v13 = vmul.f32 1.442695, %v657_v9  ;;  %v1355_v16 = vpop.f32.mrf.mxu0 }
 0x2f8   :  { %v1368_v19 = vsel %vm170_vm1, %v9997_v12, -inf  ;;  %v653_v28 = vpop.xlane.xlu1 %652 }
 0x2f9   :  { %9564 = vpow2.f32 %v660_v13  ;;  %1369 = vmax.xlane.f32.xlu1 %v1368_v19  ;;  %v9034_v11 = vpop.f32.mrf.mxu0  ;;  %v658_v30 = vsub.f32 %v9957_v23, %v653_v28 }
 0x2fb   :  { %v662_v31 = vmul.f32 1.442695, %v658_v30 }
 0x2fc   :  { %v656_v20 = vpop.xlane.xlu0 %655 }
 0x2fd   :  { %v659_v21 = vsub.f32 %v647_v29, %v656_v20  ;;  %v1361_v29 = vmul.f32 0.35355338, %v1355_v16 }
 0x2ff   :  { %v664_v24 = vmul.f32 1.442695, %v659_v21  ;;  %v10010_v32 = vadd.f32 %v1361_v29, %v9960_v25 }
 0x301   :  { %9566 = vpow2.f32 %v664_v24  ;;  %v1371_v33 = vsel %vm170_vm1, %v10010_v32, -inf }
 0x302   :  { %9568 = vpow2.f32 %v662_v31 }
 0x306   :  { %v9565_v26 = vpop.eup %9564 }
 0x307   :  { %v666_v27 = vsel %vm170_vm1, %v9565_v26, 0.0 }
 0x308   :  { %667 = vadd.xlane.f32.xlu1 %v666_v27 }
 0x30b   :  { %920 = vrot.lane.b32.xlu0 %v9867_v51, %s9695_s30 }
 0x30e   :  { %v10004_v14 = vpop.eup %9566 }
 0x30f   :  { %v672_v17 = vsel %vm170_vm1, %v10004_v14, 0.0  ;;  %v10014_v35 = vpop.eup %9568 }
 0x310   :  { %673 = vadd.xlane.f32.xlu1 %v672_v17  ;;  %v669_v36 = vsel %vm170_vm1, %v10014_v35, 0.0 }
 0x32a   :  { %1372 = vmax.xlane.f32.xlu0 %v1371_v33 }
 0x32e   :  { %670 = vadd.xlane.f32.xlu0 %v669_v36 }
 0x366   :  { %v882_v37 = vpop.xlane.xlu0 %881 }
 0x367   :  { %v889_v38 = vsub.f32 %v9966_v34, %v882_v37 }
 0x369   :  { %v892_v23 = vmul.f32 1.442695, %v889_v38 }
 0x36a   :  { %v885_v40 = vpop.xlane.xlu1 %884 }
 0x36b   :  { %9570 = vpow2.f32 %v892_v23  ;;  %v890_v41 = vsub.f32 %v9970_v39, %v885_v40 }
 0x36d   :  { %v894_v25 = vmul.f32 1.442695, %v890_v41 }
 0x36e   :  { %v888_v42 = vpop.xlane.xlu0 %887 }
 0x36f   :  { %9572 = vpow2.f32 %v894_v25  ;;  %v891_v43 = vsub.f32 %v9975_v44, %v888_v42 }
 0x371   :  { %v896_v45 = vmul.f32 1.442695, %v891_v43 }
 0x372   :  { %v1126_v46 = vpop.xlane.xlu1 %1125 }
 0x373   :  { %9574 = vpow2.f32 %v896_v45  ;;  %v1133_v47 = vsub.f32 %v9979_v49, %v1126_v46 }
 0x375   :  { %v1136_v48 = vmul.f32 1.442695, %v1133_v47 }
 0x376   :  { %v1129_v61 = vpop.xlane.xlu0 %1128 }
 0x377   :  { %9576 = vpow2.f32 %v1136_v48  ;;  %v1134_v1 = vsub.f32 %v9983_v57, %v1129_v61 }
 0x378   :  { %v10022_v50 = vpop.eup %9570 }
 0x379   :  { %v898_v34 = vsel %vm170_vm1, %v10022_v50, 0.0  ;;  %v1138_v5 = vmul.f32 1.442695, %v1134_v1 }
 0x37a   :  { %899 = vadd.xlane.f32.xlu0 %v898_v34  ;;  %v1132_v58 = vpop.xlane.xlu1 %1131 }
 0x37b   :  { %v1135_v6 = vsub.f32 %v9988_v62, %v1132_v58 }
 0x37c   :  { %v10026_v52 = vpop.eup %9572 }
 0x37d   :  { %v901_v39 = vsel %vm170_vm1, %v10026_v52, 0.0  ;;  %v1140_v8 = vmul.f32 1.442695, %v1135_v6 }
 0x37e   :  { %902 = vadd.xlane.f32.xlu1 %v901_v39  ;;  %v1367_v63 = vpop.xlane.xlu0 %1366 }
 0x37f   :  { %v1374_v9 = vsub.f32 %v9992_v4, %v1367_v63 }
 0x380   :  { %v10030_v44 = vpop.eup %9574 }
 0x381   :  { %v904_v55 = vsel %vm170_vm1, %v10030_v44, 0.0  ;;  %v1377_v57 = vmul.f32 1.442695, %v1374_v9 }
 0x382   :  { %905 = vadd.xlane.f32.xlu0 %v904_v55  ;;  %v1370_v59 = vpop.xlane.xlu1 %1369  ;;  %v921_v7 = vpop.permute.xlu0 %920 }
 0x383   :  { %v1375_v10 = vsub.f32 %v9997_v12, %v1370_v59 }
 0x384   :  { %v10034_v49 = vpop.eup %9576 }
 0x385   :  { %v1142_v56 = vsel %vm170_vm1, %v10034_v49, 0.0  ;;  %v1379_v13 = vmul.f32 1.442695, %v1375_v10 }
 0x386   :  { %1143 = vadd.xlane.f32.xlu1 %v1142_v56 }
 0x391   :  { %v668_v60 = vpop.xlane.xlu1 %667 }
 0x392   :  { %9578 = vrcp.f32 %v668_v60 }
 0x393   :  { %9580 = vpow2.f32 %v1138_v5 }
 0x394   :  { %9582 = vpow2.f32 %v1140_v8 }
 0x395   :  { %9584 = vpow2.f32 %v1377_v57 }
 0x396   :  { %9586 = vpow2.f32 %v1379_v13 }
 0x397   :  { %918 = vrot.lane.b32.xlu1 %v9872_v53, %s9695_s30 }
 0x398   :  { %916 = vrot.lane.b32.xlu0 %v9879_v54, %s9695_s30 }
 0x399   :  { %v674_v21 = vpop.xlane.xlu1 %673 }
 0x39f   :  { %v9579_v2 = vpop.eup %9578 }
 0x3a0   :  { %v676_v3 = vmul.f32 %v9579_v2, %v9565_v26  ;;  %v10050_v62 = vpop.eup %9580 }
 0x3a1   :  { %v1145_v19 = vsel %vm170_vm1, %v10050_v62, 0.0  ;;  %v10054_v11 = vpop.eup %9582 }
 0x3a2   :  { %8952 = vmatmul.mubr.msk.f32.vlgmr.msra.gmra.mxu1 %vm170_vm1, %v676_v3  ;;  %v1148_v4 = vsel %vm170_vm1, %v10054_v11, 0.0  ;;  %v10058_v24 = vpop.eup %9584 }
 0x3a3   :  { %8976 = vmatpush3.msra.mxu1 %v921_v7  ;;  %8954 = vmatprep.mubr.msk.f32.mxu1 %vm9689_vm0, %v9687_v0  ;;  %v1383_v12 = vsel %vm170_vm1, %v10058_v24, 0.0  ;;  %v10062_v26 = vpop.eup %9586 }
 0x3a4   :  { %8977 = vmatprep.subr.mxu1 %v9687_v0  ;;  %v1386_v27 = vsel %vm170_vm1, %v10062_v26, 0.0 }
 0x3b3   :  { %v1373_v16 = vpop.xlane.xlu0 %1372 }
 0x3b7   :  { %1146 = vadd.xlane.f32.xlu0 %v1145_v19  ;;  %v671_v20 = vpop.xlane.xlu0 %670 }
 0x3b8   :  { %9588 = vrcp.f32 %v671_v20 }
 0x3b9   :  { %9590 = vrcp.f32 %v674_v21 }
 0x3bb   :  { %1149 = vadd.xlane.f32.xlu1 %v1148_v4  ;;  %v1545_v4 = vld [vmem:[%s7753_s19 + $0x18] sm:$0xff] }
 0x3bc   :  { %9051 = vmatpush3.msra.mxu0 %v1545_v4 }
 0x3bd   :  { %9052 = vmatprep.subr.mxu0 %v9687_v0 }
 0x3bf   :  { %1384 = vadd.xlane.f32.xlu1 %v1383_v12  ;;  %v1543_v12 = vld [vmem:[%s7753_s19 + $0x8] sm:$0xff] }
 0x3c3   :  { %1387 = vadd.xlane.f32.xlu1 %v1386_v27  ;;  %v1542_v27 = vld [vmem:[%s7753_s19] sm:$0xff] }
 0x3c5   :  { %v9589_v17 = vpop.eup %9588 }
 0x3c6   :  { %v678_v28 = vmul.f32 %v9589_v17, %v10014_v35  ;;  %v9591_v30 = vpop.eup %9590 }
 0x3c7   :  { %v680_v31 = vmul.f32 %v9591_v30, %v10004_v14  ;;  %v1376_v14 = vsub.f32 %v10010_v32, %v1373_v16 }
 0x3c8   :  { %8955 = vmatmul.mubr.msk.f32.gmra.mxu1 %vm170_vm1, %v678_v28 }
 0x3c9   :  { %8957 = vmatprep.mubr.msk.f32.mxu1 %vm9689_vm0, %v9687_v0  ;;  %v1381_v29 = vmul.f32 1.442695, %v1376_v14 }
 0x3cb   :  { %9592 = vpow2.f32 %v1381_v29 }
 0x3cc   :  { %8958 = vmatmul.mubr.msk.f32.gmra.mxu1 %vm170_vm1, %v680_v31 }
 0x3cd   :  { %1161 = vrot.lane.b32.xlu0 %v9867_v51, %s9697_s5  ;;  %8981 = vmatprep.mubr.msk.f32.mxu1 %vm9689_vm0, %v9687_v0 }
 0x3d1   :  { %1159 = vrot.lane.b32.xlu0 %v9872_v53, %s9697_s5 }
 0x3d5   :  { %1157 = vrot.lane.b32.xlu0 %v9879_v54, %s9697_s5 }
 0x3d8   :  { %v10087_v33 = vpop.eup %9592 }
 0x3d9   :  { %1402 = vrot.lane.b32.xlu0 %v9867_v51, %s9698_s6  ;;  %v1389_v35 = vsel %vm170_vm1, %v10087_v33, 0.0 }
 0x3dd   :  { %1400 = vrot.lane.b32.xlu0 %v9872_v53, %s9698_s6 }
 0x3e1   :  { %1398 = vrot.lane.b32.xlu0 %v9879_v54, %s9698_s6 }
 0x400   :  { %1390 = vadd.xlane.f32.xlu0 %v1389_v35 }
 0x403   :  { %v900_v36 = vpop.xlane.xlu0 %899 }
 0x404   :  { %9594 = vrcp.f32 %v900_v36 }
 0x407   :  { %v903_v37 = vpop.xlane.xlu1 %902 }
 0x408   :  { %9596 = vrcp.f32 %v903_v37 }
 0x40b   :  { %v906_v51 = vpop.xlane.xlu0 %905 }
 0x40c   :  { %9598 = vrcp.f32 %v906_v51 }
 0x40f   :  { %v1144_v53 = vpop.xlane.xlu1 %1143  ;;  %v917_v32 = vpop.permute.xlu0 %916 }
 0x410   :  { %9600 = vrcp.f32 %v1144_v53 }
 0x411   :  { %v9595_v38 = vpop.eup %9594 }
 0x412   :  { %v908_v54 = vmul.f32 %v9595_v38, %v10022_v50 }
 0x413   :  { %v919_v23 = vpop.permute.xlu1 %918 }
 0x414   :  { %8978 = vmatpush3.msra.mxu1 %v919_v23 }
 0x415   :  { %8979 = vmatprep.subr.mxu1 %v9687_v0  ;;  %v9597_v40 = vpop.eup %9596 }
 0x416   :  { %8980 = vmatpush3.msra.mxu1 %v917_v32  ;;  %v910_v41 = vmul.f32 %v9597_v40, %v10026_v52 }
 0x417   :  { %8982 = vmatmul.mubr.msk.f32.vlgmr.msra.gmra.mxu1 %vm170_vm1, %v908_v54  ;;  %9005 = vmatprep.subr.mxu1 %v9687_v0 }
 0x418   :  { %8984 = vmatprep.mubr.msk.f32.mxu1 %vm9689_vm0, %v9687_v0 }
 0x419   :  { %v9599_v25 = vpop.eup %9598 }
 0x41a   :  { %v912_v42 = vmul.f32 %v9599_v25, %v10030_v44 }
 0x41b   :  { %8985 = vmatmul.mubr.msk.f32.gmra.mxu1 %vm170_vm1, %v910_v41 }
 0x41c   :  { %8987 = vmatprep.mubr.msk.f32.mxu1 %vm9689_vm0, %v9687_v0 }
 0x41d   :  { %v9601_v50 = vpop.eup %9600 }
 0x41e   :  { %v1152_v34 = vmul.f32 %v9601_v50, %v10034_v49 }
 0x41f   :  { %8988 = vmatmul.mubr.msk.f32.gmra.mxu1 %vm170_vm1, %v912_v42 }
 0x420   :  { %9011 = vmatprep.mubr.msk.f32.mxu1 %vm9689_vm0, %v9687_v0 }
 0x440   :  { %v1147_v43 = vpop.xlane.xlu0 %1146 }
 0x441   :  { %9602 = vrcp.f32 %v1147_v43 }
 0x444   :  { %v1150_v45 = vpop.xlane.xlu1 %1149  ;;  %v1162_v46 = vpop.permute.xlu0 %1161 }
 0x445   :  { %9604 = vrcp.f32 %v1150_v45  ;;  %9006 = vmatpush3.msra.mxu1 %v1162_v46 }
 0x446   :  { %9007 = vmatprep.subr.mxu1 %v9687_v0 }
 0x448   :  { %v1385_v47 = vpop.xlane.xlu1 %1384  ;;  %v1160_v48 = vpop.permute.xlu0 %1159 }
 0x449   :  { %9606 = vrcp.f32 %v1385_v47  ;;  %9008 = vmatpush3.msra.mxu1 %v1160_v48 }
 0x44a   :  { %9009 = vmatprep.subr.mxu1 %v9687_v0 }
 0x44c   :  { %v1388_v52 = vpop.xlane.xlu1 %1387  ;;  %v1158_v39 = vpop.permute.xlu0 %1157 }
 0x44d   :  { %9608 = vrcp.f32 %v1388_v52  ;;  %9010 = vmatpush3.msra.mxu1 %v1158_v39 }
 0x44e   :  { %v9603_v44 = vpop.eup %9602  ;;  %9012 = vmatmul.mubr.msk.f32.vlgmr.msra.gmra.mxu1 %vm170_vm1, %v1152_v34  ;;  %9035 = vmatprep.subr.mxu1 %v9687_v0 }
 0x44f   :  { %9014 = vmatprep.mubr.msk.f32.mxu1 %vm9689_vm0, %v9687_v0  ;;  %v1154_v55 = vmul.f32 %v9603_v44, %v10050_v62  ;;  %v7833_v44 = vld [vmem:[%s7754_s24] ss:$0 sm:$0xff]  ;;  %s9723_s24 = smov 31  }
 0x450   :  { %v1403_v56 = vpop.permute.xlu0 %1402  ;;  %s11180_s27 = sld [smem:[%s11432_s0 + %s9723_s24]]  }
 0x451   :  { %9036 = vmatpush3.msra.mxu1 %v1403_v56 }
 0x452   :  { %v9605_v58 = vpop.eup %9604  ;;  %9015 = vmatmul.mubr.msk.f32.gmra.mxu1 %vm170_vm1, %v1154_v55  ;;  %9037 = vmatprep.subr.mxu1 %v9687_v0 }
 0x453   :  { %9017 = vmatprep.mubr.msk.f32.mxu1 %vm9689_vm0, %v9687_v0  ;;  %v1156_v49 = vmul.f32 %v9605_v58, %v10054_v11 }
 0x454   :  { %v1401_v59 = vpop.permute.xlu0 %1400 }
 0x455   :  { %9038 = vmatpush3.msra.mxu1 %v1401_v59 }
 0x456   :  { %v9607_v60 = vpop.eup %9606  ;;  %9018 = vmatmul.mubr.msk.f32.gmra.mxu1 %vm170_vm1, %v1156_v49  ;;  %9039 = vmatprep.subr.mxu1 %v9687_v0 }
 0x457   :  { %v1393_v61 = vmul.f32 %v9607_v60, %v10058_v24  ;;  %9041 = vmatprep.mubr.msk.f32.mxu1 %vm9689_vm0, %v9687_v0  ;;  %v1544_v24 = vld [vmem:[%s7753_s19 + $0x10] sm:$0xff]  ;;  %s9722_s19 = smov 29  }
 0x458   :  { %v1399_v63 = vpop.permute.xlu0 %1398  ;;  %9053 = vmatpush3.msra.mxu0 %v1544_v24  ;;  %v1732_v24 = vld [vmem:[%s10197_s28 + $0xc8] sm:$0xff]  ;;  %s7772_s23 = sld [smem:[%s11432_s0 + %s9722_s19]]  }
 0x459   :  { %9040 = vmatpush3.msra.mxu1 %v1399_v63  ;;  %9054 = vmatprep.subr.mxu0 %v9687_v0 }
 0x45a   :  { %v9609_v1 = vpop.eup %9608  ;;  %9042 = vmatmul.mubr.msk.f32.vlgmr.msra.gmra.mxu1 %vm170_vm1, %v1393_v61  ;;  %9055 = vmatpush3.msra.mxu0 %v1543_v12 }
 0x45b   :  { %9044 = vmatprep.mubr.msk.f32.mxu1 %vm9689_vm0, %v9687_v0  ;;  %v1395_v2 = vmul.f32 %v9609_v1, %v10062_v26  ;;  %9056 = vmatprep.subr.mxu0 %v9687_v0 }
 0x45c   :  { %9057 = vmatpush3.msra.mxu0 %v1542_v27 }
 0x45e   :  { %9045 = vmatmul.mubr.msk.f32.gmra.mxu1 %vm170_vm1, %v1395_v2 }
 0x45f   :  { %9047 = vmatprep.mubr.msk.f32.mxu1 %vm9689_vm0, %v9687_v0 }
 0x462   :  { %v756_v3 = vpop.f32.mrf.mxu1 }
 0x464   :  { %v8953_v5 = vpop.f32.mrf.mxu1 }
 0x488   :  { %v10130_v6 = vpop.f32.mrf.mxu1 }
 0x489   :  { %v1391_v7 = vpop.xlane.xlu0 %1390 }
 0x48a   :  { %9610 = vrcp.f32 %v1391_v7  ;;  %v8956_v8 = vpop.f32.mrf.mxu1 }
 0x48c   :  { %v10132_v9 = vpop.f32.mrf.mxu1 }
 0x48e   :  { %v8959_v57 = vpop.f32.mrf.mxu1 }
 0x497   :  { %v9611_v10 = vpop.eup %9610 }
 0x498   :  { %v1397_v13 = vmul.f32 %v9611_v10, %v10087_v33 }
 0x49a   :  { %9048 = vmatmul.mubr.msk.f32.gmra.mxu1 %vm170_vm1, %v1397_v13 }
 0x4d7   :  { %v1000_v62 = vpop.f32.mrf.mxu1 }
 0x4d8   :  { %1499 = vrot.lane.b32.xlu1 %v1000_v62, %s9692_s18 }
 0x4d9   :  { %v8983_v16 = vpop.f32.mrf.mxu1 }
 0x4db   :  { %v1005_v19 = vpop.f32.mrf.mxu1 }
 0x4dc   :  { %1501 = vrot.lane.b32.xlu0 %v1005_v19, %s9692_s18 }
 0x4dd   :  { %v8986_v11 = vpop.f32.mrf.mxu1 }
 0x4de   :  { %v1723_v11 = vld [vmem:[%s10197_s28 + $0x80] sm:$0xff] }
 0x4df   :  { %v1010_v20 = vpop.f32.mrf.mxu1 }
 0x4e1   :  { %v8989_v21 = vpop.f32.mrf.mxu1 }
 0x4e2   :  { %v1724_v21 = vld [vmem:[%s10197_s28 + $0x88] sm:$0xff] }
 0x4e3   :  { %v7858_v27 = vcombine.high %v1724_v21, %v1732_v24 }
 0x4e5   :  { %2052 = vmatprep.subr.bf16.mxu0 %v7858_v27  ;;  %v1719_v27 = vld [vmem:[%s10197_s28 + $0x60] sm:$0xff] }
 0x50e   :  { %v1241_v26 = vpop.f32.mrf.mxu1 }
 0x50f   :  { %1511 = vrot.lane.b32.xlu1 %v1241_v26, %s9700_s11  ;;  %v7857_v26 = vcombine.low %v1724_v21, %v1732_v24 }
 0x510   :  { %v9013_v17 = vpop.f32.mrf.mxu1 }
 0x511   :  { %v1707_v17 = vld [vmem:[%s10197_s28] sm:$0xff] }
 0x512   :  { %v1246_v28 = vpop.f32.mrf.mxu1 }
 0x513   :  { %1513 = vrot.lane.b32.xlu1 %v1246_v28, %s9700_s11  ;;  %v1715_v28 = vld [vmem:[%s10197_s28 + $0x40] sm:$0xff] }
 0x514   :  { %v9016_v30 = vpop.f32.mrf.mxu1 }
 0x515   :  { %v1708_v30 = vld [vmem:[%s10197_s28 + $0x8] sm:$0xff] }
 0x516   :  { %v1251_v31 = vpop.f32.mrf.mxu1 }
 0x518   :  { %v9019_v14 = vpop.f32.mrf.mxu1 }
 0x519   :  { %v1716_v14 = vld [vmem:[%s10197_s28 + $0x48] sm:$0xff] }
 0x51a   :  { %v1482_v29 = vpop.f32.mrf.mxu1 }
 0x51b   :  { %1523 = vrot.lane.b32.xlu1 %v1482_v29, %s9702_s20  ;;  %v7839_v29 = vcombine.low %v1707_v17, %v1715_v28 }
 0x51c   :  { %v9043_v33 = vpop.f32.mrf.mxu1 }
 0x51d   :  { %v7841_v33 = vcombine.low %v1708_v30, %v1716_v14 }
 0x51e   :  { %v1487_v35 = vpop.f32.mrf.mxu1 }
 0x51f   :  { %1525 = vrot.lane.b32.xlu1 %v1487_v35, %s9702_s20  ;;  %v7842_v35 = vcombine.high %v1708_v30, %v1716_v14 }
 0x520   :  { %v9046_v36 = vpop.f32.mrf.mxu1 }
 0x521   :  { %v9705_v36 = vmov 0  }
 0x522   :  { %2021 = vmatprep.mubr.bf16.mxu1 %v9705_v36 }
 0x523   :  { %1503 = vrot.lane.b32.xlu1 %v1010_v20, %s9692_s18  ;;  %v1731_v20 = vld [vmem:[%s10197_s28 + $0xc0] sm:$0xff] }
 0x524   :  { %v7856_v4 = vcombine.high %v1723_v11, %v1731_v20  ;;  %v7855_v12 = vcombine.low %v1723_v11, %v1731_v20 }
 0x526   :  { %2001 = vmatprep.subr.bf16.mxu1 %v7856_v4 }
 0x527   :  { %1515 = vrot.lane.b32.xlu1 %v1251_v31, %s9700_s11  ;;  %2002 = vmatpush1.bf16.msra.mxu1 %v7855_v12  ;;  %v7840_v31 = vcombine.high %v1707_v17, %v1715_v28  ;;  %v1712_v17 = vld [vmem:[%s10197_s28 + $0x28] sm:$0xff] }
 0x528   :  { %v1720_v28 = vld [vmem:[%s10197_s28 + $0x68] sm:$0xff] }
 0x529   :  { %2003 = vmatprep.subr.bf16.mxu1 %v7840_v31 }
 0x52b   :  { %2004 = vmatpush1.bf16.msra.mxu1 %v7839_v29  ;;  %v7850_v29 = vcombine.high %v1712_v17, %v1720_v28 }
 0x54a   :  { %v1500_v53 = vpop.permute.xlu1 %1499 }
 0x54b   :  { %v1532_v54 = vsel %vm543_vm3, %v756_v3, %v1500_v53 }
 0x54e   :  { %v1502_v32 = vpop.permute.xlu0 %1501 }
 0x54f   :  { %v1533_v42 = vsel %vm543_vm3, %v10130_v6, %v1502_v32  ;;  %v1733_v32 = vld [vmem:[%s10197_s28 + $0xd0] sm:$0xff] }
 0x55a   :  { %v1492_v37 = vpop.f32.mrf.mxu1 }
 0x55b   :  { %1527 = vrot.lane.b32.xlu1 %v1492_v37, %s9702_s20 }
 0x55c   :  { %v9049_v51 = vpop.f32.mrf.mxu1 }
 0x581   :  { %v1512_v38 = vpop.permute.xlu1 %1511 }
 0x582   :  { %v1536_v40 = vsel %vm1535_vm4, %v1532_v54, %v1512_v38  ;;  %v1725_v54 = vld [vmem:[%s10197_s28 + $0x90] sm:$0xff] }
 0x585   :  { %v1514_v23 = vpop.permute.xlu1 %1513 }
 0x586   :  { %v1537_v43 = vsel %vm1535_vm4, %v1533_v42, %v1514_v23  ;;  %v1734_v42 = vld [vmem:[%s10197_s28 + $0xd8] sm:$0xff] }
 0x58d   :  { %v1524_v41 = vpop.permute.xlu1 %1523 }
 0x58e   :  { %v1539_v25 = vsel %vm170_vm1, %v1536_v40, %v1524_v41  ;;  %v1726_v40 = vld [vmem:[%s10197_s28 + $0x98] sm:$0xff]  ;;  %v7859_v41 = vcombine.low %v1725_v54, %v1733_v32 }
 0x58f   :  { %9059 = vmatmul.mubr.msk.f32.vlgmr.msra.gmra.mxu0 %vm271_vm2, %v1539_v25  ;;  %v7860_v25 = vcombine.high %v1725_v54, %v1733_v32  ;;  %v1713_v32 = vld [vmem:[%s10197_s28 + $0x30] sm:$0xff] }
 0x590   :  { %9061 = vmatprep.mubr.msk.f32.mxu0 %vm9689_vm0, %v9687_v0  ;;  %2053 = vmatpush1.bf16.msra.mxu0 %v7857_v26  ;;  %v1711_v26 = vld [vmem:[%s10197_s28 + $0x20] sm:$0xff] }
 0x591   :  { %v1526_v45 = vpop.permute.xlu1 %1525  ;;  %2054 = vmatprep.subr.bf16.mxu0 %v7842_v35  ;;  %2103 = vmatprep.subr.bf16.mxu1 %v7860_v25  ;;  %v7848_v14 = vcombine.high %v1711_v26, %v1719_v27  ;;  %v1737_v35 = vld [vmem:[%s10197_s28 + $0xf0] sm:$0xff]  ;;  %v1722_v25 = vld [vmem:[%s10197_s28 + $0x78] sm:$0xff] }
 0x592   :  { %v1540_v46 = vsel %vm170_vm1, %v1537_v43, %v1526_v45  ;;  %v7861_v43 = vcombine.low %v1726_v40, %v1734_v42  ;;  %v7862_v45 = vcombine.high %v1726_v40, %v1734_v42  ;;  %v1721_v40 = vld [vmem:[%s10197_s28 + $0x70] sm:$0xff] }
 0x593   :  { %9062 = vmatmul.mubr.msk.f32.gmra.mxu0 %vm271_vm2, %v1540_v46 }
 0x594   :  { %9064 = vmatprep.mubr.msk.f32.mxu0 %vm9689_vm0, %v9687_v0  ;;  %2055 = vmatpush1.bf16.msra.mxu0 %v7841_v33  ;;  %v1729_v33 = vld [vmem:[%s10197_s28 + $0xb0] sm:$0xff] }
 0x595   :  { %v1504_v47 = vpop.permute.xlu1 %1503  ;;  %2154 = vmatprep.subr.bf16.mxu0 %v7862_v45  ;;  %v7867_v42 = vcombine.low %v1729_v33, %v1737_v35  ;;  %v7852_v45 = vcombine.high %v1713_v32, %v1721_v40 }
 0x596   :  { %v1534_v50 = vsel %vm543_vm3, %v10132_v9, %v1504_v47 }
 0x599   :  { %v1516_v48 = vpop.permute.xlu1 %1515 }
 0x59a   :  { %v1538_v34 = vsel %vm1535_vm4, %v1534_v50, %v1516_v48 }
 0x5cd   :  { %v1528_v52 = vpop.permute.xlu1 %1527 }
 0x5ce   :  { %v1541_v39 = vsel %vm170_vm1, %v1538_v34, %v1528_v52 }
 0x5cf   :  { %9065 = vmatmul.mubr.msk.f32.gmra.mxu0 %vm271_vm2, %v1541_v39 }
 0x5d0   :  { %2072 = vmatprep.mubr.bf16.mxu0 %v9705_v36 }
 0x64f   :  { %v1628_v55 = vpop.f32.mrf.mxu0 }
 0x650   :  { %v1629_v56 = vadd.f32 %v7833_v44, %v1628_v55  ;;  %v7837_v55 = vld [vmem:[%s7755_s3] ss:$0 sm:$0xff] }
 0x651   :  { %v9060_v58 = vpop.f32.mrf.mxu0 }
 0x652   :  { %v1642_v49 = vadd.f32 %v1629_v56, %v9795_v15 }
 0x653   :  { %v1633_v59 = vpop.f32.mrf.mxu0 }
 0x654   :  { %v1634_v60 = vadd.f32 %v7833_v44, %v1633_v59  ;;  %v1647_v61 = vsel %vm271_vm2, %v1642_v49, 0.0  ;;  %v7838_v59 = vld [vmem:[%s7756_s9] ss:$0 sm:$0xff] }
 0x655   :  { %1648 = vadd.xlane.f32.xlu0 %v1647_v61  ;;  %v9063_v63 = vpop.f32.mrf.mxu0  ;;  %v1709_v61 = vld [vmem:[%s10197_s28 + $0x10] sm:$0xff] }
 0x656   :  { %v1643_v1 = vadd.f32 %v1634_v60, %v9805_v18 }
 0x658   :  { %v1650_v2 = vsel %vm271_vm2, %v1643_v1, 0.0 }
 0x659   :  { %1651 = vadd.xlane.f32.xlu1 %v1650_v2  ;;  %v1717_v2 = vld [vmem:[%s10197_s28 + $0x50] sm:$0xff] }
 0x68f   :  { %v1638_v3 = vpop.f32.mrf.mxu0 }
 0x690   :  { %v1639_v5 = vadd.f32 %v7833_v44, %v1638_v3  ;;  %v1710_v3 = vld [vmem:[%s10197_s28 + $0x18] sm:$0xff] }
 0x691   :  { %v9066_v6 = vpop.f32.mrf.mxu0 }
 0x692   :  { %v1644_v7 = vadd.f32 %v1639_v5, %v9816_v22  ;;  %v1718_v5 = vld [vmem:[%s10197_s28 + $0x58] sm:$0xff] }
 0x694   :  { %v1653_v8 = vsel %vm271_vm2, %v1644_v7, 0.0 }
 0x695   :  { %1654 = vadd.xlane.f32.xlu0 %v1653_v8  ;;  %v7846_v8 = vcombine.high %v1710_v3, %v1718_v5 }
 0x6de   :  { %v1649_v15 = vpop.xlane.xlu0 %1648 }
 0x6df   :  { %v1657_v9 = vmul.f32 0.03125, %v1649_v15  ;;  %v1727_v15 = vld [vmem:[%s10197_s28 + $0xa0] sm:$0xff] }
 0x6e1   :  { %v10184_v57 = vsub.f32 %v1642_v49, %v1657_v9  ;;  %v1735_v9 = vld [vmem:[%s10197_s28 + $0xe0] sm:$0xff] }
 0x6e2   :  { %v1652_v10 = vpop.xlane.xlu1 %1651  ;;  %v7863_v30 = vcombine.low %v1727_v15, %v1735_v9 }
 0x6e3   :  { %v1658_v13 = vmul.f32 0.03125, %v1652_v10  ;;  %v1663_v18 = vmul.f32 %v10184_v57, %v10184_v57  ;;  %v1736_v10 = vld [vmem:[%s10197_s28 + $0xe8] sm:$0xff] }
 0x6e5   :  { %v10188_v62 = vsub.f32 %v1643_v1, %v1658_v13  ;;  %v1666_v16 = vsel %vm271_vm2, %v1663_v18, 0.0  ;;  %v7843_v13 = vcombine.low %v1709_v61, %v1717_v2  ;;  %v7845_v18 = vcombine.low %v1710_v3, %v1718_v5  ;;  %v9321_v3 = vld [vmem:[%s10138_s14 + $0xe0] sm:$0xff]  }
 0x6e6   :  { %1667 = vadd.xlane.f32.xlu0 %v1666_v16  ;;  %v9322_v5 = vld [vmem:[%s10138_s14 + $0x20] sm:$0xff]  }
 0x6e7   :  { %v1664_v22 = vmul.f32 %v10188_v62, %v10188_v62 }
 0x6e9   :  { %v1669_v19 = vsel %vm271_vm2, %v1664_v22, 0.0 }
 0x6ea   :  { %1670 = vadd.xlane.f32.xlu1 %v1669_v19 }
 0x71e   :  { %v1655_v37 = vpop.xlane.xlu0 %1654 }
 0x71f   :  { %v1659_v51 = vmul.f32 0.03125, %v1655_v37  ;;  %v1730_v37 = vld [vmem:[%s10197_s28 + $0xb8] sm:$0xff] }
 0x721   :  { %v10209_v53 = vsub.f32 %v1644_v7, %v1659_v51  ;;  %v7844_v7 = vcombine.high %v1709_v61, %v1717_v2  ;;  %v1738_v51 = vld [vmem:[%s10197_s28 + $0xf8] sm:$0xff]  ;;  %v9319_v61 = vld [vmem:[%s10138_s14 + $0xa8] sm:$0xff]   ;;  %v9320_v2 = vld [vmem:[%s10138_s14 + $0x60] sm:$0xff]  }
 0x722   :  { %v7870_v54 = vcombine.high %v1730_v37, %v1738_v51 }
 0x723   :  { %v1665_v38 = vmul.f32 %v10209_v53, %v10209_v53 }
 0x725   :  { %v1672_v23 = vsel %vm271_vm2, %v1665_v38, 0.0  ;;  %v7849_v38 = vcombine.low %v1712_v17, %v1720_v28 }
 0x726   :  { %1673 = vadd.xlane.f32.xlu0 %v1672_v23  ;;  %v7868_v23 = vcombine.high %v1729_v33, %v1737_v35 }
 0x76f   :  { %v1668_v46 = vpop.xlane.xlu0 %1667 }
 0x770   :  { %v1675_v47 = vmul.f32 0.03125, %v1668_v46 }
 0x772   :  { %v1678_v48 = vadd.f32 1e-05, %v1675_v47  ;;  %v7851_v47 = vcombine.low %v1713_v32, %v1721_v40 }
 0x773   :  { %v1671_v50 = vpop.xlane.xlu1 %1670 }
 0x774   :  { %9612 = vrsqrt.f32 %v1678_v48  ;;  %v1676_v34 = vmul.f32 0.03125, %v1671_v50  ;;  %v9308_v50 = vld [vmem:[%s10138_s14 + $0x78] sm:$0xff]  }
 0x776   :  { %v1679_v52 = vadd.f32 1e-05, %v1676_v34  ;;  %v9309_v34 = vld [vmem:[%s10138_s14 + $0xf8] sm:$0xff]  }
 0x778   :  { %9614 = vrsqrt.f32 %v1679_v52  ;;  %v9310_v52 = vld [vmem:[%s10138_s14 + $0x38] sm:$0xff]  }
 0x781   :  { %v9613_v39 = vpop.eup %9612 }
 0x782   :  { %v1684_v44 = vmul.f32 %v9613_v39, %v10184_v57  ;;  %v1728_v57 = vld [vmem:[%s10197_s28 + $0xa8] sm:$0xff]  ;;  %v9311_v39 = vld [vmem:[%s10138_s14 + $0xb8] sm:$0xff]  }
 0x783   :  { %v7866_v16 = vcombine.high %v1728_v57, %v1736_v10  ;;  %v7865_v31 = vcombine.low %v1728_v57, %v1736_v10  ;;  %v9328_v57 = vld [vmem:[%s10138_s14 + $0x50] sm:$0xff]  }
 0x784   :  { %v1693_v58 = vmul.f32 %v7837_v55, %v1684_v44  ;;  %v9312_v44 = vld [vmem:[%s10138_s14 + $0x70] sm:$0xff]  }
 0x785   :  { %v9615_v56 = vpop.eup %9614  ;;  %v9329_v10 = vld [vmem:[%s10138_s14 + $0xd0] sm:$0xff]  }
 0x786   :  { %v1685_v49 = vmul.f32 %v9615_v56, %v10188_v62  ;;  %v10227_v63 = vadd.f32 %v7838_v59, %v1693_v58  ;;  %v7864_v62 = vcombine.high %v1727_v15, %v1735_v9  ;;  %v9314_v56 = vld [vmem:[%s10138_s14 + $0x30] sm:$0xff]   ;;  %v9326_v15 = vld [vmem:[%s10138_s14 + $0x18] sm:$0xff]  }
 0x787   :  { %v9315_v58 = vld [vmem:[%s10138_s14 + $0xb0] sm:$0xff]   ;;  %v9327_v9 = vld [vmem:[%s10138_s14 + $0x98] sm:$0xff]  }
 0x788   :  { %v1694_v60 = vmul.f32 %v7837_v55, %v1685_v49  ;;  %v9316_v49 = vld [vmem:[%s10138_s14 + $0x68] sm:$0xff]  }
 0x78a   :  { %v10229_v1 = vadd.f32 %v7838_v59, %v1694_v60  ;;  %v9318_v60 = vld [vmem:[%s10138_s14 + $0x28] sm:$0xff]  }
 0x78c   :  { %v10236_v6 = vpack.c.bf16 %v10229_v1, %v10227_v63 }
 0x78e   :  { %7871 = vmatmul.mubr.msk.bf16.vlgmr.msra.gmra.mxu1 %vm271_vm2, %v10236_v6  ;;  %7873 = vmatmul.mubr.msk.bf16.vlgmr.msra.gmra.mxu0 %vm271_vm2, %v10236_v6 }
 0x78f   :  { %2031 = vmatprep.mubr.bf16.mxu1 %v9705_v36  ;;  %2082 = vmatprep.mubr.bf16.mxu0 %v9705_v36 }
 0x790   :  { %2104 = vmatpush1.bf16.msra.mxu1 %v7859_v41  ;;  %2155 = vmatpush1.bf16.msra.mxu0 %v7861_v43  ;;  %v1714_v41 = vld [vmem:[%s10197_s28 + $0x38] sm:$0xff]  ;;  %v7869_v43 = vcombine.low %v1730_v37, %v1738_v51  ;;  %s9724_s28 = smov 33  }
 0x791   :  { %2105 = vmatprep.subr.bf16.mxu1 %v7844_v7  ;;  %2156 = vmatprep.subr.bf16.mxu0 %v7846_v8  ;;  %v7854_v46 = vcombine.high %v1714_v41, %v1722_v25  ;;  %v7853_v48 = vcombine.low %v1714_v41, %v1722_v25  ;;  %v9324_v7 = vld [vmem:[%s10138_s14 + $0x58] sm:$0xff]  }
 0x792   :  { %v9325_v8 = vld [vmem:[%s10138_s14 + $0xd8] sm:$0xff]  }
 0x794   :  { %2106 = vmatpush1.bf16.msra.mxu1 %v7843_v13  ;;  %2157 = vmatpush1.bf16.msra.mxu0 %v7845_v18  ;;  %v9330_v13 = vld [vmem:[%s10138_s14 + $0x10] sm:$0xff]  }
 0x795   :  { %2205 = vmatprep.subr.bf16.mxu1 %v7864_v62  ;;  %2256 = vmatprep.subr.bf16.mxu0 %v7866_v16  ;;  %v9331_v18 = vld [vmem:[%s10138_s14 + $0x90] sm:$0xff]   ;;  %v9332_v62 = vld [vmem:[%s10138_s14 + $0x48] sm:$0xff]  }
 0x796   :  { %v9333_v16 = vld [vmem:[%s10138_s14 + $0xc8] sm:$0xff]  }
 0x7af   :  { %v1674_v22 = vpop.xlane.xlu0 %1673 }
 0x7b0   :  { %v1677_v19 = vmul.f32 0.03125, %v1674_v22  ;;  %v9334_v22 = vld [vmem:[%s10138_s14 + $0x8] sm:$0xff]  }
 0x7b2   :  { %v1680_v11 = vadd.f32 1e-05, %v1677_v19  ;;  %v9335_v19 = vld [vmem:[%s10138_s14 + $0x88] sm:$0xff]  }
 0x7b4   :  { %9616 = vrsqrt.f32 %v1680_v11  ;;  %v9336_v11 = vld [vmem:[%s10138_s14 + $0x40] sm:$0xff]  }
 0x7c1   :  { %v9617_v20 = vpop.eup %9616 }
 0x7c2   :  { %v1686_v21 = vmul.f32 %v9617_v20, %v10209_v53  ;;  %v7847_v53 = vcombine.low %v1711_v26, %v1719_v27  ;;  %v9337_v20 = vld [vmem:[%s10138_s14 + $0xc0] sm:$0xff]   ;;  %v9341_v26 = vld [vmem:[%s10138_s14 + $0x1f8] sm:$0xff]   ;;  %v1743_v27 = vlaneseq }
 0x7c4   :  { %v1695_v4 = vmul.f32 %v7837_v55, %v1686_v21  ;;  %v9313_v55 = vld [vmem:[%s10138_s14 + $0xf0] sm:$0xff]   ;;  %v9338_v21 = vld [vmem:[%s10138_s14] sm:$0xff]   ;;  %v10346_v17 = vshrl.u32 %v1743_v27, 7 }
 0x7c5   :  { %v9362_v27 = vld [vmem:[%s10138_s14 + $0x110] sm:$0xff]  }
 0x7c6   :  { %v10249_v24 = vadd.f32 %v7838_v59, %v1695_v4  ;;  %v9317_v59 = vld [vmem:[%s10138_s14 + $0xe8] sm:$0xff]   ;;  %v9339_v4 = vld [vmem:[%s10138_s14 + $0x80] sm:$0xff]   ;;  %v10349_v28 = vsub.s32 1, %v10346_v17 }
 0x7c8   :  { %v10253_v12 = vpack.c.bf16 %v10249_v24, %v10249_v24 }
 0x7ca   :  { %7872 = vmatmul.mubr.msk.bf16.gmra.mxu1 %vm271_vm2, %v10253_v12  ;;  %7874 = vmatmul.mubr.msk.bf16.gmra.mxu0 %vm271_vm2, %v10253_v12 }
 0x7cb   :  { %2123 = vmatprep.mubr.bf16.mxu1 %v9705_v36  ;;  %2174 = vmatprep.mubr.bf16.mxu0 %v9705_v36 }
 0x7d2   :  { %7875 = vmatmul.mubr.msk.bf16.vlgmr.msra.gmra.mxu1 %vm271_vm2, %v10236_v6  ;;  %7877 = vmatmul.mubr.msk.bf16.vlgmr.msra.gmra.mxu0 %vm271_vm2, %v10236_v6 }
 0x7d3   :  { %2133 = vmatprep.mubr.bf16.mxu1 %v9705_v36  ;;  %2184 = vmatprep.mubr.bf16.mxu0 %v9705_v36 }
 0x7d4   :  { %2206 = vmatpush1.bf16.msra.mxu1 %v7863_v30  ;;  %2257 = vmatpush1.bf16.msra.mxu0 %v7865_v31  ;;  %v10352_v30 = vsub.s32 3, %v10346_v17  ;;  %v10355_v31 = vsub.s32 0, %v10346_v17 }
 0x7d5   :  { %2207 = vmatprep.subr.bf16.mxu1 %v7848_v14  ;;  %2258 = vmatprep.subr.bf16.mxu0 %v7850_v29  ;;  %v10358_v14 = vsub.s32 2, %v10346_v17  ;;  %v10361_v29 = vld [vmem:[%s10344_s16] sm:$0xff] }
 0x7d6   :  { %v10365_v37 = vrot.slane %v10361_v29, %v10349_v28  ;;  %v10369_v51 = vrot.slane %v10361_v29, %v10352_v30 }
 0x7d8   :  { %2208 = vmatpush1.bf16.msra.mxu1 %v7847_v53  ;;  %2259 = vmatpush1.bf16.msra.mxu0 %v7849_v38  ;;  %v10373_v53 = vrot.slane %v10361_v29, %v10355_v31  ;;  %v10377_v38 = vrot.slane %v10361_v29, %v10358_v14 }
 0x7d9   :  { %2307 = vmatprep.subr.bf16.mxu1 %v7868_v23  ;;  %2358 = vmatprep.subr.bf16.mxu0 %v7870_v54 }
 0x7da   :  { %7876 = vmatmul.mubr.msk.bf16.gmra.mxu1 %vm271_vm2, %v10253_v12  ;;  %7878 = vmatmul.mubr.msk.bf16.gmra.mxu0 %vm271_vm2, %v10253_v12 }
 0x7db   :  { %2225 = vmatprep.mubr.bf16.mxu1 %v9705_v36  ;;  %2276 = vmatprep.mubr.bf16.mxu0 %v9705_v36 }
 0x7e2   :  { %7879 = vmatmul.mubr.msk.bf16.vlgmr.msra.gmra.mxu1 %vm271_vm2, %v10236_v6  ;;  %7881 = vmatmul.mubr.msk.bf16.vlgmr.msra.gmra.mxu0 %vm271_vm2, %v10236_v6 }
 0x7e3   :  { %2235 = vmatprep.mubr.bf16.mxu1 %v9705_v36  ;;  %2286 = vmatprep.mubr.bf16.mxu0 %v9705_v36 }
 0x7e4   :  { %2308 = vmatpush1.bf16.msra.mxu1 %v7867_v42  ;;  %2359 = vmatpush1.bf16.msra.mxu0 %v7869_v43 }
 0x7e5   :  { %2309 = vmatprep.subr.bf16.mxu1 %v7852_v45  ;;  %2360 = vmatprep.subr.bf16.mxu0 %v7854_v46 }
 0x7e8   :  { %2310 = vmatpush1.bf16.msra.mxu1 %v7851_v47  ;;  %2361 = vmatpush1.bf16.msra.mxu0 %v7853_v48 }
 0x7e9   :  { %8336 = vmatprep.subr.bf16.mxu1 %v9308_v50  ;;  %8364 = vmatprep.subr.bf16.mxu0 %v9309_v34 }
 0x7ea   :  { %7880 = vmatmul.mubr.msk.bf16.gmra.mxu1 %vm271_vm2, %v10253_v12  ;;  %7882 = vmatmul.mubr.msk.bf16.gmra.mxu0 %vm271_vm2, %v10253_v12 }
 0x7eb   :  { %2327 = vmatprep.mubr.bf16.mxu1 %v9705_v36  ;;  %2378 = vmatprep.mubr.bf16.mxu0 %v9705_v36 }
 0x7f2   :  { %7883 = vmatmul.mubr.msk.bf16.vlgmr.msra.gmra.mxu1 %vm271_vm2, %v10236_v6  ;;  %7885 = vmatmul.mubr.msk.bf16.vlgmr.msra.gmra.mxu0 %vm271_vm2, %v10236_v6  ;;  %v9323_v6 = vld [vmem:[%s10138_s14 + $0xa0] sm:$0xff]  }
 0x7f3   :  { %2337 = vmatprep.mubr.bf16.mxu1 %v9705_v36  ;;  %2388 = vmatprep.mubr.bf16.mxu0 %v9705_v36 }
 0x7f4   :  { %8337 = vmatpush3.bf16.msra.mxu1 %v9310_v52  ;;  %8365 = vmatpush3.bf16.msra.mxu0 %v9311_v39 }
 0x7f5   :  { %8338 = vmatprep.subr.bf16.mxu1 %v9312_v44  ;;  %8366 = vmatprep.subr.bf16.mxu0 %v9313_v55 }
 0x7f8   :  { %8339 = vmatpush3.bf16.msra.mxu1 %v9314_v56  ;;  %8367 = vmatpush3.bf16.msra.mxu0 %v9315_v58 }
 0x7f9   :  { %8340 = vmatprep.subr.bf16.mxu1 %v9316_v49  ;;  %8368 = vmatprep.subr.bf16.mxu0 %v9317_v59 }
 0x7fa   :  { %7884 = vmatmul.mubr.msk.bf16.gmra.mxu1 %vm271_vm2, %v10253_v12  ;;  %7886 = vmatmul.mubr.msk.bf16.gmra.mxu0 %vm271_vm2, %v10253_v12  ;;  %v9340_v12 = vld [vmem:[%s10138_s14 + $0x178] sm:$0xff]  }
 0x7fc   :  { %8341 = vmatpush3.bf16.msra.mxu1 %v9318_v60  ;;  %8369 = vmatpush3.bf16.msra.mxu0 %v9319_v61 }
 0x7fd   :  { %8342 = vmatprep.subr.bf16.mxu1 %v9320_v2  ;;  %8370 = vmatprep.subr.bf16.mxu0 %v9321_v3  ;;  %v9342_v2 = vld [vmem:[%s10138_s14 + $0x138] sm:$0xff]  }
 0x7fe   :  { %v9343_v3 = vld [vmem:[%s10138_s14 + $0x1b8] sm:$0xff]  }
 0x800   :  { %8343 = vmatpush3.bf16.msra.mxu1 %v9322_v5  ;;  %8371 = vmatpush3.bf16.msra.mxu0 %v9323_v6 }
 0x801   :  { %8344 = vmatprep.subr.bf16.mxu1 %v9324_v7  ;;  %8372 = vmatprep.subr.bf16.mxu0 %v9325_v8  ;;  %v9344_v7 = vld [vmem:[%s10138_s14 + $0x170] sm:$0xff]  }
 0x802   :  { %v9345_v8 = vld [vmem:[%s10138_s14 + $0x1f0] sm:$0xff]  }
 0x804   :  { %8345 = vmatpush3.bf16.msra.mxu1 %v9326_v15  ;;  %8373 = vmatpush3.bf16.msra.mxu0 %v9327_v9  ;;  %v9346_v15 = vld [vmem:[%s10138_s14 + $0x130] sm:$0xff]  }
 0x805   :  { %8346 = vmatprep.subr.bf16.mxu1 %v9328_v57  ;;  %8374 = vmatprep.subr.bf16.mxu0 %v9329_v10  ;;  %v9347_v9 = vld [vmem:[%s10138_s14 + $0x1b0] sm:$0xff]   ;;  %v9348_v57 = vld [vmem:[%s10138_s14 + $0x168] sm:$0xff]  }
 0x806   :  { %v9349_v10 = vld [vmem:[%s10138_s14 + $0x1e8] sm:$0xff]  }
 0x808   :  { %8347 = vmatpush3.bf16.msra.mxu1 %v9330_v13  ;;  %8375 = vmatpush3.bf16.msra.mxu0 %v9331_v18  ;;  %v9350_v13 = vld [vmem:[%s10138_s14 + $0x128] sm:$0xff]  }
 0x809   :  { %8348 = vmatprep.subr.bf16.mxu1 %v9332_v62  ;;  %8376 = vmatprep.subr.bf16.mxu0 %v9333_v16  ;;  %v9351_v18 = vld [vmem:[%s10138_s14 + $0x1a8] sm:$0xff]   ;;  %v9352_v62 = vld [vmem:[%s10138_s14 + $0x160] sm:$0xff]  }
 0x80a   :  { %v9353_v16 = vld [vmem:[%s10138_s14 + $0x1e0] sm:$0xff]  }
 0x80c   :  { %8349 = vmatpush3.bf16.msra.mxu1 %v9334_v22  ;;  %8377 = vmatpush3.bf16.msra.mxu0 %v9335_v19  ;;  %v9354_v22 = vld [vmem:[%s10138_s14 + $0x120] sm:$0xff]  }
 0x80d   :  { %8350 = vmatprep.subr.bf16.mxu1 %v9336_v11  ;;  %8378 = vmatprep.subr.bf16.mxu0 %v9337_v20  ;;  %v9355_v19 = vld [vmem:[%s10138_s14 + $0x1a0] sm:$0xff]   ;;  %v9356_v11 = vld [vmem:[%s10138_s14 + $0x158] sm:$0xff]  }
 0x80e   :  { %v9357_v20 = vld [vmem:[%s10138_s14 + $0x1d8] sm:$0xff]  }
 0x810   :  { %8351 = vmatpush3.bf16.msra.mxu1 %v9338_v21  ;;  %8379 = vmatpush3.bf16.msra.mxu0 %v9339_v4  ;;  %v9358_v21 = vld [vmem:[%s10138_s14 + $0x118] sm:$0xff]  }
 0x811   :  { %8392 = vmatprep.subr.bf16.mxu1 %v9340_v12  ;;  %8420 = vmatprep.subr.bf16.mxu0 %v9341_v26  ;;  %v9359_v4 = vld [vmem:[%s10138_s14 + $0x198] sm:$0xff]   ;;  %v9360_v12 = vld [vmem:[%s10138_s14 + $0x150] sm:$0xff]  }
 0x812   :  { %v9361_v26 = vld [vmem:[%s10138_s14 + $0x1d0] sm:$0xff]  }
 0x84e   :  { %v2023_v33 = vpop.f32.mrf.mxu1  ;;  %v2074_v35 = vpop.f32.mrf.mxu0 }
 0x84f   :  { %v2024_v45 = vadd.f32 %v2023_v33, %v10373_v53  ;;  %v2075_v46 = vadd.f32 %v2074_v35, %v10377_v38  ;;  %v9363_v33 = vld [vmem:[%s10138_s14 + $0x190] sm:$0xff]   ;;  %v9364_v35 = vld [vmem:[%s10138_s14 + $0x148] sm:$0xff]  }
 0x850   :  { %v2025_v23 = vpop.f32.mrf.mxu1  ;;  %v2076_v54 = vpop.f32.mrf.mxu0 }
 0x851   :  { %v2026_v41 = vadd.f32 %v2025_v23, %v10365_v37  ;;  %v2077_v25 = vadd.f32 %v2076_v54, %v10369_v51  ;;  %v2397_v49 = vmax.f32 %v2024_v45, 0.0  ;;  %v2399_v59 = vmax.f32 %v2075_v46, 0.0  ;;  %v9365_v23 = vld [vmem:[%s10138_s14 + $0x1c8] sm:$0xff]   ;;  %v9373_v45 = vld [vmem:[%s10138_s14 + $0x2f8] sm:$0xff]  }
 0x852   :  { %v2027_v32 = vpop.f32.mrf.mxu1  ;;  %v2078_v40 = vpop.f32.mrf.mxu0  ;;  %v9366_v54 = vld [vmem:[%s10138_s14 + $0x108] sm:$0xff]  }
 0x853   :  { %v2028_v42 = vadd.f32 %v2027_v32, %v10373_v53  ;;  %v2079_v43 = vadd.f32 %v2078_v40, %v10377_v38  ;;  %v2398_v44 = vmax.f32 %v2026_v41, 0.0  ;;  %v2400_v55 = vmax.f32 %v2077_v25, 0.0  ;;  %v9367_v32 = vld [vmem:[%s10138_s14 + $0x188] sm:$0xff]   ;;  %v9368_v40 = vld [vmem:[%s10138_s14 + $0x140] sm:$0xff]  }
 0x854   :  { %v2029_v47 = vpop.f32.mrf.mxu1  ;;  %v2080_v48 = vpop.f32.mrf.mxu0  ;;  %v9369_v41 = vld [vmem:[%s10138_s14 + $0x1c0] sm:$0xff]  }
 0x855   :  { %v2030_v50 = vadd.f32 %v2029_v47, %v10365_v37  ;;  %v2081_v34 = vadd.f32 %v2080_v48, %v10369_v51  ;;  %v2413_v52 = vmax.f32 %v2028_v42, 0.0  ;;  %v2415_v39 = vmax.f32 %v2079_v43, 0.0  ;;  %v9370_v25 = vld [vmem:[%s10138_s14 + $0x100] sm:$0xff]   ;;  %v9372_v43 = vld [vmem:[%s10138_s14 + $0x278] sm:$0xff]  }
 0x856   :  { %v9371_v42 = vld [vmem:[%s10138_s14 + $0x180] sm:$0xff]  }
 0x857   :  { %v2414_v56 = vmax.f32 %v2030_v50, 0.0  ;;  %v2416_v58 = vmax.f32 %v2081_v34, 0.0  ;;  %v2445_v5 = vpack.c.bf16 %v2413_v52, %v2397_v49  ;;  %v2447_v6 = vpack.c.bf16 %v2415_v39, %v2399_v59 }
 0x859   :  { %v2446_v60 = vpack.c.bf16 %v2414_v56, %v2398_v44  ;;  %v2448_v61 = vpack.c.bf16 %v2416_v58, %v2400_v55 }
 0x85b   :  { %3540 = vmatprep.mubr.bf16.mxu1 %v2446_v60  ;;  %3588 = vmatprep.mubr.bf16.mxu0 %v2448_v61  ;;  %v10424_v61 = vsub.s32 5, %v10346_v17 }
 0x85c   :  { %3541 = vmatmul.mubr.bf16.vlgmr.msra.gmra.mxu1 %v2445_v5  ;;  %3589 = vmatmul.mubr.bf16.vlgmr.msra.gmra.mxu0 %v2447_v6 }
 0x85d   :  { %8393 = vmatpush3.bf16.msra.mxu1 %v9342_v2  ;;  %8421 = vmatpush3.bf16.msra.mxu0 %v9343_v3  ;;  %v10427_v2 = vsub.s32 7, %v10346_v17  ;;  %v10430_v3 = vsub.s32 4, %v10346_v17 }
 0x85e   :  { %8394 = vmatprep.subr.bf16.mxu1 %v9344_v7  ;;  %8422 = vmatprep.subr.bf16.mxu0 %v9345_v8 }
 0x861   :  { %8395 = vmatpush3.bf16.msra.mxu1 %v9346_v15  ;;  %8423 = vmatpush3.bf16.msra.mxu0 %v9347_v9  ;;  %v1766_v9 = vrot.slane %v10361_v29, %v10424_v61 }
 0x862   :  { %8396 = vmatprep.subr.bf16.mxu1 %v9348_v57  ;;  %8424 = vmatprep.subr.bf16.mxu0 %v9349_v10  ;;  %v1774_v57 = vrot.slane %v10361_v29, %v10427_v2  ;;  %v1762_v10 = vrot.slane %v10361_v29, %v10430_v3 }
 0x865   :  { %8397 = vmatpush3.bf16.msra.mxu1 %v9350_v13  ;;  %8425 = vmatpush3.bf16.msra.mxu0 %v9351_v18 }
 0x866   :  { %8398 = vmatprep.subr.bf16.mxu1 %v9352_v62  ;;  %8426 = vmatprep.subr.bf16.mxu0 %v9353_v16 }
 0x869   :  { %8399 = vmatpush3.bf16.msra.mxu1 %v9354_v22  ;;  %8427 = vmatpush3.bf16.msra.mxu0 %v9355_v19 }
 0x86a   :  { %8400 = vmatprep.subr.bf16.mxu1 %v9356_v11  ;;  %8428 = vmatprep.subr.bf16.mxu0 %v9357_v20 }
 0x86d   :  { %8401 = vmatpush3.bf16.msra.mxu1 %v9358_v21  ;;  %8429 = vmatpush3.bf16.msra.mxu0 %v9359_v4 }
 0x86e   :  { %8402 = vmatprep.subr.bf16.mxu1 %v9360_v12  ;;  %8430 = vmatprep.subr.bf16.mxu0 %v9361_v26 }
 0x871   :  { %8403 = vmatpush3.bf16.msra.mxu1 %v9362_v27  ;;  %8431 = vmatpush3.bf16.msra.mxu0 %v9363_v33 }
 0x872   :  { %8404 = vmatprep.subr.bf16.mxu1 %v9364_v35  ;;  %8432 = vmatprep.subr.bf16.mxu0 %v9365_v23 }
 0x875   :  { %8405 = vmatpush3.bf16.msra.mxu1 %v9366_v54  ;;  %8433 = vmatpush3.bf16.msra.mxu0 %v9367_v32 }
 0x876   :  { %8406 = vmatprep.subr.bf16.mxu1 %v9368_v40  ;;  %8434 = vmatprep.subr.bf16.mxu0 %v9369_v41 }
 0x879   :  { %8407 = vmatpush3.bf16.msra.mxu1 %v9370_v25  ;;  %8435 = vmatpush3.bf16.msra.mxu0 %v9371_v42 }
 0x87a   :  { %8448 = vmatprep.subr.bf16.mxu1 %v9372_v43  ;;  %8476 = vmatprep.subr.bf16.mxu0 %v9373_v45 }
 0x88a   :  { %v2033_v46 = vpop.f32.mrf.mxu1  ;;  %v2084_v47 = vpop.f32.mrf.mxu0 }
 0x88b   :  { %v2034_v48 = vadd.f32 %v2033_v46, %v10373_v53  ;;  %v2085_v50 = vadd.f32 %v2084_v47, %v10377_v38 }
 0x88c   :  { %v2035_v34 = vpop.f32.mrf.mxu1  ;;  %v2086_v52 = vpop.f32.mrf.mxu0 }
 0x88d   :  { %v2036_v39 = vadd.f32 %v2035_v34, %v10365_v37  ;;  %v2087_v44 = vadd.f32 %v2086_v52, %v10369_v51  ;;  %v2429_v55 = vmax.f32 %v2034_v48, 0.0  ;;  %v2431_v56 = vmax.f32 %v2085_v50, 0.0  ;;  %v9374_v52 = vld [vmem:[%s10138_s14 + $0x238] sm:$0xff]  }
 0x88e   :  { %v2037_v58 = vpop.f32.mrf.mxu1  ;;  %v2088_v49 = vpop.f32.mrf.mxu0  ;;  %v10433_v37 = vsub.s32 6, %v10346_v17 }
 0x88f   :  { %v2430_v59 = vmax.f32 %v2036_v39, 0.0  ;;  %v2432_v60 = vmax.f32 %v2087_v44, 0.0  ;;  %v2461_v6 = vpack.c.bf16 %v2429_v55, %v2429_v55  ;;  %v2463_v7 = vpack.c.bf16 %v2431_v56, %v2431_v56  ;;  %v9375_v39 = vld [vmem:[%s10138_s14 + $0x2b8] sm:$0xff]  }
 0x890   :  { %v2038_v53 = vpop.f32.mrf.mxu1  ;;  %v2089_v38 = vpop.f32.mrf.mxu0  ;;  %v1770_v17 = vrot.slane %v10361_v29, %v10433_v37 }
 0x891   :  { %v2462_v51 = vpack.c.bf16 %v2430_v59, %v2430_v59  ;;  %v2464_v5 = vpack.c.bf16 %v2432_v60, %v2432_v60  ;;  %v9376_v60 = vld [vmem:[%s10138_s14 + $0x270] sm:$0xff]  }
 0x892   :  { %v2125_v8 = vpop.f32.mrf.mxu1  ;;  %v2176_v15 = vpop.f32.mrf.mxu0  ;;  %v9377_v53 = vld [vmem:[%s10138_s14 + $0x2f0] sm:$0xff]  }
 0x893   :  { %3548 = vmatprep.mubr.bf16.mxu1 %v2462_v51  ;;  %3596 = vmatprep.mubr.bf16.mxu0 %v2464_v5  ;;  %v2126_v21 = vadd.f32 %v2125_v8, %v1762_v10  ;;  %v2177_v4 = vadd.f32 %v2176_v15, %v1770_v17  ;;  %v9378_v15 = vld [vmem:[%s10138_s14 + $0x230] sm:$0xff]  }
 0x894   :  { %v2127_v13 = vpop.f32.mrf.mxu1  ;;  %v2178_v18 = vpop.f32.mrf.mxu0  ;;  %3549 = vmatmul.mubr.bf16.gmra.mxu1 %v2461_v6  ;;  %3597 = vmatmul.mubr.bf16.gmra.mxu0 %v2463_v7 }
 0x895   :  { %v2128_v22 = vadd.f32 %v2127_v13, %v1766_v9  ;;  %v2179_v19 = vadd.f32 %v2178_v18, %v1774_v57  ;;  %v2401_v42 = vmax.f32 %v2126_v21, 0.0  ;;  %v2403_v43 = vmax.f32 %v2177_v4, 0.0  ;;  %v9382_v21 = vld [vmem:[%s10138_s14 + $0x228] sm:$0xff]  }
 0x896   :  { %v2129_v62 = vpop.f32.mrf.mxu1  ;;  %v2180_v16 = vpop.f32.mrf.mxu0  ;;  %v9383_v4 = vld [vmem:[%s10138_s14 + $0x2a8] sm:$0xff]  }
 0x897   :  { %v2130_v11 = vadd.f32 %v2129_v62, %v1762_v10  ;;  %v2181_v20 = vadd.f32 %v2180_v16, %v1770_v17  ;;  %v2402_v32 = vmax.f32 %v2128_v22, 0.0  ;;  %v2404_v40 = vmax.f32 %v2179_v19, 0.0  ;;  %v9380_v62 = vld [vmem:[%s10138_s14 + $0x268] sm:$0xff]  }
 0x898   :  { %v2131_v12 = vpop.f32.mrf.mxu1  ;;  %v2182_v26 = vpop.f32.mrf.mxu0  ;;  %v9381_v16 = vld [vmem:[%s10138_s14 + $0x2e8] sm:$0xff]  }
 0x899   :  { %v2132_v27 = vadd.f32 %v2131_v12, %v1766_v9  ;;  %v2183_v33 = vadd.f32 %v2182_v26, %v1774_v57  ;;  %v2417_v35 = vmax.f32 %v2130_v11, 0.0  ;;  %v2419_v23 = vmax.f32 %v2181_v20, 0.0 }
 0x89a   :  { %v2135_v29 = vpop.f32.mrf.mxu1  ;;  %v2186_v54 = vpop.f32.mrf.mxu0 }
 0x89b   :  { %v2418_v41 = vmax.f32 %v2132_v27, 0.0  ;;  %v2420_v25 = vmax.f32 %v2183_v33, 0.0  ;;  %v2449_v44 = vpack.c.bf16 %v2417_v35, %v2401_v42  ;;  %v2451_v55 = vpack.c.bf16 %v2419_v23, %v2403_v43  ;;  %v9384_v35 = vld [vmem:[%s10138_s14 + $0x260] sm:$0xff]  }
 0x89c   :  { %v2137_v45 = vpop.f32.mrf.mxu1  ;;  %v2188_v46 = vpop.f32.mrf.mxu0  ;;  %v2136_v56 = vadd.f32 %v2135_v29, %v1762_v10  ;;  %v2187_v58 = vadd.f32 %v2186_v54, %v1770_v17  ;;  %v10450_v17 = vld [vmem:[%s10344_s16 + $0x8] sm:$0xff]  ;;  %v9385_v23 = vld [vmem:[%s10138_s14 + $0x2e0] sm:$0xff]   ;;  %s10637_s16 = sld [smem:[%s11432_s0 + %s9702_s20]]  }
 0x89d   :  { %v2138_v47 = vadd.f32 %v2137_v45, %v1766_v9  ;;  %v2189_v48 = vadd.f32 %v2188_v46, %v1774_v57  ;;  %v2450_v50 = vpack.c.bf16 %v2418_v41, %v2402_v32  ;;  %v2452_v34 = vpack.c.bf16 %v2420_v25, %v2404_v40  ;;  %v9379_v9 = vld [vmem:[%s10138_s14 + $0x2b0] sm:$0xff]   ;;  %v9386_v42 = vld [vmem:[%s10138_s14 + $0x220] sm:$0xff]  }
 0x89e   :  { %v2139_v49 = vpop.f32.mrf.mxu1  ;;  %v2190_v59 = vpop.f32.mrf.mxu0  ;;  %v2433_v57 = vmax.f32 %v2136_v56, 0.0  ;;  %v2435_v10 = vmax.f32 %v2187_v58, 0.0  ;;  %v10460_v22 = vrot.slane %v10450_v17, %v10349_v28  ;;  %v10464_v11 = vrot.slane %v10450_v17, %v10352_v30  ;;  %v9387_v43 = vld [vmem:[%s10138_s14 + $0x2a0] sm:$0xff]   ;;  %v9390_v58 = vld [vmem:[%s10138_s14 + $0x218] sm:$0xff]  }
 0x89f   :  { %v2434_v38 = vmax.f32 %v2138_v47, 0.0  ;;  %v2436_v51 = vmax.f32 %v2189_v48, 0.0  ;;  %3636 = vmatprep.mubr.bf16.mxu1 %v2450_v50  ;;  %3684 = vmatprep.mubr.bf16.mxu0 %v2452_v34  ;;  %v9388_v47 = vld [vmem:[%s10138_s14 + $0x258] sm:$0xff]  }
 0x8a0   :  { %v2140_v5 = vpop.f32.mrf.mxu1  ;;  %v2191_v6 = vpop.f32.mrf.mxu0  ;;  %3637 = vmatmul.mubr.bf16.vlgmr.msra.gmra.mxu1 %v2449_v44  ;;  %3685 = vmatmul.mubr.bf16.vlgmr.msra.gmra.mxu0 %v2451_v55  ;;  %v2465_v12 = vpack.c.bf16 %v2433_v57, %v2433_v57  ;;  %v2467_v26 = vpack.c.bf16 %v2435_v10, %v2435_v10  ;;  %v9389_v48 = vld [vmem:[%s10138_s14 + $0x2d8] sm:$0xff]   ;;  %v9396_v57 = vld [vmem:[%s10138_s14 + $0x248] sm:$0xff]  }
 0x8a1   :  { %v2466_v7 = vpack.c.bf16 %v2434_v38, %v2434_v38  ;;  %v2468_v8 = vpack.c.bf16 %v2436_v51, %v2436_v51  ;;  %8449 = vmatpush3.bf16.msra.mxu1 %v9374_v52  ;;  %8477 = vmatpush3.bf16.msra.mxu0 %v9375_v39  ;;  %v9391_v49 = vld [vmem:[%s10138_s14 + $0x298] sm:$0xff]   ;;  %v9392_v38 = vld [vmem:[%s10138_s14 + $0x250] sm:$0xff]   ;;  %v9397_v10 = vld [vmem:[%s10138_s14 + $0x2c8] sm:$0xff]  }
 0x8a2   :  { %v10452_v13 = vpop.f32.mrf.mxu1  ;;  %v10454_v18 = vpop.f32.mrf.mxu0  ;;  %8450 = vmatprep.subr.bf16.mxu1 %v9376_v60  ;;  %8478 = vmatprep.subr.bf16.mxu0 %v9377_v53  ;;  %v9393_v51 = vld [vmem:[%s10138_s14 + $0x2d0] sm:$0xff]  }
 0x8a3   :  { %3644 = vmatprep.mubr.bf16.mxu1 %v2466_v7  ;;  %3692 = vmatprep.mubr.bf16.mxu0 %v2468_v8  ;;  %v9394_v7 = vld [vmem:[%s10138_s14 + $0x210] sm:$0xff]  }
 0x8a4   :  { %v2229_v19 = vpop.f32.mrf.mxu1  ;;  %v2280_v20 = vpop.f32.mrf.mxu0  ;;  %v9395_v8 = vld [vmem:[%s10138_s14 + $0x290] sm:$0xff]  }
 0x8a5   :  { %8451 = vmatpush3.bf16.msra.mxu1 %v9378_v15  ;;  %8479 = vmatpush3.bf16.msra.mxu0 %v9379_v9  ;;  %v2230_v29 = vadd.f32 %v2229_v19, %v10460_v22  ;;  %v2281_v54 = vadd.f32 %v2280_v20, %v10464_v11 }
 0x8a6   :  { %v2231_v27 = vpop.f32.mrf.mxu1  ;;  %v10468_v33 = vpop.f32.mrf.mxu0  ;;  %8452 = vmatprep.subr.bf16.mxu1 %v9380_v62  ;;  %8480 = vmatprep.subr.bf16.mxu0 %v9381_v16  ;;  %v1778_v62 = vrot.slane %v10450_v17, %v10355_v31  ;;  %v1786_v16 = vrot.slane %v10450_v17, %v10358_v14 }
 0x8a7   :  { %v2406_v50 = vmax.f32 %v2230_v29, 0.0  ;;  %v2408_v39 = vmax.f32 %v2281_v54, 0.0  ;;  %v9400_v29 = vld [vmem:[%s10138_s14 + $0x240] sm:$0xff]  }
 0x8a8   :  { %v2233_v32 = vpop.f32.mrf.mxu1  ;;  %v2284_v40 = vpop.f32.mrf.mxu0  ;;  %3645 = vmatmul.mubr.bf16.gmra.mxu1 %v2465_v12  ;;  %3693 = vmatmul.mubr.bf16.gmra.mxu0 %v2467_v26  ;;  %v9399_v12 = vld [vmem:[%s10138_s14 + $0x288] sm:$0xff]   ;;  %v2283_v26 = vadd.f32 %v10468_v33, %v1786_v16  ;;  %v9401_v54 = vld [vmem:[%s10138_s14 + $0x2c0] sm:$0xff]   ;;  %v2279_v33 = vadd.f32 %v10454_v18, %v1786_v16 }
 0x8a9   :  { %v2234_v41 = vadd.f32 %v2233_v32, %v10460_v22  ;;  %v2285_v25 = vadd.f32 %v2284_v40, %v10464_v11  ;;  %8453 = vmatpush3.bf16.msra.mxu1 %v9382_v21  ;;  %8481 = vmatpush3.bf16.msra.mxu0 %v9383_v4  ;;  %v2232_v21 = vadd.f32 %v2231_v27, %v1778_v62  ;;  %v9398_v4 = vld [vmem:[%s10138_s14 + $0x208] sm:$0xff]  }
 0x8aa   :  { %v10478_v45 = vpop.f32.mrf.mxu1  ;;  %v10480_v46 = vpop.f32.mrf.mxu0  ;;  %8454 = vmatprep.subr.bf16.mxu1 %v9384_v35  ;;  %8482 = vmatprep.subr.bf16.mxu0 %v9385_v23  ;;  %v2228_v32 = vadd.f32 %v10452_v13, %v1778_v62  ;;  %v9404_v13 = vld [vmem:[%s10138_s14 + $0x378] sm:$0xff]   ;;  %v2407_v18 = vmax.f32 %v2279_v33, 0.0 }
 0x8ab   :  { %v2422_v34 = vmax.f32 %v2234_v41, 0.0  ;;  %v2424_v52 = vmax.f32 %v2285_v25, 0.0 }
 0x8ac   :  { %v2239_v44 = vpop.f32.mrf.mxu1  ;;  %v2290_v55 = vpop.f32.mrf.mxu0 }
 0x8ad   :  { %8455 = vmatpush3.bf16.msra.mxu1 %v9386_v42  ;;  %8483 = vmatpush3.bf16.msra.mxu0 %v9387_v43  ;;  %v2454_v56 = vpack.c.bf16 %v2422_v34, %v2406_v50  ;;  %v2456_v53 = vpack.c.bf16 %v2424_v52, %v2408_v39  ;;  %v2240_v27 = vadd.f32 %v2239_v44, %v10460_v22  ;;  %v2421_v42 = vmax.f32 %v2232_v21, 0.0  ;;  %v9402_v43 = vld [vmem:[%s10138_s14 + $0x200] sm:$0xff]   ;;  %v9405_v22 = vld [vmem:[%s10138_s14 + $0x3f8] sm:$0xff]   ;;  %v9408_v21 = vld [vmem:[%s10138_s14 + $0x370] sm:$0xff]  }
 0x8ae   :  { %v2241_v59 = vpop.f32.mrf.mxu1  ;;  %v2292_v60 = vpop.f32.mrf.mxu0  ;;  %8456 = vmatprep.subr.bf16.mxu1 %v9388_v47  ;;  %8484 = vmatprep.subr.bf16.mxu0 %v9389_v48  ;;  %v2291_v40 = vadd.f32 %v2290_v55, %v10464_v11  ;;  %v9403_v47 = vld [vmem:[%s10138_s14 + $0x280] sm:$0xff]   ;;  %v2423_v48 = vmax.f32 %v2283_v26, 0.0  ;;  %v2405_v52 = vmax.f32 %v2228_v32, 0.0 }
 0x8af   :  { %3732 = vmatprep.mubr.bf16.mxu1 %v2454_v56  ;;  %3780 = vmatprep.mubr.bf16.mxu0 %v2456_v53  ;;  %v2438_v11 = vmax.f32 %v2240_v27, 0.0  ;;  %v2238_v60 = vadd.f32 %v10478_v45, %v1778_v62  ;;  %v2289_v53 = vadd.f32 %v10480_v46, %v1786_v16 }
 0x8b0   :  { %v2242_v5 = vpop.f32.mrf.mxu1  ;;  %v2293_v6 = vpop.f32.mrf.mxu0  ;;  %v2440_v39 = vmax.f32 %v2291_v40, 0.0  ;;  %v2453_v56 = vpack.c.bf16 %v2421_v42, %v2405_v52  ;;  %v2455_v59 = vpack.c.bf16 %v2423_v48, %v2407_v18  ;;  %v9412_v40 = vld [vmem:[%s10138_s14 + $0x368] sm:$0xff]   ;;  %v9418_v52 = vld [vmem:[%s10138_s14 + $0x320] sm:$0xff]   ;;  %v9421_v18 = vld [vmem:[%s10138_s14 + $0x3d8] sm:$0xff]  }
 0x8b1   :  { %8457 = vmatpush3.bf16.msra.mxu1 %v9390_v58  ;;  %8485 = vmatpush3.bf16.msra.mxu0 %v9391_v49  ;;  %v10527_v58 = vrot.slane %v10450_v17, %v10424_v61  ;;  %v10531_v49 = vrot.slane %v10450_v17, %v10427_v2  ;;  %v9406_v5 = vld [vmem:[%s10138_s14 + $0x338] sm:$0xff]   ;;  %v2439_v26 = vmax.f32 %v2289_v53, 0.0  ;;  %v9414_v42 = vld [vmem:[%s10138_s14 + $0x328] sm:$0xff]   ;;  %v9425_v53 = vld [vmem:[%s10138_s14 + $0x3d0] sm:$0xff]  }
 0x8b2   :  { %v10490_v15 = vpop.f32.mrf.mxu1  ;;  %v10492_v9 = vpop.f32.mrf.mxu0  ;;  %8458 = vmatprep.subr.bf16.mxu1 %v9392_v38  ;;  %8486 = vmatprep.subr.bf16.mxu0 %v9393_v51  ;;  %v9407_v6 = vld [vmem:[%s10138_s14 + $0x3b8] sm:$0xff]  }
 0x8b4   :  { %v2331_v19 = vpop.f32.mrf.mxu1  ;;  %v2382_v20 = vpop.f32.mrf.mxu0 }
 0x8b5   :  { %8459 = vmatpush3.bf16.msra.mxu1 %v9394_v7  ;;  %8487 = vmatpush3.bf16.msra.mxu0 %v9395_v8  ;;  %v2470_v7 = vpack.c.bf16 %v2438_v11, %v2438_v11  ;;  %v2472_v8 = vpack.c.bf16 %v2440_v39, %v2440_v39  ;;  %v2332_v62 = vadd.f32 %v2331_v19, %v10527_v58  ;;  %v9413_v19 = vld [vmem:[%s10138_s14 + $0x3e8] sm:$0xff]   ;;  %v9419_v11 = vld [vmem:[%s10138_s14 + $0x3a0] sm:$0xff]   ;;  %v9420_v39 = vld [vmem:[%s10138_s14 + $0x358] sm:$0xff]  }
 0x8b6   :  { %v10503_v35 = vpop.f32.mrf.mxu1  ;;  %v10505_v23 = vpop.f32.mrf.mxu0  ;;  %8460 = vmatprep.subr.bf16.mxu1 %v9396_v57  ;;  %8488 = vmatprep.subr.bf16.mxu0 %v9397_v10  ;;  %v2383_v16 = vadd.f32 %v2382_v20, %v10531_v49 }
 0x8b7   :  { %v2410_v33 = vmax.f32 %v2332_v62, 0.0 }
 0x8b8   :  { %v2335_v41 = vpop.f32.mrf.mxu1  ;;  %v2386_v25 = vpop.f32.mrf.mxu0  ;;  %v2412_v20 = vmax.f32 %v2383_v16, 0.0 }
 0x8b9   :  { %8461 = vmatpush3.bf16.msra.mxu1 %v9398_v4  ;;  %8489 = vmatpush3.bf16.msra.mxu0 %v9399_v12  ;;  %v2336_v57 = vadd.f32 %v2335_v41, %v10527_v58  ;;  %v2387_v10 = vadd.f32 %v2386_v25, %v10531_v49  ;;  %v9409_v4 = vld [vmem:[%s10138_s14 + $0x3f0] sm:$0xff]   ;;  %v2437_v12 = vmax.f32 %v2238_v60, 0.0  ;;  %v2471_v25 = vpack.c.bf16 %v2439_v26, %v2439_v26  ;;  %v9434_v26 = vld [vmem:[%s10138_s14 + $0x300] sm:$0xff]  }
 0x8ba   :  { %v10515_v50 = vpop.f32.mrf.mxu1  ;;  %v10517_v34 = vpop.f32.mrf.mxu0  ;;  %8462 = vmatprep.subr.bf16.mxu1 %v9400_v29  ;;  %8490 = vmatprep.subr.bf16.mxu0 %v9401_v54  ;;  %v9410_v29 = vld [vmem:[%s10138_s14 + $0x330] sm:$0xff]  }
 0x8bb   :  { %v9411_v54 = vld [vmem:[%s10138_s14 + $0x3b0] sm:$0xff]   ;;  %v2426_v32 = vmax.f32 %v2336_v57, 0.0  ;;  %v2428_v27 = vmax.f32 %v2387_v10, 0.0  ;;  %v2469_v41 = vpack.c.bf16 %v2437_v12, %v2437_v12  ;;  %v9430_v10 = vld [vmem:[%s10138_s14 + $0x308] sm:$0xff]  }
 0x8bc   :  { %v10521_v44 = vpop.f32.mrf.mxu1  ;;  %v10523_v55 = vpop.f32.mrf.mxu0  ;;  %v9424_v60 = vld [vmem:[%s10138_s14 + $0x350] sm:$0xff]  }
 0x8bd   :  { %8463 = vmatpush3.bf16.msra.mxu1 %v9402_v43  ;;  %8491 = vmatpush3.bf16.msra.mxu0 %v9403_v47  ;;  %v9415_v43 = vld [vmem:[%s10138_s14 + $0x3a8] sm:$0xff]   ;;  %v2458_v47 = vpack.c.bf16 %v2426_v32, %v2410_v33  ;;  %v2460_v48 = vpack.c.bf16 %v2428_v27, %v2412_v20  ;;  %v2342_v16 = vadd.f32 %v10521_v44, %v10527_v58 }
 0x8be   :  { %v2343_v38 = vpop.f32.mrf.mxu1  ;;  %v2394_v51 = vpop.f32.mrf.mxu0  ;;  %8504 = vmatprep.subr.bf16.mxu1 %v9404_v13  ;;  %8532 = vmatprep.subr.bf16.mxu0 %v9405_v22  ;;  %v9416_v13 = vld [vmem:[%s10138_s14 + $0x360] sm:$0xff]  }
 0x8bf   :  { %v9417_v22 = vld [vmem:[%s10138_s14 + $0x3e0] sm:$0xff]   ;;  %v9426_v38 = vld [vmem:[%s10138_s14 + $0x310] sm:$0xff]   ;;  %v2442_v32 = vmax.f32 %v2342_v16, 0.0 }
 0x8c0   :  { %3733 = vmatmul.mubr.bf16.vlgmr.msra.gmra.mxu1 %v2453_v56  ;;  %3781 = vmatmul.mubr.bf16.vlgmr.msra.gmra.mxu0 %v2455_v59  ;;  %v2344_v45 = vpop.f32.mrf.mxu1  ;;  %v2395_v46 = vpop.f32.mrf.mxu0  ;;  %v9422_v56 = vld [vmem:[%s10138_s14 + $0x318] sm:$0xff]   ;;  %v9427_v51 = vld [vmem:[%s10138_s14 + $0x390] sm:$0xff]  }
 0x8c1   :  { %3740 = vmatprep.mubr.bf16.mxu1 %v2470_v7  ;;  %3788 = vmatprep.mubr.bf16.mxu0 %v2472_v8  ;;  %v9423_v59 = vld [vmem:[%s10138_s14 + $0x398] sm:$0xff]   ;;  %v1794_v7 = vrot.slane %v10450_v17, %v10430_v3  ;;  %v1802_v8 = vrot.slane %v10450_v17, %v10433_v37  ;;  %v9432_v45 = vld [vmem:[%s10138_s14 + $0x340] sm:$0xff]   ;;  %v2393_v17 = vadd.f32 %v10523_v55, %v10531_v49 }
 0x8c2   :  { %8505 = vmatpush3.bf16.msra.mxu1 %v9406_v5  ;;  %8533 = vmatpush3.bf16.msra.mxu0 %v9407_v6  ;;  %v9428_v5 = vld [vmem:[%s10138_s14 + $0x348] sm:$0xff]   ;;  %v9433_v46 = vld [vmem:[%s10138_s14 + $0x3c0] sm:$0xff]   ;;  %v2474_v58 = vpack.c.bf16 %v2442_v32, %v2442_v32 }
 0x8c3   :  { %8506 = vmatprep.subr.bf16.mxu1 %v9408_v21  ;;  %8534 = vmatprep.subr.bf16.mxu0 %v9409_v4  ;;  %v9429_v6 = vld [vmem:[%s10138_s14 + $0x3c8] sm:$0xff]   ;;  %v2334_v57 = vadd.f32 %v10503_v35, %v1794_v7  ;;  %v2385_v4 = vadd.f32 %v10505_v23, %v1802_v8  ;;  %v2330_v62 = vadd.f32 %v10490_v15, %v1794_v7  ;;  %v2444_v27 = vmax.f32 %v2393_v17, 0.0 }
 0x8c4   :  { %v9431_v21 = vld [vmem:[%s10138_s14 + $0x388] sm:$0xff]   ;;  %v2381_v35 = vadd.f32 %v10492_v9, %v1802_v8  ;;  %v2340_v55 = vadd.f32 %v10515_v50, %v1794_v7  ;;  %v2391_v9 = vadd.f32 %v10517_v34, %v1802_v8 }
 0x8c5   :  { %v2425_v12 = vmax.f32 %v2334_v57, 0.0  ;;  %v2427_v23 = vmax.f32 %v2385_v4, 0.0  ;;  %v2476_v49 = vpack.c.bf16 %v2444_v27, %v2444_v27 }
 0x8c6   :  { %8507 = vmatpush3.bf16.msra.mxu1 %v9410_v29  ;;  %8535 = vmatpush3.bf16.msra.mxu0 %v9411_v54  ;;  %v9435_v29 = vld [vmem:[%s10138_s14 + $0x380] sm:$0xff]   ;;  %v2409_v54 = vmax.f32 %v2330_v62, 0.0  ;;  %v2411_v15 = vmax.f32 %v2381_v35, 0.0  ;;  %v2443_v33 = vmax.f32 %v2391_v9, 0.0  ;;  %s9709_s14 = smov 17  }
 0x8c7   :  { %8508 = vmatprep.subr.bf16.mxu1 %v9412_v40  ;;  %8536 = vmatprep.subr.bf16.mxu0 %v9413_v19  ;;  %v2441_v19 = vmax.f32 %v2340_v55, 0.0  ;;  %s7760_s21 = sld [smem:[%s11432_s0 + %s9709_s14]]   ;;  %s9714_s14 = smov 23  }
 0x8c8   :  { %3741 = vmatmul.mubr.bf16.gmra.mxu1 %v2469_v41  ;;  %3789 = vmatmul.mubr.bf16.gmra.mxu0 %v2471_v25  ;;  %v2457_v40 = vpack.c.bf16 %v2425_v12, %v2409_v54  ;;  %v2459_v44 = vpack.c.bf16 %v2427_v23, %v2411_v15  ;;  %v2475_v41 = vpack.c.bf16 %v2443_v33, %v2443_v33 }
 0x8c9   :  { %3828 = vmatprep.mubr.bf16.mxu1 %v2458_v47  ;;  %3876 = vmatprep.mubr.bf16.mxu0 %v2460_v48  ;;  %v2473_v20 = vpack.c.bf16 %v2441_v19, %v2441_v19 }
 0x8ca   :  { %8509 = vmatpush3.bf16.msra.mxu1 %v9414_v42  ;;  %8537 = vmatpush3.bf16.msra.mxu0 %v9415_v43 }
 0x8cb   :  { %8510 = vmatprep.subr.bf16.mxu1 %v9416_v13  ;;  %8538 = vmatprep.subr.bf16.mxu0 %v9417_v22 }
 0x8cd   :  { %v7887_v25 = vld [vmem:[%s7760_s21] ss:$0 sm:$0xff]  ;;  %s7766_s21 = sld [smem:[%s11432_s0 + %s9714_s14]]   ;;  %s9729_s14 = smov 36  }
 0x8ce   :  { %8511 = vmatpush3.bf16.msra.mxu1 %v9418_v52  ;;  %8539 = vmatpush3.bf16.msra.mxu0 %v9419_v11 }
 0x8cf   :  { %8512 = vmatprep.subr.bf16.mxu1 %v9420_v39  ;;  %8540 = vmatprep.subr.bf16.mxu0 %v9421_v18 }
 0x8d2   :  { %8513 = vmatpush3.bf16.msra.mxu1 %v9422_v56  ;;  %8541 = vmatpush3.bf16.msra.mxu0 %v9423_v59 }
 0x8d3   :  { %8514 = vmatprep.subr.bf16.mxu1 %v9424_v60  ;;  %8542 = vmatprep.subr.bf16.mxu0 %v9425_v53 }
 0x8d6   :  { %8515 = vmatpush3.bf16.msra.mxu1 %v9426_v38  ;;  %8543 = vmatpush3.bf16.msra.mxu0 %v9427_v51 }
 0x8d7   :  { %8516 = vmatprep.subr.bf16.mxu1 %v9428_v5  ;;  %8544 = vmatprep.subr.bf16.mxu0 %v9429_v6 }
 0x8da   :  { %8517 = vmatpush3.bf16.msra.mxu1 %v9430_v10  ;;  %8545 = vmatpush3.bf16.msra.mxu0 %v9431_v21 }
 0x8db   :  { %8518 = vmatprep.subr.bf16.mxu1 %v9432_v45  ;;  %8546 = vmatprep.subr.bf16.mxu0 %v9433_v46 }
 0x8de   :  { %8519 = vmatpush3.bf16.msra.mxu1 %v9434_v26  ;;  %8547 = vmatpush3.bf16.msra.mxu0 %v9435_v29 }
 0x8df   :  { %9067 = vmatprep.subr.mxu1 %v9687_v0  ;;  %9084 = vmatprep.subr.mxu0 %v9687_v0 }
 0x8e1   :  { %3829 = vmatmul.mubr.bf16.vlgmr.msra.gmra.mxu1 %v2457_v40  ;;  %3877 = vmatmul.mubr.bf16.vlgmr.msra.gmra.mxu0 %v2459_v44 }
 0x8e2   :  { %3836 = vmatprep.mubr.bf16.mxu1 %v2474_v58  ;;  %3884 = vmatprep.mubr.bf16.mxu0 %v2476_v49 }
 0x8e9   :  { %3837 = vmatmul.mubr.bf16.gmra.mxu1 %v2473_v20  ;;  %3885 = vmatmul.mubr.bf16.gmra.mxu0 %v2475_v41 }
 0x8ea   :  { %9075 = vmatprep.mubr.msk.f32.mxu1 %vm9689_vm0, %v9687_v0  ;;  %9092 = vmatprep.mubr.msk.f32.mxu0 %vm9689_vm0, %v9687_v0 }
 0x91c   :  { %v8352_v50 = vpop.f32.mrf.mxu1  ;;  %v8380_v34 = vpop.f32.mrf.mxu0 }
 0x91e   :  { %v8353_v42 = vpop.f32.mrf.mxu1  ;;  %v8381_v43 = vpop.f32.mrf.mxu0 }
 0x91f   :  { %v8354_v47 = vadd.f32 %v8353_v42, %v8352_v50  ;;  %v8382_v48 = vadd.f32 %v8381_v43, %v8380_v34 }
 0x920   :  { %v8355_v13 = vpop.f32.mrf.mxu1  ;;  %v8383_v22 = vpop.f32.mrf.mxu0 }
 0x921   :  { %v3543_v52 = vadd.f32 %v8354_v47, %v7887_v25 }
 0x922   :  { %v8356_v11 = vpop.f32.mrf.mxu1  ;;  %v8384_v39 = vpop.f32.mrf.mxu0 }
 0x923   :  { %v3591_v18 = vadd.f32 %v8382_v48, %v3543_v52  ;;  %v8357_v56 = vadd.f32 %v8356_v11, %v8355_v13  ;;  %v8385_v60 = vadd.f32 %v8384_v39, %v8383_v22 }
 0x925   :  { %v3546_v59 = vadd.f32 %v8357_v56, %v7887_v25 }
 0x927   :  { %v3594_v53 = vadd.f32 %v8385_v60, %v3546_v59 }
 0x954   :  { %v8358_v38 = vpop.f32.mrf.mxu1  ;;  %v8386_v51 = vpop.f32.mrf.mxu0 }
 0x956   :  { %v8359_v5 = vpop.f32.mrf.mxu1  ;;  %v8387_v6 = vpop.f32.mrf.mxu0 }
 0x957   :  { %v8360_v7 = vadd.f32 %v8359_v5, %v8358_v38  ;;  %v8388_v8 = vadd.f32 %v8387_v6, %v8386_v51 }
 0x958   :  { %v8361_v57 = vpop.f32.mrf.mxu1  ;;  %v8389_v10 = vpop.f32.mrf.mxu0 }
 0x959   :  { %v3551_v21 = vadd.f32 %v8360_v7, %v7887_v25 }
 0x95a   :  { %v8362_v4 = vpop.f32.mrf.mxu1  ;;  %v8390_v45 = vpop.f32.mrf.mxu0 }
 0x95b   :  { %v3599_v46 = vadd.f32 %v8388_v8, %v3551_v21 }
 0x960   :  { %v8408_v62 = vpop.f32.mrf.mxu1  ;;  %v8436_v16 = vpop.f32.mrf.mxu0 }
 0x962   :  { %v8409_v17 = vpop.f32.mrf.mxu1  ;;  %v8437_v35 = vpop.f32.mrf.mxu0 }
 0x963   :  { %v8410_v11 = vadd.f32 %v8409_v17, %v8408_v62  ;;  %v8438_v59 = vadd.f32 %v8437_v35, %v8436_v16 }
 0x964   :  { %v8411_v12 = vpop.f32.mrf.mxu1  ;;  %v8439_v26 = vpop.f32.mrf.mxu0 }
 0x965   :  { %v3639_v39 = vadd.f32 %v8410_v11, %v3591_v18 }
 0x966   :  { %v8412_v29 = vpop.f32.mrf.mxu1  ;;  %v8440_v23 = vpop.f32.mrf.mxu0 }
 0x967   :  { %v8413_v56 = vadd.f32 %v8412_v29, %v8411_v12  ;;  %v3687_v38 = vadd.f32 %v8438_v59, %v3639_v39  ;;  %v8441_v6 = vadd.f32 %v8440_v23, %v8439_v26 }
 0x968   :  { %v8414_v54 = vpop.f32.mrf.mxu1  ;;  %v8442_v32 = vpop.f32.mrf.mxu0 }
 0x969   :  { %v3642_v51 = vadd.f32 %v8413_v56, %v3594_v53 }
 0x96a   :  { %v8415_v27 = vpop.f32.mrf.mxu1  ;;  %v8443_v15 = vpop.f32.mrf.mxu0 }
 0x96b   :  { %v8416_v5 = vadd.f32 %v8415_v27, %v8414_v54  ;;  %v3690_v21 = vadd.f32 %v8441_v6, %v3642_v51 }
 0x96c   :  { %v8417_v40 = vpop.f32.mrf.mxu1  ;;  %v8445_v44 = vpop.f32.mrf.mxu0 }
 0x96d   :  { %v3647_v4 = vadd.f32 %v8416_v5, %v3599_v46  ;;  %v8444_v40 = vadd.f32 %v8443_v15, %v8442_v32 }
 0x96e   :  { %v8418_v55 = vpop.f32.mrf.mxu1  ;;  %v8446_v9 = vpop.f32.mrf.mxu0 }
 0x96f   :  { %v3695_v12 = vadd.f32 %v8444_v40, %v3647_v4 }
 0x980   :  { %v8464_v58 = vpop.f32.mrf.mxu1  ;;  %v8492_v49 = vpop.f32.mrf.mxu0 }
 0x982   :  { %v8465_v19 = vpop.f32.mrf.mxu1  ;;  %v8493_v33 = vpop.f32.mrf.mxu0 }
 0x983   :  { %v8466_v60 = vadd.f32 %v8465_v19, %v8464_v58  ;;  %v8494_v45 = vadd.f32 %v8493_v33, %v8492_v49 }
 0x984   :  { %v8467_v20 = vpop.f32.mrf.mxu1  ;;  %v8495_v41 = vpop.f32.mrf.mxu0 }
 0x985   :  { %v3735_v7 = vadd.f32 %v8466_v60, %v3687_v38 }
 0x986   :  { %v8468_v50 = vpop.f32.mrf.mxu1  ;;  %v8496_v34 = vpop.f32.mrf.mxu0 }
 0x987   :  { %v8469_v8 = vadd.f32 %v8468_v50, %v8467_v20  ;;  %v3783_v9 = vadd.f32 %v8494_v45, %v3735_v7  ;;  %v8497_v53 = vadd.f32 %v8496_v34, %v8495_v41 }
 0x988   :  { %v8470_v25 = vpop.f32.mrf.mxu1  ;;  %v8498_v42 = vpop.f32.mrf.mxu0 }
 0x989   :  { %v3738_v62 = vadd.f32 %v8469_v8, %v3690_v21 }
 0x98a   :  { %v8471_v43 = vpop.f32.mrf.mxu1  ;;  %v8499_v47 = vpop.f32.mrf.mxu0 }
 0x98b   :  { %v8472_v18 = vadd.f32 %v8471_v43, %v8470_v25  ;;  %v3786_v27 = vadd.f32 %v8497_v53, %v3738_v62  ;;  %v8500_v15 = vadd.f32 %v8499_v47, %v8498_v42  ;;  %v4057_v62 = vld [vmem:[%s7765_s29 + $0x18] sm:$0xff]  ;;  %v4054_v53 = vld [vmem:[%s7765_s29] sm:$0xff] }
 0x98c   :  { %v8473_v48 = vpop.f32.mrf.mxu1  ;;  %v8501_v13 = vpop.f32.mrf.mxu0  ;;  %9085 = vmatpush3.msra.mxu0 %v4057_v62 }
 0x98d   :  { %v3743_v58 = vadd.f32 %v8472_v18, %v3695_v12  ;;  %v3956_v18 = vld [vmem:[%s7763_s25 + $0x10] sm:$0xff]  ;;  %9086 = vmatprep.subr.mxu0 %v9687_v0  ;;  %v3954_v12 = vld [vmem:[%s7763_s25] sm:$0xff] }
 0x98e   :  { %v8474_v22 = vpop.f32.mrf.mxu1  ;;  %v8502_v52 = vpop.f32.mrf.mxu0 }
 0x98f   :  { %v3791_v48 = vadd.f32 %v8500_v15, %v3743_v58  ;;  %v8016_v15 = vld [vmem:[%s7761_s4] ss:$0 sm:$0xff]  ;;  %s9727_s4 = smov 2  }
 0x990   :  { %s7745_s9 = sld [smem:[%s11432_s0 + %s9727_s4]]  }
 0x9a1   :  { %v8520_v57 = vpop.f32.mrf.mxu1  ;;  %v8548_v10 = vpop.f32.mrf.mxu0 }
 0x9a3   :  { %v8521_v44 = vpop.f32.mrf.mxu1  ;;  %v8549_v55 = vpop.f32.mrf.mxu0 }
 0x9a4   :  { %v8522_v17 = vadd.f32 %v8521_v44, %v8520_v57  ;;  %v8550_v26 = vadd.f32 %v8549_v55, %v8548_v10 }
 0x9a5   :  { %v8523_v16 = vpop.f32.mrf.mxu1  ;;  %v8551_v35 = vpop.f32.mrf.mxu0 }
 0x9a6   :  { %v3831_v29 = vadd.f32 %v8522_v17, %v3783_v9  ;;  %v3957_v9 = vld [vmem:[%s7763_s25 + $0x18] sm:$0xff]  ;;  %v4056_v17 = vld [vmem:[%s7765_s29 + $0x10] sm:$0xff] }
 0x9a7   :  { %v8524_v23 = vpop.f32.mrf.mxu1  ;;  %v8552_v54 = vpop.f32.mrf.mxu0  ;;  %9068 = vmatpush3.msra.mxu1 %v3957_v9  ;;  %9087 = vmatpush3.msra.mxu0 %v4056_v17 }
 0x9a8   :  { %v3879_v19 = vadd.f32 %v8550_v26, %v3831_v29  ;;  %v8525_v46 = vadd.f32 %v8524_v23, %v8523_v16  ;;  %v8553_v20 = vadd.f32 %v8552_v54, %v8551_v35  ;;  %9069 = vmatprep.subr.mxu1 %v9687_v0  ;;  %v3955_v16 = vld [vmem:[%s7763_s25 + $0x8] sm:$0xff]  ;;  %9088 = vmatprep.subr.mxu0 %v9687_v0  ;;  %s7764_s25 = sld [smem:[%s11432_s0 + %s9715_s22]]   ;;  %s9730_s22 = smov 38  }
 0x9a9   :  { %v8526_v49 = vpop.f32.mrf.mxu1  ;;  %v8554_v32 = vpop.f32.mrf.mxu0  ;;  %9070 = vmatpush3.msra.mxu1 %v3956_v18  ;;  %v4055_v35 = vld [vmem:[%s7765_s29 + $0x8] sm:$0xff]  ;;  %s7768_s29 = sld [smem:[%s11432_s0 + %s9716_s26]]  }
 0x9aa   :  { %v3834_v33 = vadd.f32 %v8525_v46, %v3786_v27  ;;  %v3892_v50 = vadd.f32 %v3879_v19, %v10227_v63  ;;  %9071 = vmatprep.subr.mxu1 %v9687_v0  ;;  %9089 = vmatpush3.msra.mxu0 %v4055_v35 }
 0x9ab   :  { %v8527_v25 = vpop.f32.mrf.mxu1  ;;  %v8555_v43 = vpop.f32.mrf.mxu0  ;;  %9072 = vmatpush3.msra.mxu1 %v3955_v16  ;;  %9090 = vmatprep.subr.mxu0 %v9687_v0 }
 0x9ac   :  { %v3882_v13 = vadd.f32 %v8553_v20, %v3834_v33  ;;  %v8528_v41 = vadd.f32 %v8527_v25, %v8526_v49  ;;  %v3897_v34 = vsel %vm271_vm2, %v3892_v50, 0.0  ;;  %v8556_v39 = vadd.f32 %v8555_v43, %v8554_v32  ;;  %9073 = vmatprep.subr.mxu1 %v9687_v0  ;;  %9091 = vmatpush3.msra.mxu0 %v4054_v53  ;;  %v8017_v20 = vld [vmem:[%s7762_s12] ss:$0 sm:$0xff]  ;;  %s9728_s12 = smov 37  }
 0x9ad   :  { %v8529_v22 = vpop.f32.mrf.mxu1  ;;  %v8557_v52 = vpop.f32.mrf.mxu0  ;;  %3898 = vadd.xlane.f32.xlu1 %v3897_v34  ;;  %9074 = vmatpush3.msra.mxu1 %v3954_v12 }
 0x9ae   :  { %v3839_v11 = vadd.f32 %v8528_v41, %v3791_v48  ;;  %v3893_v56 = vadd.f32 %v3882_v13, %v10229_v1  ;;  %9101 = vmatprep.subr.mxu1 %v9687_v0  ;;  %9118 = vmatprep.subr.mxu0 %v9687_v0  ;;  %v4148_v13 = vld [vmem:[%s10637_s16 + $0x18] sm:$0xff] }
 0x9af   :  { %v8530_v59 = vpop.f32.mrf.mxu1  ;;  %v8558_v42 = vpop.f32.mrf.mxu0  ;;  %v8026_v17 = vld [vmem:[%s7768_s29] ss:$0 sm:$0xff] }
 0x9b0   :  { %v3887_v47 = vadd.f32 %v8556_v39, %v3839_v11  ;;  %v3900_v60 = vsel %vm271_vm2, %v3893_v56, 0.0  ;;  %v4147_v11 = vld [vmem:[%s10637_s16 + $0x10] sm:$0xff]  ;;  %v4146_v59 = vld [vmem:[%s10637_s16 + $0x8] sm:$0xff]  ;;  %v4145_v42 = vld [vmem:[%s10637_s16] sm:$0xff]  ;;  %s7780_s16 = sld [smem:[%s11432_s0 + %s9728_s12]]  }
 0x9b1   :  { %3901 = vadd.xlane.f32.xlu0 %v3900_v60 }
 0x9b2   :  { %v3894_v63 = vadd.f32 %v3887_v47, %v10249_v24 }
 0x9b4   :  { %v3903_v38 = vsel %vm271_vm2, %v3894_v63, 0.0 }
 0x9b5   :  { %3904 = vadd.xlane.f32.xlu1 %v3903_v38 }
 0xa36   :  { %v3899_v51 = vpop.xlane.xlu1 %3898 }
 0xa37   :  { %v3906_v5 = vmul.f32 0.03125, %v3899_v51  ;;  %v8022_v51 = vld [vmem:[%s7766_s21] ss:$0 sm:$0xff]  ;;  %s7779_s21 = sld [smem:[%s11432_s0 + %s9729_s14]]  }
 0xa39   :  { %v10598_v6 = vsub.f32 %v3892_v50, %v3906_v5 }
 0xa3a   :  { %v3902_v7 = vpop.xlane.xlu0 %3901 }
 0xa3b   :  { %v3907_v8 = vmul.f32 0.03125, %v3902_v7  ;;  %v3912_v1 = vmul.f32 %v10598_v6, %v10598_v6 }
 0xa3d   :  { %v10602_v57 = vsub.f32 %v3893_v56, %v3907_v8  ;;  %v3915_v10 = vsel %vm271_vm2, %v3912_v1, 0.0 }
 0xa3e   :  { %3916 = vadd.xlane.f32.xlu0 %v3915_v10  ;;  %v3905_v21 = vpop.xlane.xlu1 %3904 }
 0xa3f   :  { %v3908_v4 = vmul.f32 0.03125, %v3905_v21  ;;  %v3913_v24 = vmul.f32 %v10602_v57, %v10602_v57 }
 0xa41   :  { %v10607_v45 = vsub.f32 %v3894_v63, %v3908_v4  ;;  %v3918_v40 = vsel %vm271_vm2, %v3913_v24, 0.0 }
 0xa42   :  { %3919 = vadd.xlane.f32.xlu1 %v3918_v40 }
 0xa43   :  { %v3914_v44 = vmul.f32 %v10607_v45, %v10607_v45 }
 0xa45   :  { %v3921_v55 = vsel %vm271_vm2, %v3914_v44, 0.0  ;;  %v8018_v44 = vld [vmem:[%s7764_s25] ss:$0 sm:$0xff]  ;;  %s7781_s25 = sld [smem:[%s11432_s0 + %s9730_s22]]  }
 0xa46   :  { %3922 = vadd.xlane.f32.xlu0 %v3921_v55 }
 0xac7   :  { %v3917_v29 = vpop.xlane.xlu0 %3916 }
 0xac8   :  { %v3924_v26 = vmul.f32 0.03125, %v3917_v29 }
 0xaca   :  { %v3927_v23 = vadd.f32 1e-05, %v3924_v26 }
 0xacb   :  { %v3920_v54 = vpop.xlane.xlu1 %3919 }
 0xacc   :  { %9618 = vrsqrt.f32 %v3927_v23  ;;  %v3925_v27 = vmul.f32 0.03125, %v3920_v54 }
 0xace   :  { %v3928_v58 = vadd.f32 1e-05, %v3925_v27 }
 0xacf   :  { %v3923_v19 = vpop.xlane.xlu0 %3922 }
 0xad0   :  { %9620 = vrsqrt.f32 %v3928_v58  ;;  %v3926_v46 = vmul.f32 0.03125, %v3923_v19 }
 0xad2   :  { %v3929_v49 = vadd.f32 1e-05, %v3926_v46 }
 0xad4   :  { %9622 = vrsqrt.f32 %v3929_v49 }
 0xad9   :  { %v9619_v32 = vpop.eup %9618 }
 0xada   :  { %v3933_v33 = vmul.f32 %v9619_v32, %v10598_v6 }
 0xadc   :  { %v3942_v50 = vmul.f32 %v8016_v15, %v3933_v33 }
 0xadd   :  { %v9621_v25 = vpop.eup %9620 }
 0xade   :  { %v10640_v43 = vadd.f32 %v8017_v20, %v3942_v50  ;;  %v3934_v48 = vmul.f32 %v9621_v25, %v10602_v57 }
 0xae0   :  { %9076 = vmatmul.mubr.msk.f32.vlgmr.msra.gmra.mxu1 %vm271_vm2, %v10640_v43  ;;  %9093 = vmatmul.mubr.msk.f32.vlgmr.msra.gmra.mxu0 %vm271_vm2, %v10640_v43  ;;  %v3943_v41 = vmul.f32 %v8016_v15, %v3934_v48 }
 0xae1   :  { %v9623_v34 = vpop.eup %9622  ;;  %9078 = vmatprep.mubr.msk.f32.mxu1 %vm9689_vm0, %v9687_v0  ;;  %9095 = vmatprep.mubr.msk.f32.mxu0 %vm9689_vm0, %v9687_v0 }
 0xae2   :  { %v10652_v22 = vadd.f32 %v8017_v20, %v3943_v41  ;;  %9102 = vmatpush3.msra.mxu1 %v4148_v13  ;;  %v3935_v52 = vmul.f32 %v9623_v34, %v10607_v45 }
 0xae3   :  { %9103 = vmatprep.subr.mxu1 %v9687_v0 }
 0xae4   :  { %9079 = vmatmul.mubr.msk.f32.gmra.mxu1 %vm271_vm2, %v10652_v22  ;;  %9096 = vmatmul.mubr.msk.f32.gmra.mxu0 %vm271_vm2, %v10652_v22  ;;  %v3944_v39 = vmul.f32 %v8016_v15, %v3935_v52 }
 0xae5   :  { %9081 = vmatprep.mubr.msk.f32.mxu1 %vm9689_vm0, %v9687_v0  ;;  %9098 = vmatprep.mubr.msk.f32.mxu0 %vm9689_vm0, %v9687_v0 }
 0xae6   :  { %9104 = vmatpush3.msra.mxu1 %v4147_v11  ;;  %v10665_v56 = vadd.f32 %v8017_v20, %v3944_v39 }
 0xae7   :  { %9105 = vmatprep.subr.mxu1 %v9687_v0 }
 0xae8   :  { %9082 = vmatmul.mubr.msk.f32.gmra.mxu1 %vm271_vm2, %v10665_v56  ;;  %9099 = vmatmul.mubr.msk.f32.gmra.mxu0 %vm271_vm2, %v10665_v56 }
 0xae9   :  { %9106 = vmatpush3.msra.mxu1 %v4146_v59  ;;  %9109 = vmatprep.mubr.msk.f32.mxu1 %vm9689_vm0, %v9687_v0 }
 0xaea   :  { %9107 = vmatprep.subr.mxu1 %v9687_v0  ;;  %9124 = vmatprep.mubr.msk.f32.mxu0 %vm9689_vm0, %v9687_v0 }
 0xaeb   :  { %9108 = vmatpush3.msra.mxu1 %v4145_v42 }
 0xaec   :  { %9110 = vmatmul.mubr.msk.f32.vlgmr.msra.gmra.mxu1 %vm271_vm2, %v10640_v43  ;;  %9133 = vmatprep.subr.mxu1 %v9687_v0 }
 0xaed   :  { %9112 = vmatprep.mubr.msk.f32.mxu1 %vm9689_vm0, %v9687_v0 }
 0xaf0   :  { %9113 = vmatmul.mubr.msk.f32.gmra.mxu1 %vm271_vm2, %v10652_v22 }
 0xaf1   :  { %9115 = vmatprep.mubr.msk.f32.mxu1 %vm9689_vm0, %v9687_v0 }
 0xaf4   :  { %9116 = vmatmul.mubr.msk.f32.gmra.mxu1 %vm271_vm2, %v10665_v56 }
 0xaf5   :  { %9139 = vmatprep.mubr.msk.f32.mxu1 %vm9689_vm0, %v9687_v0 }
 0xba0   :  { %v4040_v47 = vpop.f32.mrf.mxu1  ;;  %v4131_v60 = vpop.f32.mrf.mxu0 }
 0xba1   :  { %v4132_v40 = vadd.f32 %v8022_v51, %v4131_v60  ;;  %v4041_v62 = vadd.f32 %v8018_v44, %v4040_v47  ;;  %v9684_v47 = vld [vmem:[%s9949_s10] sm:$0xff] }
 0xba2   :  { %v9077_v63 = vpop.f32.mrf.mxu1  ;;  %v9094_v38 = vpop.f32.mrf.mxu0 }
 0xba4   :  { %v4045_v5 = vpop.f32.mrf.mxu1  ;;  %v4136_v6 = vpop.f32.mrf.mxu0 }
 0xba5   :  { %v4137_v7 = vadd.f32 %v8022_v51, %v4136_v6  ;;  %v4046_v12 = vadd.f32 %v8018_v44, %v4045_v5  ;;  %v9685_v6 = vld [vmem:[%s9949_s10 + $0x8] sm:$0xff] }
 0xba6   :  { %v9080_v8 = vpop.f32.mrf.mxu1  ;;  %v9097_v1 = vpop.f32.mrf.mxu0 }
 0xba7   :  { %4470 = vrot.lane.b32.xlu0 %v4137_v7, %s9695_s30 }
 0xba8   :  { %v4050_v57 = vpop.f32.mrf.mxu1  ;;  %v4141_v10 = vpop.f32.mrf.mxu0 }
 0xba9   :  { %v4142_v21 = vadd.f32 %v8022_v51, %v4141_v10  ;;  %v4051_v26 = vadd.f32 %v8018_v44, %v4050_v57 }
 0xbaa   :  { %v9083_v4 = vpop.f32.mrf.mxu1  ;;  %v9100_v24 = vpop.f32.mrf.mxu0 }
 0xbab   :  { %4716 = vrot.lane.b32.xlu0 %v4142_v21, %s9697_s5  ;;  %4472 = vrot.lane.b32.xlu1 %v4142_v21, %s9695_s30 }
 0xbac   :  { %9119 = vmatpush3.xpose.msk.msra.mxu0 %vm543_vm3, %v4142_v21  ;;  %v4222_v45 = vpop.f32.mrf.mxu1 }
 0xbad   :  { %9120 = vmatprep.subr.mxu0 %v9687_v0  ;;  %v10726_v23 = vadd.f32 %v8026_v17, %v4222_v45 }
 0xbae   :  { %v9111_v55 = vpop.f32.mrf.mxu1 }
 0xbaf   :  { %4714 = vrot.lane.b32.xlu0 %v4137_v7, %s9697_s5  ;;  %4468 = vrot.lane.b32.xlu1 %v4132_v40, %s9695_s30 }
 0xbb0   :  { %9121 = vmatpush3.xpose.msk.msra.mxu0 %vm543_vm3, %v4137_v7  ;;  %v4227_v9 = vpop.f32.mrf.mxu1 }
 0xbb1   :  { %9122 = vmatprep.subr.mxu0 %v9687_v0  ;;  %v10718_v29 = vadd.f32 %v8026_v17, %v4227_v9 }
 0xbb2   :  { %v9114_v18 = vpop.f32.mrf.mxu1 }
 0xbb3   :  { %4712 = vrot.lane.b32.xlu0 %v4132_v40, %s9697_s5  ;;  %4462 = vrot.lane.b32.xlu1 %v4041_v62, %s9695_s30 }
 0xbb4   :  { %9123 = vmatpush3.xpose.msk.msra.mxu0 %vm543_vm3, %v4132_v40  ;;  %v4232_v16 = vpop.f32.mrf.mxu1 }
 0xbb5   :  { %v10713_v35 = vadd.f32 %v8026_v17, %v4232_v16  ;;  %9148 = vmatprep.subr.mxu0 %v9687_v0 }
 0xbb6   :  { %v9117_v53 = vpop.f32.mrf.mxu1 }
 0xbb7   :  { %9125 = vmatmul.mubr.msk.f32.vlgmr.msra.gmra.mxu0 %vm543_vm3, %v4041_v62  ;;  %4957 = vrot.lane.b32.xlu0 %v4142_v21, %s9698_s6  ;;  %v10802_v21 = vld [vmem:[%s9949_s10 + $0x10] sm:$0xff] }
 0xbb8   :  { %4464 = vrot.lane.b32.xlu1 %v4046_v12, %s9695_s30  ;;  %9134 = vmatpush3.msra.mxu1 %v10713_v35 }
 0xbb9   :  { %9135 = vmatprep.subr.mxu1 %v9687_v0  ;;  %9127 = vmatprep.mubr.msk.f32.mxu0 %vm9689_vm0, %v9687_v0 }
 0xbba   :  { %9136 = vmatpush3.msra.mxu1 %v10718_v29 }
 0xbbb   :  { %9128 = vmatmul.mubr.msk.f32.gmra.mxu0 %vm543_vm3, %v4046_v12  ;;  %9137 = vmatprep.subr.mxu1 %v9687_v0 }
 0xbbc   :  { %4955 = vrot.lane.b32.xlu0 %v4137_v7, %s9698_s6  ;;  %4466 = vrot.lane.b32.xlu1 %v4051_v26, %s9695_s30 }
 0xbbd   :  { %9138 = vmatpush3.msra.mxu1 %v10726_v23  ;;  %9130 = vmatprep.mubr.msk.f32.mxu0 %vm9689_vm0, %v9687_v0 }
 0xbbe   :  { %9163 = vmatprep.subr.mxu1 %v9687_v0 }
 0xbbf   :  { %9131 = vmatmul.mubr.msk.f32.gmra.mxu0 %vm543_vm3, %v4051_v26 }
 0xbc0   :  { %4953 = vrot.lane.b32.xlu0 %v4132_v40, %s9698_s6  ;;  %4706 = vrot.lane.b32.xlu1 %v4041_v62, %s9697_s5 }
 0xbc1   :  { %9154 = vmatprep.mubr.msk.f32.mxu0 %vm9689_vm0, %v9687_v0 }
 0xbc4   :  { %4949 = vrot.lane.b32.xlu0 %v4046_v12, %s9698_s6  ;;  %4708 = vrot.lane.b32.xlu1 %v4046_v12, %s9697_s5 }
 0xbc8   :  { %4710 = vrot.lane.b32.xlu1 %v4051_v26, %s9697_s5 }
 0xbcc   :  { %4947 = vrot.lane.b32.xlu1 %v4041_v62, %s9698_s6 }
 0xbd0   :  { %4951 = vrot.lane.b32.xlu1 %v4051_v26, %s9698_s6 }
 0xc19   :  { %v4471_v54 = vpop.permute.xlu0 %4470 }
 0xc1d   :  { %v4473_v27 = vpop.permute.xlu1 %4472  ;;  %v4717_v58 = vpop.permute.xlu0 %4716 }
 0xc1e   :  { %9149 = vmatpush3.xpose.msk.msra.mxu0 %vm543_vm3, %v4473_v27 }
 0xc1f   :  { %9150 = vmatprep.subr.mxu0 %v9687_v0 }
 0xc21   :  { %v4469_v19 = vpop.permute.xlu1 %4468  ;;  %v4715_v46 = vpop.permute.xlu0 %4714 }
 0xc22   :  { %9151 = vmatpush3.xpose.msk.msra.mxu0 %vm543_vm3, %v4471_v54 }
 0xc23   :  { %9152 = vmatprep.subr.mxu0 %v9687_v0 }
 0xc25   :  { %v4463_v49 = vpop.permute.xlu1 %4462  ;;  %v4713_v15 = vpop.permute.xlu0 %4712 }
 0xc26   :  { %9153 = vmatpush3.xpose.msk.msra.mxu0 %vm543_vm3, %v4469_v19 }
 0xc27   :  { %9178 = vmatprep.subr.mxu0 %v9687_v0 }
 0xc29   :  { %9155 = vmatmul.mubr.msk.f32.vlgmr.msra.gmra.mxu0 %vm543_vm3, %v4463_v49  ;;  %v4958_v20 = vpop.permute.xlu0 %4957 }
 0xc2a   :  { %v4465_v32 = vpop.permute.xlu1 %4464  ;;  %9179 = vmatpush3.xpose.msk.msra.mxu0 %vm543_vm3, %v4717_v58  ;;  %9157 = vmatprep.mubr.msk.f32.mxu0 %vm9689_vm0, %v9687_v0 }
 0xc2b   :  { %9180 = vmatprep.subr.mxu0 %v9687_v0 }
 0xc2d   :  { %9158 = vmatmul.mubr.msk.f32.gmra.mxu0 %vm543_vm3, %v4465_v32 }
 0xc2e   :  { %v4467_v33 = vpop.permute.xlu1 %4466  ;;  %9181 = vmatpush3.xpose.msk.msra.mxu0 %vm543_vm3, %v4715_v46  ;;  %9160 = vmatprep.mubr.msk.f32.mxu0 %vm9689_vm0, %v9687_v0  ;;  %v4956_v48 = vpop.permute.xlu0 %4955 }
 0xc2f   :  { %9182 = vmatprep.subr.mxu0 %v9687_v0 }
 0xc31   :  { %9161 = vmatmul.mubr.msk.f32.gmra.mxu0 %vm543_vm3, %v4467_v33 }
 0xc32   :  { %v4707_v50 = vpop.permute.xlu1 %4706  ;;  %9183 = vmatpush3.xpose.msk.msra.mxu0 %vm543_vm3, %v4713_v15  ;;  %9184 = vmatprep.mubr.msk.f32.mxu0 %vm9689_vm0, %v9687_v0  ;;  %v4954_v41 = vpop.permute.xlu0 %4953 }
 0xc33   :  { %9208 = vmatprep.subr.mxu0 %v9687_v0 }
 0xc35   :  { %9185 = vmatmul.mubr.msk.f32.vlgmr.msra.gmra.mxu0 %vm543_vm3, %v4707_v50 }
 0xc36   :  { %v4709_v25 = vpop.permute.xlu1 %4708  ;;  %9209 = vmatpush3.xpose.msk.msra.mxu0 %vm543_vm3, %v4958_v20  ;;  %9187 = vmatprep.mubr.msk.f32.mxu0 %vm9689_vm0, %v9687_v0  ;;  %v4950_v52 = vpop.permute.xlu0 %4949 }
 0xc37   :  { %9210 = vmatprep.subr.mxu0 %v9687_v0 }
 0xc39   :  { %9188 = vmatmul.mubr.msk.f32.gmra.mxu0 %vm543_vm3, %v4709_v25 }
 0xc3a   :  { %v4711_v13 = vpop.permute.xlu1 %4710  ;;  %9211 = vmatpush3.xpose.msk.msra.mxu0 %vm543_vm3, %v4956_v48  ;;  %9190 = vmatprep.mubr.msk.f32.mxu0 %vm9689_vm0, %v9687_v0 }
 0xc3b   :  { %9212 = vmatprep.subr.mxu0 %v9687_v0 }
 0xc3d   :  { %9191 = vmatmul.mubr.msk.f32.gmra.mxu0 %vm543_vm3, %v4711_v13 }
 0xc3e   :  { %9213 = vmatpush3.xpose.msk.msra.mxu0 %vm543_vm3, %v4954_v41  ;;  %9214 = vmatprep.mubr.msk.f32.mxu0 %vm9689_vm0, %v9687_v0  ;;  %v4948_v34 = vpop.permute.xlu1 %4947 }
 0xc3f   :  { %9238 = vmatprep.subr.mxu0 %v9687_v0 }
 0xc41   :  { %9215 = vmatmul.mubr.msk.f32.vlgmr.msra.gmra.mxu0 %vm543_vm3, %v4948_v34 }
 0xc42   :  { %9217 = vmatprep.mubr.msk.f32.mxu0 %vm9689_vm0, %v9687_v0  ;;  %v4952_v11 = vpop.permute.xlu1 %4951 }
 0xc45   :  { %9218 = vmatmul.mubr.msk.f32.gmra.mxu0 %vm543_vm3, %v4950_v52 }
 0xc46   :  { %9220 = vmatprep.mubr.msk.f32.mxu0 %vm9689_vm0, %v9687_v0 }
 0xc49   :  { %9221 = vmatmul.mubr.msk.f32.gmra.mxu0 %vm543_vm3, %v4952_v11 }
 0xc4a   :  { %9246 = vmatprep.mubr.msk.f32.mxu0 %vm9689_vm0, %v9687_v0 }
 0xc77   :  { %v4320_v39 = vpop.f32.mrf.mxu0 }
 0xc78   :  { %v4334_v59 = vmul.f32 0.35355338, %v4320_v39 }
 0xc79   :  { %v9126_v42 = vpop.f32.mrf.mxu0 }
 0xc7a   :  { %v10792_v60 = vadd.f32 %v9684_v47, %v4334_v59 }
 0xc7b   :  { %v4325_v63 = vpop.f32.mrf.mxu0 }
 0xc7c   :  { %v4335_v38 = vmul.f32 0.35355338, %v4325_v63  ;;  %v4340_v51 = vsel %vm170_vm1, %v10792_v60, -inf }
 0xc7d   :  { %4341 = vmax.xlane.f32.xlu0 %v4340_v51  ;;  %v9129_v5 = vpop.f32.mrf.mxu0 }
 0xc7e   :  { %v10797_v7 = vadd.f32 %v9685_v6, %v4335_v38 }
 0xc7f   :  { %v4330_v8 = vpop.f32.mrf.mxu0 }
 0xc80   :  { %v4336_v1 = vmul.f32 0.35355338, %v4330_v8  ;;  %v4343_v57 = vsel %vm170_vm1, %v10797_v7, -inf }
 0xc81   :  { %4344 = vmax.xlane.f32.xlu1 %v4343_v57  ;;  %v9132_v10 = vpop.f32.mrf.mxu0 }
 0xc82   :  { %v4339_v4 = vadd.f32 %v10802_v21, %v4336_v1 }
 0xc84   :  { %v4346_v24 = vsel %vm170_vm1, %v4339_v4, -inf }
 0xc85   :  { %4347 = vmax.xlane.f32.xlu0 %v4346_v24 }
 0xce9   :  { %v4552_v45 = vpop.f32.mrf.mxu0 }
 0xcea   :  { %v4566_v40 = vmul.f32 0.35355338, %v4552_v45 }
 0xceb   :  { %v9156_v44 = vpop.f32.mrf.mxu0 }
 0xcec   :  { %v10806_v55 = vadd.f32 %v9684_v47, %v4566_v40 }
 0xced   :  { %v4557_v9 = vpop.f32.mrf.mxu0 }
 0xcee   :  { %v4567_v62 = vmul.f32 0.35355338, %v4557_v9  ;;  %v4572_v18 = vsel %vm170_vm1, %v10806_v55, -inf }
 0xcef   :  { %4573 = vmax.xlane.f32.xlu0 %v4572_v18  ;;  %v9159_v17 = vpop.f32.mrf.mxu0 }
 0xcf0   :  { %v10810_v16 = vadd.f32 %v9685_v6, %v4567_v62 }
 0xcf1   :  { %v4562_v12 = vpop.f32.mrf.mxu0 }
 0xcf2   :  { %v4568_v53 = vmul.f32 0.35355338, %v4562_v12  ;;  %v4575_v26 = vsel %vm170_vm1, %v10810_v16, -inf }
 0xcf3   :  { %4576 = vmax.xlane.f32.xlu1 %v4575_v26  ;;  %v9162_v54 = vpop.f32.mrf.mxu0 }
 0xcf4   :  { %v10815_v27 = vadd.f32 %v10802_v21, %v4568_v53 }
 0xcf5   :  { %v4796_v58 = vpop.f32.mrf.mxu0 }
 0xcf6   :  { %v4810_v19 = vmul.f32 0.35355338, %v4796_v58  ;;  %v4578_v46 = vsel %vm170_vm1, %v10815_v27, -inf }
 0xcf7   :  { %4579 = vmax.xlane.f32.xlu0 %v4578_v46  ;;  %v9186_v49 = vpop.f32.mrf.mxu0 }
 0xcf8   :  { %v10819_v32 = vadd.f32 %v9684_v47, %v4810_v19 }
 0xcf9   :  { %v4801_v15 = vpop.f32.mrf.mxu0 }
 0xcfa   :  { %v4811_v33 = vmul.f32 0.35355338, %v4801_v15  ;;  %v4816_v20 = vsel %vm170_vm1, %v10819_v32, -inf }
 0xcfb   :  { %4817 = vmax.xlane.f32.xlu1 %v4816_v20  ;;  %v9189_v50 = vpop.f32.mrf.mxu0 }
 0xcfc   :  { %v10823_v25 = vadd.f32 %v9685_v6, %v4811_v33 }
 0xcfd   :  { %v4806_v48 = vpop.f32.mrf.mxu0 }
 0xcfe   :  { %v4812_v13 = vmul.f32 0.35355338, %v4806_v48  ;;  %v4819_v41 = vsel %vm170_vm1, %v10823_v25, -inf }
 0xcff   :  { %4820 = vmax.xlane.f32.xlu0 %v4819_v41  ;;  %v9192_v34 = vpop.f32.mrf.mxu0 }
 0xd00   :  { %v10828_v52 = vadd.f32 %v10802_v21, %v4812_v13 }
 0xd01   :  { %v5037_v11 = vpop.f32.mrf.mxu0 }
 0xd02   :  { %v5051_v39 = vmul.f32 0.35355338, %v5037_v11  ;;  %v4822_v59 = vsel %vm170_vm1, %v10828_v52, -inf }
 0xd03   :  { %4823 = vmax.xlane.f32.xlu1 %v4822_v59  ;;  %v9216_v42 = vpop.f32.mrf.mxu0 }
 0xd04   :  { %v10832_v63 = vadd.f32 %v9684_v47, %v5051_v39 }
 0xd05   :  { %v5042_v38 = vpop.f32.mrf.mxu0 }
 0xd06   :  { %v4342_v51 = vpop.xlane.xlu0 %4341  ;;  %v5052_v5 = vmul.f32 0.35355338, %v5042_v38  ;;  %v5057_v8 = vsel %vm170_vm1, %v10832_v63, -inf }
 0xd07   :  { %v4349_v1 = vsub.f32 %v10792_v60, %v4342_v51  ;;  %5058 = vmax.xlane.f32.xlu0 %v5057_v8  ;;  %v9219_v57 = vpop.f32.mrf.mxu0 }
 0xd08   :  { %v10837_v10 = vadd.f32 %v9685_v6, %v5052_v5 }
 0xd09   :  { %v4352_v24 = vmul.f32 1.442695, %v4349_v1  ;;  %v5047_v45 = vpop.f32.mrf.mxu0 }
 0xd0a   :  { %v5060_v40 = vsel %vm170_vm1, %v10837_v10, -inf  ;;  %v4345_v12 = vpop.xlane.xlu1 %4344 }
 0xd0b   :  { %9624 = vpow2.f32 %v4352_v24  ;;  %5061 = vmax.xlane.f32.xlu1 %v5060_v40  ;;  %v9222_v47 = vpop.f32.mrf.mxu0  ;;  %v4350_v53 = vsub.f32 %v10797_v7, %v4345_v12 }
 0xd0d   :  { %v4354_v26 = vmul.f32 1.442695, %v4350_v53 }
 0xd0e   :  { %v4348_v44 = vpop.xlane.xlu0 %4347 }
 0xd0f   :  { %v4351_v9 = vsub.f32 %v4339_v4, %v4348_v44  ;;  %v5053_v4 = vmul.f32 0.35355338, %v5047_v45 }
 0xd11   :  { %v4356_v62 = vmul.f32 1.442695, %v4351_v9  ;;  %v10850_v54 = vadd.f32 %v10802_v21, %v5053_v4 }
 0xd13   :  { %9626 = vpow2.f32 %v4356_v62  ;;  %v5063_v58 = vsel %vm170_vm1, %v10850_v54, -inf }
 0xd14   :  { %9628 = vpow2.f32 %v4354_v26 }
 0xd18   :  { %v9625_v18 = vpop.eup %9624 }
 0xd19   :  { %v4358_v17 = vsel %vm170_vm1, %v9625_v18, 0.0 }
 0xd1a   :  { %4359 = vadd.xlane.f32.xlu1 %v4358_v17 }
 0xd1d   :  { %4612 = vrot.lane.b32.xlu0 %v10713_v35, %s9695_s30 }
 0xd20   :  { %v10844_v60 = vpop.eup %9626 }
 0xd21   :  { %v4364_v6 = vsel %vm170_vm1, %v10844_v60, 0.0  ;;  %v10854_v19 = vpop.eup %9628 }
 0xd22   :  { %4365 = vadd.xlane.f32.xlu1 %v4364_v6  ;;  %v4361_v46 = vsel %vm170_vm1, %v10854_v19, 0.0 }
 0xd3c   :  { %5064 = vmax.xlane.f32.xlu0 %v5063_v58 }
 0xd40   :  { %4362 = vadd.xlane.f32.xlu0 %v4361_v46 }
 0xd78   :  { %v4574_v49 = vpop.xlane.xlu0 %4573 }
 0xd79   :  { %v4581_v15 = vsub.f32 %v10806_v55, %v4574_v49 }
 0xd7b   :  { %v4584_v7 = vmul.f32 1.442695, %v4581_v15 }
 0xd7c   :  { %v4577_v33 = vpop.xlane.xlu1 %4576 }
 0xd7d   :  { %9630 = vpow2.f32 %v4584_v7  ;;  %v4582_v20 = vsub.f32 %v10810_v16, %v4577_v33 }
 0xd7f   :  { %v4586_v21 = vmul.f32 1.442695, %v4582_v20 }
 0xd80   :  { %v4580_v50 = vpop.xlane.xlu0 %4579 }
 0xd81   :  { %9632 = vpow2.f32 %v4586_v21  ;;  %v4583_v48 = vsub.f32 %v10815_v27, %v4580_v50 }
 0xd83   :  { %v4588_v13 = vmul.f32 1.442695, %v4583_v48 }
 0xd84   :  { %v4818_v41 = vpop.xlane.xlu1 %4817 }
 0xd85   :  { %9634 = vpow2.f32 %v4588_v13  ;;  %v4825_v34 = vsub.f32 %v10819_v32, %v4818_v41 }
 0xd87   :  { %v4828_v11 = vmul.f32 1.442695, %v4825_v34 }
 0xd88   :  { %v4821_v1 = vpop.xlane.xlu0 %4820 }
 0xd89   :  { %9636 = vpow2.f32 %v4828_v11  ;;  %v4826_v24 = vsub.f32 %v10823_v25, %v4821_v1 }
 0xd8a   :  { %v10862_v39 = vpop.eup %9630 }
 0xd8b   :  { %v4590_v55 = vsel %vm170_vm1, %v10862_v39, 0.0  ;;  %v4830_v47 = vmul.f32 1.442695, %v4826_v24 }
 0xd8c   :  { %4591 = vadd.xlane.f32.xlu0 %v4590_v55  ;;  %v4824_v51 = vpop.xlane.xlu1 %4823 }
 0xd8d   :  { %v4827_v44 = vsub.f32 %v10828_v52, %v4824_v51 }
 0xd8e   :  { %v10866_v59 = vpop.eup %9632 }
 0xd8f   :  { %v4593_v16 = vsel %vm170_vm1, %v10866_v59, 0.0  ;;  %v4832_v62 = vmul.f32 1.442695, %v4827_v44 }
 0xd90   :  { %4594 = vadd.xlane.f32.xlu1 %v4593_v16  ;;  %v5059_v57 = vpop.xlane.xlu0 %5058 }
 0xd91   :  { %v5066_v17 = vsub.f32 %v10832_v63, %v5059_v57 }
 0xd92   :  { %v10870_v27 = vpop.eup %9634 }
 0xd93   :  { %v4596_v42 = vsel %vm170_vm1, %v10870_v27, 0.0  ;;  %v5069_v25 = vmul.f32 1.442695, %v5066_v17 }
 0xd94   :  { %4597 = vadd.xlane.f32.xlu0 %v4596_v42  ;;  %v5062_v5 = vpop.xlane.xlu1 %5061  ;;  %v4613_v9 = vpop.permute.xlu0 %4612 }
 0xd96   :  { %v10874_v32 = vpop.eup %9636 }
 0xd97   :  { %v4834_v38 = vsel %vm170_vm1, %v10874_v32, 0.0 }
 0xd98   :  { %4835 = vadd.xlane.f32.xlu1 %v4834_v38 }
 0xda3   :  { %v4360_v8 = vpop.xlane.xlu1 %4359 }
 0xda4   :  { %9638 = vrcp.f32 %v4360_v8 }
 0xda5   :  { %9640 = vpow2.f32 %v4830_v47 }
 0xda6   :  { %9642 = vpow2.f32 %v4832_v62 }
 0xda7   :  { %9644 = vpow2.f32 %v5069_v25 }
 0xda9   :  { %4610 = vrot.lane.b32.xlu1 %v10718_v29, %s9695_s30 }
 0xdaa   :  { %4608 = vrot.lane.b32.xlu0 %v10726_v23, %s9695_s30  ;;  %s9717_s30 = smov 26  }
 0xdab   :  { %v4366_v58 = vpop.xlane.xlu1 %4365  ;;  %s7769_s10 = sld [smem:[%s11432_s0 + %s9717_s30]]  }
 0xdb1   :  { %v9639_v45 = vpop.eup %9638 }
 0xdb2   :  { %v4368_v40 = vmul.f32 %v9639_v45, %v9625_v18  ;;  %v5067_v18 = vsub.f32 %v10837_v10, %v5062_v5  ;;  %v10890_v52 = vpop.eup %9640 }
 0xdb3   :  { %v4837_v53 = vsel %vm170_vm1, %v10890_v52, 0.0  ;;  %v10894_v26 = vpop.eup %9642 }
 0xdb4   :  { %9140 = vmatmul.mubr.msk.f32.vlgmr.msra.gmra.mxu1 %vm170_vm1, %v4368_v40  ;;  %v5071_v6 = vmul.f32 1.442695, %v5067_v18  ;;  %v4840_v63 = vsel %vm170_vm1, %v10894_v26, 0.0  ;;  %v10898_v46 = vpop.eup %9644 }
 0xdb5   :  { %9164 = vmatpush3.msra.mxu1 %v4613_v9  ;;  %9142 = vmatprep.mubr.msk.f32.mxu1 %vm9689_vm0, %v9687_v0  ;;  %v5075_v10 = vsel %vm170_vm1, %v10898_v46, 0.0 }
 0xdb6   :  { %9165 = vmatprep.subr.mxu1 %v9687_v0  ;;  %9646 = vpow2.f32 %v5071_v6 }
 0xdc3   :  { %v10902_v49 = vpop.eup %9646 }
 0xdc4   :  { %v5078_v15 = vsel %vm170_vm1, %v10902_v49, 0.0 }
 0xdc5   :  { %v5065_v12 = vpop.xlane.xlu0 %5064 }
 0xdc9   :  { %4838 = vadd.xlane.f32.xlu0 %v4837_v53  ;;  %v4363_v4 = vpop.xlane.xlu0 %4362 }
 0xdca   :  { %9648 = vrcp.f32 %v4363_v4 }
 0xdcb   :  { %9650 = vrcp.f32 %v4366_v58 }
 0xdcd   :  { %4841 = vadd.xlane.f32.xlu1 %v4840_v63 }
 0xdd1   :  { %5076 = vadd.xlane.f32.xlu1 %v5075_v10 }
 0xdd5   :  { %5079 = vadd.xlane.f32.xlu1 %v5078_v15 }
 0xdd7   :  { %v9649_v7 = vpop.eup %9648 }
 0xdd8   :  { %v4370_v33 = vmul.f32 %v9649_v7, %v10854_v19  ;;  %v9651_v20 = vpop.eup %9650 }
 0xdd9   :  { %v4372_v21 = vmul.f32 %v9651_v20, %v10844_v60  ;;  %v5068_v60 = vsub.f32 %v10850_v54, %v5065_v12 }
 0xdda   :  { %9143 = vmatmul.mubr.msk.f32.gmra.mxu1 %vm170_vm1, %v4370_v33 }
 0xddb   :  { %9145 = vmatprep.mubr.msk.f32.mxu1 %vm9689_vm0, %v9687_v0  ;;  %v5073_v19 = vmul.f32 1.442695, %v5068_v60  ;;  %v5236_v60 = vld [vmem:[%s7769_s10 + $0x18] sm:$0xff] }
 0xddc   :  { %9239 = vmatpush3.msra.mxu0 %v5236_v60 }
 0xddd   :  { %9652 = vpow2.f32 %v5073_v19  ;;  %v5235_v19 = vld [vmem:[%s7769_s10 + $0x10] sm:$0xff]  ;;  %9240 = vmatprep.subr.mxu0 %v9687_v0 }
 0xdde   :  { %9146 = vmatmul.mubr.msk.f32.gmra.mxu1 %vm170_vm1, %v4372_v21  ;;  %9241 = vmatpush3.msra.mxu0 %v5235_v19 }
 0xddf   :  { %4853 = vrot.lane.b32.xlu0 %v10713_v35, %s9697_s5  ;;  %9169 = vmatprep.mubr.msk.f32.mxu1 %vm9689_vm0, %v9687_v0 }
 0xde0   :  { %9242 = vmatprep.subr.mxu0 %v9687_v0 }
 0xde3   :  { %4851 = vrot.lane.b32.xlu0 %v10718_v29, %s9697_s5 }
 0xde7   :  { %4849 = vrot.lane.b32.xlu0 %v10726_v23, %s9697_s5  ;;  %s7776_s5 = sld [smem:[%s11432_s0 + %s9724_s28]]  }
 0xdea   :  { %v10927_v50 = vpop.eup %9652 }
 0xdeb   :  { %5094 = vrot.lane.b32.xlu0 %v10713_v35, %s9698_s6  ;;  %v5081_v48 = vsel %vm170_vm1, %v10927_v50, 0.0 }
 0xdef   :  { %5092 = vrot.lane.b32.xlu0 %v10718_v29, %s9698_s6 }
 0xdf3   :  { %5090 = vrot.lane.b32.xlu0 %v10726_v23, %s9698_s6  ;;  %s9725_s6 = smov 34  }
 0xe12   :  { %5082 = vadd.xlane.f32.xlu0 %v5081_v48 }
 0xe15   :  { %v4592_v13 = vpop.xlane.xlu0 %4591 }
 0xe16   :  { %9654 = vrcp.f32 %v4592_v13  ;;  %v5233_v13 = vld [vmem:[%s7769_s10] sm:$0xff] }
 0xe19   :  { %v4595_v41 = vpop.xlane.xlu1 %4594 }
 0xe1a   :  { %9656 = vrcp.f32 %v4595_v41 }
 0xe1d   :  { %v4598_v35 = vpop.xlane.xlu0 %4597 }
 0xe1e   :  { %9658 = vrcp.f32 %v4598_v35 }
 0xe21   :  { %v4836_v29 = vpop.xlane.xlu1 %4835  ;;  %v4609_v54 = vpop.permute.xlu0 %4608 }
 0xe22   :  { %9660 = vrcp.f32 %v4836_v29 }
 0xe23   :  { %v9655_v34 = vpop.eup %9654 }
 0xe24   :  { %v4600_v23 = vmul.f32 %v9655_v34, %v10862_v39 }
 0xe25   :  { %v4611_v11 = vpop.permute.xlu1 %4610 }
 0xe26   :  { %9166 = vmatpush3.msra.mxu1 %v4611_v11 }
 0xe27   :  { %9167 = vmatprep.subr.mxu1 %v9687_v0  ;;  %v9657_v55 = vpop.eup %9656 }
 0xe28   :  { %9168 = vmatpush3.msra.mxu1 %v4609_v54  ;;  %v4602_v16 = vmul.f32 %v9657_v55, %v10866_v59 }
 0xe29   :  { %9170 = vmatmul.mubr.msk.f32.vlgmr.msra.gmra.mxu1 %vm170_vm1, %v4600_v23  ;;  %9193 = vmatprep.subr.mxu1 %v9687_v0 }
 0xe2a   :  { %9172 = vmatprep.mubr.msk.f32.mxu1 %vm9689_vm0, %v9687_v0 }
 0xe2b   :  { %v9659_v42 = vpop.eup %9658 }
 0xe2c   :  { %v4604_v39 = vmul.f32 %v9659_v42, %v10870_v27 }
 0xe2d   :  { %9173 = vmatmul.mubr.msk.f32.gmra.mxu1 %vm170_vm1, %v4602_v16 }
 0xe2e   :  { %9175 = vmatprep.mubr.msk.f32.mxu1 %vm9689_vm0, %v9687_v0 }
 0xe2f   :  { %v9661_v1 = vpop.eup %9660 }
 0xe30   :  { %v4844_v27 = vmul.f32 %v9661_v1, %v10874_v32 }
 0xe31   :  { %9176 = vmatmul.mubr.msk.f32.gmra.mxu1 %vm170_vm1, %v4604_v39 }
 0xe32   :  { %9199 = vmatprep.mubr.msk.f32.mxu1 %vm9689_vm0, %v9687_v0 }
 0xe52   :  { %v4839_v38 = vpop.xlane.xlu0 %4838 }
 0xe53   :  { %9662 = vrcp.f32 %v4839_v38 }
 0xe56   :  { %v4842_v51 = vpop.xlane.xlu1 %4841  ;;  %v4854_v5 = vpop.permute.xlu0 %4853 }
 0xe57   :  { %9664 = vrcp.f32 %v4842_v51  ;;  %9194 = vmatpush3.msra.mxu1 %v4854_v5 }
 0xe58   :  { %9195 = vmatprep.subr.mxu1 %v9687_v0 }
 0xe5a   :  { %v5077_v59 = vpop.xlane.xlu1 %5076  ;;  %v4852_v8 = vpop.permute.xlu0 %4851 }
 0xe5b   :  { %9666 = vrcp.f32 %v5077_v59  ;;  %9196 = vmatpush3.msra.mxu1 %v4852_v8 }
 0xe5c   :  { %9197 = vmatprep.subr.mxu1 %v9687_v0 }
 0xe5e   :  { %v5080_v57 = vpop.xlane.xlu1 %5079  ;;  %v4850_v24 = vpop.permute.xlu0 %4849 }
 0xe5f   :  { %9668 = vrcp.f32 %v5080_v57  ;;  %9198 = vmatpush3.msra.mxu1 %v4850_v24 }
 0xe60   :  { %v9663_v45 = vpop.eup %9662  ;;  %9200 = vmatmul.mubr.msk.f32.vlgmr.msra.gmra.mxu1 %vm170_vm1, %v4844_v27  ;;  %9223 = vmatprep.subr.mxu1 %v9687_v0 }
 0xe61   :  { %9202 = vmatprep.mubr.msk.f32.mxu1 %vm9689_vm0, %v9687_v0  ;;  %v4846_v40 = vmul.f32 %v9663_v45, %v10890_v52 }
 0xe62   :  { %v5095_v47 = vpop.permute.xlu0 %5094 }
 0xe63   :  { %9224 = vmatpush3.msra.mxu1 %v5095_v47 }
 0xe64   :  { %v9665_v44 = vpop.eup %9664  ;;  %9203 = vmatmul.mubr.msk.f32.gmra.mxu1 %vm170_vm1, %v4846_v40  ;;  %9225 = vmatprep.subr.mxu1 %v9687_v0 }
 0xe65   :  { %9205 = vmatprep.mubr.msk.f32.mxu1 %vm9689_vm0, %v9687_v0  ;;  %v4848_v32 = vmul.f32 %v9665_v44, %v10894_v26 }
 0xe66   :  { %v5093_v9 = vpop.permute.xlu0 %5092 }
 0xe67   :  { %9226 = vmatpush3.msra.mxu1 %v5093_v9 }
 0xe68   :  { %v9667_v62 = vpop.eup %9666  ;;  %9206 = vmatmul.mubr.msk.f32.gmra.mxu1 %vm170_vm1, %v4848_v32  ;;  %9227 = vmatprep.subr.mxu1 %v9687_v0 }
 0xe69   :  { %v5085_v17 = vmul.f32 %v9667_v62, %v10898_v46  ;;  %9229 = vmatprep.mubr.msk.f32.mxu1 %vm9689_vm0, %v9687_v0 }
 0xe6a   :  { %v5091_v25 = vpop.permute.xlu0 %5090 }
 0xe6b   :  { %9228 = vmatpush3.msra.mxu1 %v5091_v25 }
 0xe6c   :  { %v9669_v18 = vpop.eup %9668  ;;  %9230 = vmatmul.mubr.msk.f32.vlgmr.msra.gmra.mxu1 %vm170_vm1, %v5085_v17 }
 0xe6d   :  { %9232 = vmatprep.mubr.msk.f32.mxu1 %vm9689_vm0, %v9687_v0  ;;  %v5087_v6 = vmul.f32 %v9669_v18, %v10902_v49 }
 0xe70   :  { %9233 = vmatmul.mubr.msk.f32.gmra.mxu1 %vm170_vm1, %v5087_v6 }
 0xe71   :  { %9235 = vmatprep.mubr.msk.f32.mxu1 %vm9689_vm0, %v9687_v0 }
 0xe74   :  { %v4448_v52 = vpop.f32.mrf.mxu1 }
 0xe76   :  { %v9141_v12 = vpop.f32.mrf.mxu1 }
 0xe9a   :  { %v4453_v53 = vpop.f32.mrf.mxu1 }
 0xe9b   :  { %v5083_v26 = vpop.xlane.xlu0 %5082 }
 0xe9c   :  { %9670 = vrcp.f32 %v5083_v26  ;;  %v9144_v4 = vpop.f32.mrf.mxu1 }
 0xe9e   :  { %v10970_v58 = vpop.f32.mrf.mxu1 }
 0xea0   :  { %v9147_v63 = vpop.f32.mrf.mxu1 }
 0xea9   :  { %v9671_v46 = vpop.eup %9670 }
 0xeaa   :  { %v5089_v10 = vmul.f32 %v9671_v46, %v10927_v50  ;;  %v5234_v50 = vld [vmem:[%s7769_s10 + $0x8] sm:$0xff] }
 0xeab   :  { %9243 = vmatpush3.msra.mxu0 %v5234_v50 }
 0xeac   :  { %9236 = vmatmul.mubr.msk.f32.gmra.mxu1 %vm170_vm1, %v5089_v10  ;;  %9244 = vmatprep.subr.mxu0 %v9687_v0 }
 0xead   :  { %5711 = vmatprep.mubr.bf16.mxu1 %v9705_v36  ;;  %9245 = vmatpush3.msra.mxu0 %v5233_v13 }
 0xee9   :  { %v4692_v49 = vpop.f32.mrf.mxu1 }
 0xeea   :  { %5191 = vrot.lane.b32.xlu1 %v4692_v49, %s9692_s18 }
 0xeeb   :  { %v9171_v15 = vpop.f32.mrf.mxu1 }
 0xeed   :  { %v4697_v7 = vpop.f32.mrf.mxu1 }
 0xeee   :  { %5193 = vrot.lane.b32.xlu0 %v4697_v7, %s9692_s18 }
 0xeef   :  { %v9174_v33 = vpop.f32.mrf.mxu1 }
 0xef1   :  { %v4702_v20 = vpop.f32.mrf.mxu1 }
 0xef3   :  { %v9177_v21 = vpop.f32.mrf.mxu1 }
 0xf20   :  { %v4933_v48 = vpop.f32.mrf.mxu1 }
 0xf21   :  { %5203 = vrot.lane.b32.xlu1 %v4933_v48, %s9700_s11 }
 0xf22   :  { %v9201_v41 = vpop.f32.mrf.mxu1 }
 0xf24   :  { %v4938_v35 = vpop.f32.mrf.mxu1 }
 0xf25   :  { %5205 = vrot.lane.b32.xlu1 %v4938_v35, %s9700_s11  ;;  %v5413_v35 = vld [vmem:[%s11030_s7 + $0x80] sm:$0xff] }
 0xf26   :  { %v9204_v29 = vpop.f32.mrf.mxu1 }
 0xf27   :  { %v5421_v29 = vld [vmem:[%s11030_s7 + $0xc0] sm:$0xff] }
 0xf28   :  { %v4943_v34 = vpop.f32.mrf.mxu1 }
 0xf2a   :  { %v9207_v11 = vpop.f32.mrf.mxu1 }
 0xf2b   :  { %v8089_v11 = vcombine.high %v5413_v35, %v5421_v29 }
 0xf2c   :  { %v5174_v23 = vpop.f32.mrf.mxu1 }
 0xf2d   :  { %5215 = vrot.lane.b32.xlu1 %v5174_v23, %s9702_s20  ;;  %v5422_v23 = vld [vmem:[%s11030_s7 + $0xc8] sm:$0xff]  ;;  %5691 = vmatprep.subr.bf16.mxu1 %v8089_v11 }
 0xf2e   :  { %v9231_v54 = vpop.f32.mrf.mxu1 }
 0xf2f   :  { %v8088_v54 = vcombine.low %v5413_v35, %v5421_v29  ;;  %v5426_v29 = vld [vmem:[%s11030_s7 + $0xe8] sm:$0xff] }
 0xf30   :  { %v5179_v55 = vpop.f32.mrf.mxu1 }
 0xf31   :  { %5217 = vrot.lane.b32.xlu1 %v5179_v55, %s9702_s20  ;;  %5692 = vmatpush1.bf16.msra.mxu1 %v8088_v54 }
 0xf32   :  { %v9234_v16 = vpop.f32.mrf.mxu1 }
 0xf35   :  { %5195 = vrot.lane.b32.xlu1 %v4702_v20, %s9692_s18  ;;  %s9718_s18 = smov 27  }
 0xf36   :  { %s7770_s1 = sld [smem:[%s11432_s0 + %s9718_s18]]  }
 0xf39   :  { %5207 = vrot.lane.b32.xlu1 %v4943_v34, %s9700_s11  ;;  %v5414_v34 = vld [vmem:[%s11030_s7 + $0x88] sm:$0xff]  ;;  %s7777_s11 = sld [smem:[%s11432_s0 + %s9725_s6]]  }
 0xf3a   :  { %v8090_v55 = vcombine.low %v5414_v34, %v5422_v23  ;;  %v8091_v16 = vcombine.high %v5414_v34, %v5422_v23 }
 0xf3c   :  { %v8066_v18 = vld [vmem:[%s7770_s1] ss:$0 sm:$0xff]  ;;  %5742 = vmatprep.subr.bf16.mxu0 %v8091_v16 }
 0xf5c   :  { %v5192_v38 = vpop.permute.xlu1 %5191 }
 0xf5d   :  { %v5224_v59 = vsel %vm543_vm3, %v4448_v52, %v5192_v38  ;;  %v5398_v38 = vld [vmem:[%s11030_s7 + $0x8] sm:$0xff] }
 0xf60   :  { %v5194_v8 = vpop.permute.xlu0 %5193 }
 0xf61   :  { %v5225_v24 = vsel %vm543_vm3, %v4453_v53, %v5194_v8 }
 0xf6c   :  { %v5184_v42 = vpop.f32.mrf.mxu1 }
 0xf6d   :  { %5219 = vrot.lane.b32.xlu1 %v5184_v42, %s9702_s20  ;;  %v5397_v42 = vld [vmem:[%s11030_s7] sm:$0xff]  ;;  %s9726_s20 = smov 35  }
 0xf6e   :  { %v9237_v39 = vpop.f32.mrf.mxu1  ;;  %s7778_s3 = sld [smem:[%s11432_s0 + %s9726_s20]]  }
 0xf6f   :  { %v5405_v39 = vld [vmem:[%s11030_s7 + $0x40] sm:$0xff] }
 0xf93   :  { %v5204_v51 = vpop.permute.xlu1 %5203 }
 0xf94   :  { %v5227_v1 = vsel %vm1535_vm4, %v5224_v59, %v5204_v51  ;;  %v8073_v51 = vcombine.high %v5397_v42, %v5405_v39  ;;  %v8072_v59 = vcombine.low %v5397_v42, %v5405_v39 }
 0xf96   :  { %5693 = vmatprep.subr.bf16.mxu1 %v8073_v51 }
 0xf97   :  { %v5206_v5 = vpop.permute.xlu1 %5205  ;;  %5694 = vmatpush1.bf16.msra.mxu1 %v8072_v59 }
 0xf98   :  { %v5228_v45 = vsel %vm1535_vm4, %v5225_v24, %v5206_v5  ;;  %v5406_v5 = vld [vmem:[%s11030_s7 + $0x48] sm:$0xff] }
 0xf99   :  { %v8074_v8 = vcombine.low %v5398_v38, %v5406_v5 }
 0xf9f   :  { %v5216_v27 = vpop.permute.xlu1 %5215 }
 0xfa0   :  { %v5230_v57 = vsel %vm170_vm1, %v5227_v1, %v5216_v27  ;;  %v8075_v1 = vcombine.high %v5398_v38, %v5406_v5 }
 0xfa1   :  { %9247 = vmatmul.mubr.msk.f32.vlgmr.msra.gmra.mxu0 %vm271_vm2, %v5230_v57 }
 0xfa2   :  { %9249 = vmatprep.mubr.msk.f32.mxu0 %vm9689_vm0, %v9687_v0  ;;  %5743 = vmatpush1.bf16.msra.mxu0 %v8090_v55 }
 0xfa3   :  { %v5218_v40 = vpop.permute.xlu1 %5217  ;;  %5744 = vmatprep.subr.bf16.mxu0 %v8075_v1  ;;  %v5409_v1 = vld [vmem:[%s11030_s7 + $0x60] sm:$0xff] }
 0xfa4   :  { %v5231_v47 = vsel %vm170_vm1, %v5228_v45, %v5218_v40 }
 0xfa5   :  { %9250 = vmatmul.mubr.msk.f32.gmra.mxu0 %vm271_vm2, %v5231_v47  ;;  %v5415_v47 = vld [vmem:[%s11030_s7 + $0x90] sm:$0xff] }
 0xfa6   :  { %9252 = vmatprep.mubr.msk.f32.mxu0 %vm9689_vm0, %v9687_v0  ;;  %5745 = vmatpush1.bf16.msra.mxu0 %v8074_v8  ;;  %v5401_v8 = vld [vmem:[%s11030_s7 + $0x20] sm:$0xff] }
 0xfa7   :  { %v5196_v44 = vpop.permute.xlu1 %5195 }
 0xfa8   :  { %v5226_v9 = vsel %vm543_vm3, %v10970_v58, %v5196_v44  ;;  %v5423_v44 = vld [vmem:[%s11030_s7 + $0xd0] sm:$0xff] }
 0xfab   :  { %v5208_v32 = vpop.permute.xlu1 %5207 }
 0xfac   :  { %v5229_v62 = vsel %vm1535_vm4, %v5226_v9, %v5208_v32  ;;  %v5416_v32 = vld [vmem:[%s11030_s7 + $0x98] sm:$0xff]  ;;  %v8092_v9 = vcombine.low %v5415_v47, %v5423_v44 }
 0xfdf   :  { %v5220_v17 = vpop.permute.xlu1 %5219 }
 0xfe0   :  { %v5232_v25 = vsel %vm170_vm1, %v5229_v62, %v5220_v17  ;;  %v8093_v62 = vcombine.high %v5415_v47, %v5423_v44  ;;  %v5424_v17 = vld [vmem:[%s11030_s7 + $0xd8] sm:$0xff]  ;;  %v5427_v47 = vld [vmem:[%s11030_s7 + $0xf0] sm:$0xff]  ;;  %v8081_v44 = vcombine.high %v5401_v8, %v5409_v1 }
 0xfe1   :  { %9253 = vmatmul.mubr.msk.f32.gmra.mxu0 %vm271_vm2, %v5232_v25  ;;  %v8094_v25 = vcombine.low %v5416_v32, %v5424_v17 }
 0xfe2   :  { %5762 = vmatprep.mubr.bf16.mxu0 %v9705_v36  ;;  %5793 = vmatprep.subr.bf16.mxu1 %v8093_v62  ;;  %v5428_v62 = vld [vmem:[%s11030_s7 + $0xf8] sm:$0xff] }
0x1061   :  { %v5319_v6 = vpop.f32.mrf.mxu0 }
0x1062   :  { %v5320_v52 = vadd.f32 %v8066_v18, %v5319_v6 }
0x1063   :  { %v9248_v12 = vpop.f32.mrf.mxu0 }
0x1064   :  { %v5333_v53 = vadd.f32 %v5320_v52, %v10640_v43 }
0x1065   :  { %v5324_v26 = vpop.f32.mrf.mxu0 }
0x1066   :  { %v5325_v4 = vadd.f32 %v8066_v18, %v5324_v26  ;;  %v5338_v58 = vsel %vm271_vm2, %v5333_v53, 0.0 }
0x1067   :  { %5339 = vadd.xlane.f32.xlu0 %v5338_v58  ;;  %v9251_v63 = vpop.f32.mrf.mxu0 }
0x1068   :  { %v5334_v46 = vadd.f32 %v5325_v4, %v10652_v22 }
0x106a   :  { %v5341_v10 = vsel %vm271_vm2, %v5334_v46, 0.0 }
0x106b   :  { %5342 = vadd.xlane.f32.xlu1 %v5341_v10 }
0x10a1   :  { %v5329_v49 = vpop.f32.mrf.mxu0 }
0x10a2   :  { %v5330_v15 = vadd.f32 %v8066_v18, %v5329_v49  ;;  %v8095_v18 = vcombine.high %v5416_v32, %v5424_v17  ;;  %v8080_v17 = vcombine.low %v5401_v8, %v5409_v1  ;;  %v9462_v8 = vld [vmem:[%s11055_s17 + $0x8] sm:$0xff]  }
0x10a3   :  { %v9254_v7 = vpop.f32.mrf.mxu0  ;;  %v9463_v1 = vld [vmem:[%s11055_s17 + $0x88] sm:$0xff]  }
0x10a4   :  { %v5335_v33 = vadd.f32 %v5330_v15, %v10665_v56  ;;  %5844 = vmatprep.subr.bf16.mxu0 %v8095_v18  ;;  %v8071_v7 = vld [vmem:[%s7772_s23] ss:$0 sm:$0xff] }
0x10a6   :  { %v5344_v20 = vsel %vm271_vm2, %v5335_v33, 0.0 }
0x10a7   :  { %5345 = vadd.xlane.f32.xlu0 %v5344_v20  ;;  %v5399_v20 = vld [vmem:[%s11030_s7 + $0x10] sm:$0xff] }
0x10f0   :  { %v5340_v43 = vpop.xlane.xlu0 %5339 }
0x10f1   :  { %v5347_v21 = vmul.f32 0.03125, %v5340_v43  ;;  %v5407_v43 = vld [vmem:[%s11030_s7 + $0x50] sm:$0xff] }
0x10f2   :  { %v8076_v34 = vcombine.low %v5399_v20, %v5407_v43 }
0x10f3   :  { %v11017_v60 = vsub.f32 %v5333_v53, %v5347_v21  ;;  %v5400_v21 = vld [vmem:[%s11030_s7 + $0x18] sm:$0xff] }
0x10f4   :  { %v5343_v19 = vpop.xlane.xlu1 %5342 }
0x10f5   :  { %v5348_v50 = vmul.f32 0.03125, %v5343_v19  ;;  %v5353_v22 = vmul.f32 %v11017_v60, %v11017_v60 }
0x10f7   :  { %v11021_v48 = vsub.f32 %v5334_v46, %v5348_v50  ;;  %v5356_v13 = vsel %vm271_vm2, %v5353_v22, 0.0  ;;  %v8070_v46 = vld [vmem:[%s7771_s13] ss:$0 sm:$0xff]  ;;  %v5408_v22 = vld [vmem:[%s11030_s7 + $0x58] sm:$0xff] }
0x10f8   :  { %5357 = vadd.xlane.f32.xlu0 %v5356_v13  ;;  %v5417_v13 = vld [vmem:[%s11030_s7 + $0xa0] sm:$0xff]  ;;  %v8079_v35 = vcombine.high %v5400_v21, %v5408_v22  ;;  %v8078_v11 = vcombine.low %v5400_v21, %v5408_v22  ;;  %v9441_v21 = vld [vmem:[%s11055_s17 + $0xf0] sm:$0xff]  }
0x10f9   :  { %v5354_v56 = vmul.f32 %v11021_v48, %v11021_v48  ;;  %v9442_v22 = vld [vmem:[%s11055_s17 + $0x30] sm:$0xff]  }
0x10fb   :  { %v5359_v41 = vsel %vm271_vm2, %v5354_v56, 0.0  ;;  %v5425_v56 = vld [vmem:[%s11030_s7 + $0xe0] sm:$0xff] }
0x10fc   :  { %5360 = vadd.xlane.f32.xlu1 %v5359_v41  ;;  %v8077_v41 = vcombine.high %v5399_v20, %v5407_v43  ;;  %v8097_v23 = vcombine.high %v5417_v13, %v5425_v56  ;;  %v9439_v20 = vld [vmem:[%s11055_s17 + $0xb8] sm:$0xff]   ;;  %v9440_v43 = vld [vmem:[%s11055_s17 + $0x70] sm:$0xff]  }
0x1130   :  { %v5346_v27 = vpop.xlane.xlu0 %5345 }
0x1131   :  { %v5349_v57 = vmul.f32 0.03125, %v5346_v27  ;;  %v5402_v27 = vld [vmem:[%s11030_s7 + $0x28] sm:$0xff] }
0x1133   :  { %v11040_v24 = vsub.f32 %v5335_v33, %v5349_v57  ;;  %v5410_v57 = vld [vmem:[%s11030_s7 + $0x68] sm:$0xff] }
0x1134   :  { %v8083_v32 = vcombine.high %v5402_v27, %v5410_v57 }
0x1135   :  { %v5355_v45 = vmul.f32 %v11040_v24, %v11040_v24 }
0x1137   :  { %v5362_v40 = vsel %vm271_vm2, %v5355_v45, 0.0 }
0x1138   :  { %5363 = vadd.xlane.f32.xlu0 %v5362_v40  ;;  %v5419_v40 = vld [vmem:[%s11030_s7 + $0xb0] sm:$0xff] }
0x1139   :  { %v8101_v18 = vcombine.high %v5419_v40, %v5427_v47 }
0x1181   :  { %v5358_v6 = vpop.xlane.xlu0 %5357 }
0x1182   :  { %v5365_v52 = vmul.f32 0.03125, %v5358_v6 }
0x1184   :  { %v5368_v12 = vadd.f32 1e-05, %v5365_v52  ;;  %v5403_v52 = vld [vmem:[%s11030_s7 + $0x30] sm:$0xff] }
0x1185   :  { %v5361_v53 = vpop.xlane.xlu1 %5360 }
0x1186   :  { %9672 = vrsqrt.f32 %v5368_v12  ;;  %v5366_v26 = vmul.f32 0.03125, %v5361_v53  ;;  %v5411_v12 = vld [vmem:[%s11030_s7 + $0x70] sm:$0xff]  ;;  %v5404_v53 = vld [vmem:[%s11030_s7 + $0x38] sm:$0xff] }
0x1188   :  { %v5369_v4 = vadd.f32 1e-05, %v5366_v26  ;;  %v5412_v26 = vld [vmem:[%s11030_s7 + $0x78] sm:$0xff] }
0x118a   :  { %9674 = vrsqrt.f32 %v5369_v4  ;;  %v8100_v4 = vcombine.low %v5419_v40, %v5427_v47  ;;  %v9468_v40 = vld [vmem:[%s11055_s17 + $0x178] sm:$0xff]  }
0x118b   :  { %v9469_v47 = vld [vmem:[%s11055_s17 + $0x1f8] sm:$0xff]  }
0x1193   :  { %v9673_v58 = vpop.eup %9672 }
0x1194   :  { %v5374_v63 = vmul.f32 %v9673_v58, %v11017_v60 }
0x1196   :  { %v5383_v49 = vmul.f32 %v8070_v46, %v5374_v63  ;;  %v8085_v63 = vcombine.high %v5403_v52, %v5411_v12 }
0x1197   :  { %v9675_v10 = vpop.eup %9674 }
0x1198   :  { %v5375_v15 = vmul.f32 %v9675_v10, %v11021_v48  ;;  %v11065_v19 = vadd.f32 %v8071_v7, %v5383_v49  ;;  %v5418_v48 = vld [vmem:[%s11030_s7 + $0xa8] sm:$0xff]  ;;  %v9436_v10 = vld [vmem:[%s11055_s17 + $0x78] sm:$0xff]   ;;  %v8084_v49 = vcombine.low %v5403_v52, %v5411_v12 }
0x1199   :  { %v8099_v54 = vcombine.high %v5418_v48, %v5426_v29  ;;  %v8098_v45 = vcombine.low %v5418_v48, %v5426_v29  ;;  %v9449_v48 = vld [vmem:[%s11055_s17 + $0xe0] sm:$0xff]  }
0x119a   :  { %v5384_v33 = vmul.f32 %v8070_v46, %v5375_v15  ;;  %v8086_v15 = vcombine.low %v5404_v53, %v5412_v26  ;;  %v9450_v29 = vld [vmem:[%s11055_s17 + $0x20] sm:$0xff]  }
0x119c   :  { %v11067_v50 = vadd.f32 %v8071_v7, %v5384_v33  ;;  %v9438_v33 = vld [vmem:[%s11055_s17 + $0x38] sm:$0xff]  }
0x119e   :  { %v11072_v60 = vpack.c.bf16 %v11067_v50, %v11065_v19 }
0x11a0   :  { %8104 = vmatmul.mubr.msk.bf16.vlgmr.msra.gmra.mxu1 %vm271_vm2, %v11072_v60  ;;  %8106 = vmatmul.mubr.msk.bf16.vlgmr.msra.gmra.mxu0 %vm271_vm2, %v11072_v60 }
0x11a1   :  { %5721 = vmatprep.mubr.bf16.mxu1 %v9705_v36  ;;  %5772 = vmatprep.mubr.bf16.mxu0 %v9705_v36 }
0x11a2   :  { %5794 = vmatpush1.bf16.msra.mxu1 %v8092_v9  ;;  %5845 = vmatpush1.bf16.msra.mxu0 %v8094_v25  ;;  %v5420_v9 = vld [vmem:[%s11030_s7 + $0xb8] sm:$0xff]  ;;  %v8082_v25 = vcombine.low %v5402_v27, %v5410_v57  ;;  %v9464_v27 = vld [vmem:[%s11055_s17 + $0x40] sm:$0xff]  }
0x11a3   :  { %5795 = vmatprep.subr.bf16.mxu1 %v8077_v41  ;;  %5846 = vmatprep.subr.bf16.mxu0 %v8079_v35  ;;  %v8103_v6 = vcombine.high %v5420_v9, %v5428_v62  ;;  %v8102_v58 = vcombine.low %v5420_v9, %v5428_v62  ;;  %v9445_v41 = vld [vmem:[%s11055_s17 + $0xe8] sm:$0xff]   ;;  %v9465_v57 = vld [vmem:[%s11055_s17 + $0xc0] sm:$0xff]  }
0x11a4   :  { %v9447_v35 = vld [vmem:[%s11055_s17 + $0xa8] sm:$0xff]  }
0x11a6   :  { %5796 = vmatpush1.bf16.msra.mxu1 %v8076_v34  ;;  %5847 = vmatpush1.bf16.msra.mxu0 %v8078_v11  ;;  %v9451_v34 = vld [vmem:[%s11055_s17 + $0xa0] sm:$0xff]   ;;  %v9452_v11 = vld [vmem:[%s11055_s17 + $0x58] sm:$0xff]  }
0x11a7   :  { %5895 = vmatprep.subr.bf16.mxu1 %v8097_v23  ;;  %5946 = vmatprep.subr.bf16.mxu0 %v8099_v54  ;;  %v9453_v23 = vld [vmem:[%s11055_s17 + $0xd8] sm:$0xff]  }
0x11a8   :  { %v9454_v54 = vld [vmem:[%s11055_s17 + $0x18] sm:$0xff]  }
0x11c1   :  { %v5364_v55 = vpop.xlane.xlu0 %5363 }
0x11c2   :  { %v5367_v16 = vmul.f32 0.03125, %v5364_v55  ;;  %v9455_v55 = vld [vmem:[%s11055_s17 + $0x98] sm:$0xff]  }
0x11c4   :  { %v5370_v42 = vadd.f32 1e-05, %v5367_v16  ;;  %v9456_v16 = vld [vmem:[%s11055_s17 + $0x50] sm:$0xff]  }
0x11c6   :  { %9676 = vrsqrt.f32 %v5370_v42  ;;  %v9457_v42 = vld [vmem:[%s11055_s17 + $0xd0] sm:$0xff]  }
0x11d3   :  { %v9677_v39 = vpop.eup %9676 }
0x11d4   :  { %v5376_v38 = vmul.f32 %v9677_v39, %v11040_v24  ;;  %v8096_v24 = vcombine.low %v5417_v13, %v5425_v56  ;;  %v9443_v13 = vld [vmem:[%s11055_s17 + $0xb0] sm:$0xff]   ;;  %v9444_v56 = vld [vmem:[%s11055_s17 + $0x68] sm:$0xff]  }
0x11d5   :  { %v9458_v39 = vld [vmem:[%s11055_s17 + $0x10] sm:$0xff]  }
0x11d6   :  { %v5385_v51 = vmul.f32 %v8070_v46, %v5376_v38  ;;  %v8087_v46 = vcombine.high %v5404_v53, %v5412_v26  ;;  %v9459_v38 = vld [vmem:[%s11055_s17 + $0x90] sm:$0xff]  }
0x11d8   :  { %v11085_v5 = vadd.f32 %v8071_v7, %v5385_v51  ;;  %v9437_v7 = vld [vmem:[%s11055_s17 + $0xf8] sm:$0xff]   ;;  %v9460_v51 = vld [vmem:[%s11055_s17 + $0x48] sm:$0xff]  }
0x11da   :  { %v11089_v59 = vpack.c.bf16 %v11085_v5, %v11085_v5 }
0x11dc   :  { %8105 = vmatmul.mubr.msk.bf16.gmra.mxu1 %vm271_vm2, %v11089_v59  ;;  %8107 = vmatmul.mubr.msk.bf16.gmra.mxu0 %vm271_vm2, %v11089_v59 }
0x11dd   :  { %5813 = vmatprep.mubr.bf16.mxu1 %v9705_v36  ;;  %5864 = vmatprep.mubr.bf16.mxu0 %v9705_v36 }
0x11e4   :  { %8108 = vmatmul.mubr.msk.bf16.vlgmr.msra.gmra.mxu1 %vm271_vm2, %v11072_v60  ;;  %8110 = vmatmul.mubr.msk.bf16.vlgmr.msra.gmra.mxu0 %vm271_vm2, %v11072_v60 }
0x11e5   :  { %5823 = vmatprep.mubr.bf16.mxu1 %v9705_v36  ;;  %5874 = vmatprep.mubr.bf16.mxu0 %v9705_v36 }
0x11e6   :  { %5896 = vmatpush1.bf16.msra.mxu1 %v8096_v24  ;;  %5947 = vmatpush1.bf16.msra.mxu0 %v8098_v45  ;;  %v9466_v24 = vld [vmem:[%s11055_s17] sm:$0xff]  }
0x11e7   :  { %5897 = vmatprep.subr.bf16.mxu1 %v8081_v44  ;;  %5948 = vmatprep.subr.bf16.mxu0 %v8083_v32  ;;  %v9467_v45 = vld [vmem:[%s11055_s17 + $0x80] sm:$0xff]  }
0x11e8   :  { %v11183_v44 = vld [vmem:[%s11180_s27] sm:$0xff] }
0x11e9   :  { %v11187_v62 = vrot.slane %v11183_v44, %v10349_v28 }
0x11ea   :  { %5898 = vmatpush1.bf16.msra.mxu1 %v8080_v17  ;;  %5949 = vmatpush1.bf16.msra.mxu0 %v8082_v25  ;;  %v11191_v17 = vrot.slane %v11183_v44, %v10352_v30  ;;  %v11195_v25 = vrot.slane %v11183_v44, %v10355_v31 }
0x11eb   :  { %5997 = vmatprep.subr.bf16.mxu1 %v8101_v18  ;;  %6048 = vmatprep.subr.bf16.mxu0 %v8103_v6  ;;  %v11199_v18 = vrot.slane %v11183_v44, %v10358_v14 }
0x11ec   :  { %8109 = vmatmul.mubr.msk.bf16.gmra.mxu1 %vm271_vm2, %v11089_v59  ;;  %8111 = vmatmul.mubr.msk.bf16.gmra.mxu0 %vm271_vm2, %v11089_v59 }
0x11ed   :  { %5915 = vmatprep.mubr.bf16.mxu1 %v9705_v36  ;;  %5966 = vmatprep.mubr.bf16.mxu0 %v9705_v36 }
0x11f4   :  { %8112 = vmatmul.mubr.msk.bf16.vlgmr.msra.gmra.mxu1 %vm271_vm2, %v11072_v60  ;;  %8114 = vmatmul.mubr.msk.bf16.vlgmr.msra.gmra.mxu0 %vm271_vm2, %v11072_v60 }
0x11f5   :  { %5925 = vmatprep.mubr.bf16.mxu1 %v9705_v36  ;;  %5976 = vmatprep.mubr.bf16.mxu0 %v9705_v36 }
0x11f6   :  { %5998 = vmatpush1.bf16.msra.mxu1 %v8100_v4  ;;  %6049 = vmatpush1.bf16.msra.mxu0 %v8102_v58 }
0x11f7   :  { %5999 = vmatprep.subr.bf16.mxu1 %v8085_v63  ;;  %6050 = vmatprep.subr.bf16.mxu0 %v8087_v46 }
0x11fa   :  { %6000 = vmatpush1.bf16.msra.mxu1 %v8084_v49  ;;  %6051 = vmatpush1.bf16.msra.mxu0 %v8086_v15 }
0x11fb   :  { %8636 = vmatprep.subr.bf16.mxu1 %v9436_v10  ;;  %8664 = vmatprep.subr.bf16.mxu0 %v9437_v7 }
0x11fc   :  { %8113 = vmatmul.mubr.msk.bf16.gmra.mxu1 %vm271_vm2, %v11089_v59  ;;  %8115 = vmatmul.mubr.msk.bf16.gmra.mxu0 %vm271_vm2, %v11089_v59 }
0x11fd   :  { %6017 = vmatprep.mubr.bf16.mxu1 %v9705_v36  ;;  %6068 = vmatprep.mubr.bf16.mxu0 %v9705_v36 }
0x1204   :  { %8116 = vmatmul.mubr.msk.bf16.vlgmr.msra.gmra.mxu1 %vm271_vm2, %v11072_v60  ;;  %8118 = vmatmul.mubr.msk.bf16.vlgmr.msra.gmra.mxu0 %vm271_vm2, %v11072_v60  ;;  %v9446_v60 = vld [vmem:[%s11055_s17 + $0x28] sm:$0xff]  }
0x1205   :  { %6027 = vmatprep.mubr.bf16.mxu1 %v9705_v36  ;;  %6078 = vmatprep.mubr.bf16.mxu0 %v9705_v36  ;;  %v9448_v36 = vld [vmem:[%s11055_s17 + $0x60] sm:$0xff]  }
0x1206   :  { %8637 = vmatpush3.bf16.msra.mxu1 %v9438_v33  ;;  %8665 = vmatpush3.bf16.msra.mxu0 %v9439_v20 }
0x1207   :  { %8638 = vmatprep.subr.bf16.mxu1 %v9440_v43  ;;  %8666 = vmatprep.subr.bf16.mxu0 %v9441_v21 }
0x120a   :  { %8639 = vmatpush3.bf16.msra.mxu1 %v9442_v22  ;;  %8667 = vmatpush3.bf16.msra.mxu0 %v9443_v13 }
0x120b   :  { %8640 = vmatprep.subr.bf16.mxu1 %v9444_v56  ;;  %8668 = vmatprep.subr.bf16.mxu0 %v9445_v41 }
0x120c   :  { %8117 = vmatmul.mubr.msk.bf16.gmra.mxu1 %vm271_vm2, %v11089_v59  ;;  %8119 = vmatmul.mubr.msk.bf16.gmra.mxu0 %vm271_vm2, %v11089_v59  ;;  %v9461_v59 = vld [vmem:[%s11055_s17 + $0xc8] sm:$0xff]  }
0x120e   :  { %8641 = vmatpush3.bf16.msra.mxu1 %v9446_v60  ;;  %8669 = vmatpush3.bf16.msra.mxu0 %v9447_v35 }
0x120f   :  { %8642 = vmatprep.subr.bf16.mxu1 %v9448_v36  ;;  %8670 = vmatprep.subr.bf16.mxu0 %v9449_v48  ;;  %v9470_v48 = vld [vmem:[%s11055_s17 + $0x138] sm:$0xff]  }
0x1212   :  { %8643 = vmatpush3.bf16.msra.mxu1 %v9450_v29  ;;  %8671 = vmatpush3.bf16.msra.mxu0 %v9451_v34  ;;  %v9471_v29 = vld [vmem:[%s11055_s17 + $0x1b8] sm:$0xff]  }
0x1213   :  { %8644 = vmatprep.subr.bf16.mxu1 %v9452_v11  ;;  %8672 = vmatprep.subr.bf16.mxu0 %v9453_v23  ;;  %v9472_v23 = vld [vmem:[%s11055_s17 + $0x170] sm:$0xff]  }
0x1216   :  { %8645 = vmatpush3.bf16.msra.mxu1 %v9454_v54  ;;  %8673 = vmatpush3.bf16.msra.mxu0 %v9455_v55  ;;  %v9473_v54 = vld [vmem:[%s11055_s17 + $0x1f0] sm:$0xff]  }
0x1217   :  { %8646 = vmatprep.subr.bf16.mxu1 %v9456_v16  ;;  %8674 = vmatprep.subr.bf16.mxu0 %v9457_v42  ;;  %v9474_v55 = vld [vmem:[%s11055_s17 + $0x130] sm:$0xff]   ;;  %v9476_v42 = vld [vmem:[%s11055_s17 + $0x168] sm:$0xff]  }
0x1218   :  { %v9475_v16 = vld [vmem:[%s11055_s17 + $0x1b0] sm:$0xff]  }
0x121a   :  { %8647 = vmatpush3.bf16.msra.mxu1 %v9458_v39  ;;  %8675 = vmatpush3.bf16.msra.mxu0 %v9459_v38  ;;  %v9477_v39 = vld [vmem:[%s11055_s17 + $0x1e8] sm:$0xff]  }
0x121b   :  { %8648 = vmatprep.subr.bf16.mxu1 %v9460_v51  ;;  %8676 = vmatprep.subr.bf16.mxu0 %v9461_v59  ;;  %v9478_v38 = vld [vmem:[%s11055_s17 + $0x128] sm:$0xff]   ;;  %v9480_v59 = vld [vmem:[%s11055_s17 + $0x160] sm:$0xff]  }
0x121c   :  { %v9479_v51 = vld [vmem:[%s11055_s17 + $0x1a8] sm:$0xff]  }
0x121e   :  { %8649 = vmatpush3.bf16.msra.mxu1 %v9462_v8  ;;  %8677 = vmatpush3.bf16.msra.mxu0 %v9463_v1  ;;  %v9481_v8 = vld [vmem:[%s11055_s17 + $0x1e0] sm:$0xff]  }
0x121f   :  { %8650 = vmatprep.subr.bf16.mxu1 %v9464_v27  ;;  %8678 = vmatprep.subr.bf16.mxu0 %v9465_v57  ;;  %v9482_v1 = vld [vmem:[%s11055_s17 + $0x120] sm:$0xff]   ;;  %v9484_v57 = vld [vmem:[%s11055_s17 + $0x158] sm:$0xff]  }
0x1220   :  { %v9483_v27 = vld [vmem:[%s11055_s17 + $0x1a0] sm:$0xff]  }
0x1222   :  { %8651 = vmatpush3.bf16.msra.mxu1 %v9466_v24  ;;  %8679 = vmatpush3.bf16.msra.mxu0 %v9467_v45  ;;  %v9485_v24 = vld [vmem:[%s11055_s17 + $0x1d8] sm:$0xff]  }
0x1223   :  { %8692 = vmatprep.subr.bf16.mxu1 %v9468_v40  ;;  %8720 = vmatprep.subr.bf16.mxu0 %v9469_v47  ;;  %v9486_v45 = vld [vmem:[%s11055_s17 + $0x118] sm:$0xff]   ;;  %v9488_v47 = vld [vmem:[%s11055_s17 + $0x150] sm:$0xff]  }
0x1224   :  { %v9487_v40 = vld [vmem:[%s11055_s17 + $0x198] sm:$0xff]  }
0x1260   :  { %v5713_v32 = vpop.f32.mrf.mxu1  ;;  %v5764_v9 = vpop.f32.mrf.mxu0 }
0x1261   :  { %v5714_v46 = vadd.f32 %v5713_v32, %v11195_v25  ;;  %v5765_v10 = vadd.f32 %v5764_v9, %v11199_v18  ;;  %v9489_v32 = vld [vmem:[%s11055_s17 + $0x1d0] sm:$0xff]  }
0x1262   :  { %v5715_v6 = vpop.f32.mrf.mxu1  ;;  %v5766_v52 = vpop.f32.mrf.mxu0  ;;  %v9490_v9 = vld [vmem:[%s11055_s17 + $0x110] sm:$0xff]  }
0x1263   :  { %v5716_v26 = vadd.f32 %v5715_v6, %v11187_v62  ;;  %v5767_v4 = vadd.f32 %v5766_v52, %v11191_v17  ;;  %v6087_v41 = vmax.f32 %v5714_v46, 0.0  ;;  %v6089_v60 = vmax.f32 %v5765_v10, 0.0  ;;  %v9491_v6 = vld [vmem:[%s11055_s17 + $0x190] sm:$0xff]   ;;  %v9492_v52 = vld [vmem:[%s11055_s17 + $0x148] sm:$0xff]   ;;  %v9499_v46 = vld [vmem:[%s11055_s17 + $0x180] sm:$0xff]  }
0x1264   :  { %v5717_v12 = vpop.f32.mrf.mxu1  ;;  %v5768_v53 = vpop.f32.mrf.mxu0  ;;  %v9500_v10 = vld [vmem:[%s11055_s17 + $0x278] sm:$0xff]  }
0x1265   :  { %v5718_v58 = vadd.f32 %v5717_v12, %v11195_v25  ;;  %v5769_v63 = vadd.f32 %v5768_v53, %v11199_v18  ;;  %v6088_v21 = vmax.f32 %v5716_v26, 0.0  ;;  %v6090_v22 = vmax.f32 %v5767_v4, 0.0  ;;  %v9493_v12 = vld [vmem:[%s11055_s17 + $0x1c8] sm:$0xff]   ;;  %v9496_v4 = vld [vmem:[%s11055_s17 + $0x140] sm:$0xff]  }
0x1266   :  { %v5719_v49 = vpop.f32.mrf.mxu1  ;;  %v5770_v15 = vpop.f32.mrf.mxu0  ;;  %v9494_v53 = vld [vmem:[%s11055_s17 + $0x108] sm:$0xff]  }
0x1267   :  { %v5720_v7 = vadd.f32 %v5719_v49, %v11187_v62  ;;  %v5771_v33 = vadd.f32 %v5770_v15, %v11191_v17  ;;  %v6103_v20 = vmax.f32 %v5718_v58, 0.0  ;;  %v6105_v43 = vmax.f32 %v5769_v63, 0.0  ;;  %v9495_v26 = vld [vmem:[%s11055_s17 + $0x188] sm:$0xff]   ;;  %v9497_v58 = vld [vmem:[%s11055_s17 + $0x1c0] sm:$0xff]   ;;  %v9501_v49 = vld [vmem:[%s11055_s17 + $0x2f8] sm:$0xff]  }
0x1268   :  { %v9498_v63 = vld [vmem:[%s11055_s17 + $0x100] sm:$0xff]  }
0x1269   :  { %v6104_v13 = vmax.f32 %v5720_v7, 0.0  ;;  %v6106_v56 = vmax.f32 %v5771_v33, 0.0  ;;  %v6135_v34 = vpack.c.bf16 %v6103_v20, %v6087_v41  ;;  %v6137_v11 = vpack.c.bf16 %v6105_v43, %v6089_v60 }
0x126b   :  { %v6136_v35 = vpack.c.bf16 %v6104_v13, %v6088_v21  ;;  %v6138_v36 = vpack.c.bf16 %v6106_v56, %v6090_v22 }
0x126d   :  { %7230 = vmatprep.mubr.bf16.mxu1 %v6136_v35  ;;  %7278 = vmatprep.mubr.bf16.mxu0 %v6138_v36 }
0x126e   :  { %7231 = vmatmul.mubr.bf16.vlgmr.msra.gmra.mxu1 %v6135_v34  ;;  %7279 = vmatmul.mubr.bf16.vlgmr.msra.gmra.mxu0 %v6137_v11 }
0x126f   :  { %8693 = vmatpush3.bf16.msra.mxu1 %v9470_v48  ;;  %8721 = vmatpush3.bf16.msra.mxu0 %v9471_v29 }
0x1270   :  { %8694 = vmatprep.subr.bf16.mxu1 %v9472_v23  ;;  %8722 = vmatprep.subr.bf16.mxu0 %v9473_v54 }
0x1273   :  { %8695 = vmatpush3.bf16.msra.mxu1 %v9474_v55  ;;  %8723 = vmatpush3.bf16.msra.mxu0 %v9475_v16  ;;  %v5452_v16 = vrot.slane %v11183_v44, %v10430_v3 }
0x1274   :  { %8696 = vmatprep.subr.bf16.mxu1 %v9476_v42  ;;  %8724 = vmatprep.subr.bf16.mxu0 %v9477_v39  ;;  %v5460_v42 = vrot.slane %v11183_v44, %v10433_v37 }
0x1277   :  { %8697 = vmatpush3.bf16.msra.mxu1 %v9478_v38  ;;  %8725 = vmatpush3.bf16.msra.mxu0 %v9479_v51 }
0x1278   :  { %8698 = vmatprep.subr.bf16.mxu1 %v9480_v59  ;;  %8726 = vmatprep.subr.bf16.mxu0 %v9481_v8 }
0x127b   :  { %8699 = vmatpush3.bf16.msra.mxu1 %v9482_v1  ;;  %8727 = vmatpush3.bf16.msra.mxu0 %v9483_v27 }
0x127c   :  { %8700 = vmatprep.subr.bf16.mxu1 %v9484_v57  ;;  %8728 = vmatprep.subr.bf16.mxu0 %v9485_v24 }
0x127f   :  { %8701 = vmatpush3.bf16.msra.mxu1 %v9486_v45  ;;  %8729 = vmatpush3.bf16.msra.mxu0 %v9487_v40 }
0x1280   :  { %8702 = vmatprep.subr.bf16.mxu1 %v9488_v47  ;;  %8730 = vmatprep.subr.bf16.mxu0 %v9489_v32 }
0x1283   :  { %8703 = vmatpush3.bf16.msra.mxu1 %v9490_v9  ;;  %8731 = vmatpush3.bf16.msra.mxu0 %v9491_v6 }
0x1284   :  { %8704 = vmatprep.subr.bf16.mxu1 %v9492_v52  ;;  %8732 = vmatprep.subr.bf16.mxu0 %v9493_v12 }
0x1287   :  { %8705 = vmatpush3.bf16.msra.mxu1 %v9494_v53  ;;  %8733 = vmatpush3.bf16.msra.mxu0 %v9495_v26 }
0x1288   :  { %8706 = vmatprep.subr.bf16.mxu1 %v9496_v4  ;;  %8734 = vmatprep.subr.bf16.mxu0 %v9497_v58 }
0x128b   :  { %8707 = vmatpush3.bf16.msra.mxu1 %v9498_v63  ;;  %8735 = vmatpush3.bf16.msra.mxu0 %v9499_v46 }
0x128c   :  { %8748 = vmatprep.subr.bf16.mxu1 %v9500_v10  ;;  %8776 = vmatprep.subr.bf16.mxu0 %v9501_v49 }
0x129c   :  { %v5723_v15 = vpop.f32.mrf.mxu1  ;;  %v5774_v7 = vpop.f32.mrf.mxu0 }
0x129d   :  { %v5724_v33 = vadd.f32 %v5723_v15, %v11195_v25  ;;  %v5775_v20 = vadd.f32 %v5774_v7, %v11199_v18 }
0x129e   :  { %v5725_v43 = vpop.f32.mrf.mxu1  ;;  %v5776_v21 = vpop.f32.mrf.mxu0 }
0x129f   :  { %v5726_v22 = vadd.f32 %v5725_v43, %v11187_v62  ;;  %v5777_v13 = vadd.f32 %v5776_v21, %v11191_v17  ;;  %v6119_v56 = vmax.f32 %v5724_v33, 0.0  ;;  %v6121_v41 = vmax.f32 %v5775_v20, 0.0  ;;  %v9502_v43 = vld [vmem:[%s11055_s17 + $0x238] sm:$0xff]  }
0x12a0   :  { %v5727_v60 = vpop.f32.mrf.mxu1  ;;  %v5778_v35 = vpop.f32.mrf.mxu0  ;;  %v5456_v62 = vrot.slane %v11183_v44, %v10424_v61  ;;  %v5464_v17 = vrot.slane %v11183_v44, %v10427_v2  ;;  %v9503_v21 = vld [vmem:[%s11055_s17 + $0x2b8] sm:$0xff]  }
0x12a1   :  { %v6120_v36 = vmax.f32 %v5726_v22, 0.0  ;;  %v6122_v48 = vmax.f32 %v5777_v13, 0.0  ;;  %v6151_v54 = vpack.c.bf16 %v6119_v56, %v6119_v56  ;;  %v6153_v25 = vpack.c.bf16 %v6121_v41, %v6121_v41 }
0x12a2   :  { %v5728_v29 = vpop.f32.mrf.mxu1  ;;  %v5779_v34 = vpop.f32.mrf.mxu0 }
0x12a3   :  { %v6152_v11 = vpack.c.bf16 %v6120_v36, %v6120_v36  ;;  %v6154_v23 = vpack.c.bf16 %v6122_v48, %v6122_v48  ;;  %v9504_v36 = vld [vmem:[%s11055_s17 + $0x270] sm:$0xff]  }
0x12a4   :  { %v5815_v55 = vpop.f32.mrf.mxu1  ;;  %v5866_v18 = vpop.f32.mrf.mxu0  ;;  %v9505_v48 = vld [vmem:[%s11055_s17 + $0x2f0] sm:$0xff]  }
0x12a5   :  { %7238 = vmatprep.mubr.bf16.mxu1 %v6152_v11  ;;  %7286 = vmatprep.mubr.bf16.mxu0 %v6154_v23  ;;  %v5816_v24 = vadd.f32 %v5815_v55, %v5452_v16  ;;  %v5867_v45 = vadd.f32 %v5866_v18, %v5460_v42  ;;  %v9506_v55 = vld [vmem:[%s11055_s17 + $0x230] sm:$0xff]  }
0x12a6   :  { %v5817_v39 = vpop.f32.mrf.mxu1  ;;  %v5868_v38 = vpop.f32.mrf.mxu0  ;;  %7239 = vmatmul.mubr.bf16.gmra.mxu1 %v6151_v54  ;;  %7287 = vmatmul.mubr.bf16.gmra.mxu0 %v6153_v25  ;;  %v9507_v18 = vld [vmem:[%s11055_s17 + $0x2b0] sm:$0xff]  }
0x12a7   :  { %v5818_v8 = vadd.f32 %v5817_v39, %v5456_v62  ;;  %v5869_v1 = vadd.f32 %v5868_v38, %v5464_v17  ;;  %v6091_v63 = vmax.f32 %v5816_v24, 0.0  ;;  %v6093_v46 = vmax.f32 %v5867_v45, 0.0  ;;  %v9508_v38 = vld [vmem:[%s11055_s17 + $0x268] sm:$0xff]  }
0x12a8   :  { %v5819_v51 = vpop.f32.mrf.mxu1  ;;  %v5870_v59 = vpop.f32.mrf.mxu0  ;;  %v9511_v24 = vld [vmem:[%s11055_s17 + $0x2a8] sm:$0xff]  }
0x12a9   :  { %v5820_v27 = vadd.f32 %v5819_v51, %v5452_v16  ;;  %v5871_v57 = vadd.f32 %v5870_v59, %v5460_v42  ;;  %v6092_v53 = vmax.f32 %v5818_v8, 0.0  ;;  %v6094_v26 = vmax.f32 %v5869_v1, 0.0  ;;  %v9509_v51 = vld [vmem:[%s11055_s17 + $0x2e8] sm:$0xff]  }
0x12aa   :  { %v5821_v40 = vpop.f32.mrf.mxu1  ;;  %v5872_v47 = vpop.f32.mrf.mxu0 }
0x12ab   :  { %v5822_v32 = vadd.f32 %v5821_v40, %v5456_v62  ;;  %v5873_v9 = vadd.f32 %v5872_v47, %v5464_v17  ;;  %v6107_v6 = vmax.f32 %v5820_v27, 0.0  ;;  %v6109_v52 = vmax.f32 %v5871_v57, 0.0  ;;  %v9510_v57 = vld [vmem:[%s11055_s17 + $0x228] sm:$0xff]  }
0x12ac   :  { %v5825_v44 = vpop.f32.mrf.mxu1  ;;  %v5876_v12 = vpop.f32.mrf.mxu0 }
0x12ad   :  { %v6108_v4 = vmax.f32 %v5822_v32, 0.0  ;;  %v6110_v58 = vmax.f32 %v5873_v9, 0.0  ;;  %v6139_v22 = vpack.c.bf16 %v6107_v6, %v6091_v63  ;;  %v6141_v13 = vpack.c.bf16 %v6109_v52, %v6093_v46  ;;  %v9513_v9 = vld [vmem:[%s11055_s17 + $0x2e0] sm:$0xff]   ;;  %v9516_v46 = vld [vmem:[%s11055_s17 + $0x258] sm:$0xff]  }
0x12ae   :  { %v5827_v10 = vpop.f32.mrf.mxu1  ;;  %v5878_v49 = vpop.f32.mrf.mxu0  ;;  %v5826_v56 = vadd.f32 %v5825_v44, %v5452_v16  ;;  %v5877_v41 = vadd.f32 %v5876_v12, %v5460_v42  ;;  %v11260_v16 = vld [vmem:[%s11180_s27 + $0x8] sm:$0xff]  ;;  %v9515_v63 = vld [vmem:[%s11055_s17 + $0x2a0] sm:$0xff]  }
0x12af   :  { %v6140_v15 = vpack.c.bf16 %v6108_v4, %v6092_v53  ;;  %v6142_v7 = vpack.c.bf16 %v6110_v58, %v6094_v26  ;;  %v5828_v33 = vadd.f32 %v5827_v10, %v5456_v62  ;;  %v5879_v20 = vadd.f32 %v5878_v49, %v5464_v17  ;;  %v9514_v26 = vld [vmem:[%s11055_s17 + $0x220] sm:$0xff]  }
0x12b0   :  { %v5829_v60 = vpop.f32.mrf.mxu1  ;;  %v5880_v35 = vpop.f32.mrf.mxu0  ;;  %v6123_v62 = vmax.f32 %v5826_v56, 0.0  ;;  %v6125_v17 = vmax.f32 %v5877_v41, 0.0  ;;  %v11270_v59 = vrot.slane %v11260_v16, %v10349_v28  ;;  %v11274_v8 = vrot.slane %v11260_v16, %v10352_v30  ;;  %v9512_v28 = vld [vmem:[%s11055_s17 + $0x260] sm:$0xff]  }
0x12b1   :  { %v6124_v29 = vmax.f32 %v5828_v33, 0.0  ;;  %v6126_v34 = vmax.f32 %v5879_v20, 0.0  ;;  %7326 = vmatprep.mubr.bf16.mxu1 %v6140_v15  ;;  %7374 = vmatprep.mubr.bf16.mxu0 %v6142_v7  ;;  %v9517_v33 = vld [vmem:[%s11055_s17 + $0x2d8] sm:$0xff]   ;;  %v9520_v35 = vld [vmem:[%s11055_s17 + $0x250] sm:$0xff]  }
0x12b2   :  { %v5830_v11 = vpop.f32.mrf.mxu1  ;;  %v5881_v23 = vpop.f32.mrf.mxu0  ;;  %7327 = vmatmul.mubr.bf16.vlgmr.msra.gmra.mxu1 %v6139_v22  ;;  %7375 = vmatmul.mubr.bf16.vlgmr.msra.gmra.mxu0 %v6141_v13  ;;  %v6155_v45 = vpack.c.bf16 %v6123_v62, %v6123_v62  ;;  %v6157_v40 = vpack.c.bf16 %v6125_v17, %v6125_v17  ;;  %v9518_v13 = vld [vmem:[%s11055_s17 + $0x218] sm:$0xff]  }
0x12b3   :  { %v6156_v54 = vpack.c.bf16 %v6124_v29, %v6124_v29  ;;  %v6158_v25 = vpack.c.bf16 %v6126_v34, %v6126_v34  ;;  %8749 = vmatpush3.bf16.msra.mxu1 %v9502_v43  ;;  %8777 = vmatpush3.bf16.msra.mxu0 %v9503_v21  ;;  %v9519_v60 = vld [vmem:[%s11055_s17 + $0x298] sm:$0xff]   ;;  %v9522_v34 = vld [vmem:[%s11055_s17 + $0x210] sm:$0xff]  }
0x12b4   :  { %v11262_v42 = vpop.f32.mrf.mxu1  ;;  %v11264_v39 = vpop.f32.mrf.mxu0  ;;  %8750 = vmatprep.subr.bf16.mxu1 %v9504_v36  ;;  %8778 = vmatprep.subr.bf16.mxu0 %v9505_v48  ;;  %v9521_v36 = vld [vmem:[%s11055_s17 + $0x2d0] sm:$0xff]  }
0x12b5   :  { %7334 = vmatprep.mubr.bf16.mxu1 %v6156_v54  ;;  %7382 = vmatprep.mubr.bf16.mxu0 %v6158_v25  ;;  %v9523_v54 = vld [vmem:[%s11055_s17 + $0x290] sm:$0xff]   ;;  %v9524_v25 = vld [vmem:[%s11055_s17 + $0x248] sm:$0xff]  }
0x12b6   :  { %v5919_v1 = vpop.f32.mrf.mxu1  ;;  %v5970_v27 = vpop.f32.mrf.mxu0 }
0x12b7   :  { %8751 = vmatpush3.bf16.msra.mxu1 %v9506_v55  ;;  %8779 = vmatpush3.bf16.msra.mxu0 %v9507_v18  ;;  %v5920_v30 = vadd.f32 %v5919_v1, %v11270_v59  ;;  %v5971_v6 = vadd.f32 %v5970_v27, %v11274_v8  ;;  %v9525_v55 = vld [vmem:[%s11055_s17 + $0x2c8] sm:$0xff]   ;;  %v5468_v18 = vrot.slane %v11260_v16, %v10355_v31 }
0x12b8   :  { %v5921_v47 = vpop.f32.mrf.mxu1  ;;  %v11278_v32 = vpop.f32.mrf.mxu0  ;;  %8752 = vmatprep.subr.bf16.mxu1 %v9508_v38  ;;  %8780 = vmatprep.subr.bf16.mxu0 %v9509_v51  ;;  %v5476_v38 = vrot.slane %v11260_v16, %v10358_v14  ;;  %v9526_v51 = vld [vmem:[%s11055_s17 + $0x208] sm:$0xff]   ;;  %v9529_v14 = vld [vmem:[%s11055_s17 + $0x2c0] sm:$0xff]  }
0x12b9   :  { %v6096_v10 = vmax.f32 %v5920_v30, 0.0  ;;  %v6098_v49 = vmax.f32 %v5971_v6, 0.0  ;;  %v5922_v1 = vadd.f32 %v5921_v47, %v5468_v18 }
0x12ba   :  { %v5923_v52 = vpop.f32.mrf.mxu1  ;;  %v5974_v44 = vpop.f32.mrf.mxu0  ;;  %7335 = vmatmul.mubr.bf16.gmra.mxu1 %v6155_v45  ;;  %7383 = vmatmul.mubr.bf16.gmra.mxu0 %v6157_v40  ;;  %v9528_v45 = vld [vmem:[%s11055_s17 + $0x240] sm:$0xff]   ;;  %v5973_v31 = vadd.f32 %v11278_v32, %v5476_v38  ;;  %v5969_v6 = vadd.f32 %v11264_v39, %v5476_v38 }
0x12bb   :  { %v5924_v12 = vadd.f32 %v5923_v52, %v11270_v59  ;;  %v5975_v53 = vadd.f32 %v5974_v44, %v11274_v8  ;;  %8753 = vmatpush3.bf16.msra.mxu1 %v9510_v57  ;;  %8781 = vmatpush3.bf16.msra.mxu0 %v9511_v24  ;;  %v9527_v24 = vld [vmem:[%s11055_s17 + $0x288] sm:$0xff]   ;;  %v9530_v52 = vld [vmem:[%s11055_s17 + $0x200] sm:$0xff]   ;;  %v6111_v44 = vmax.f32 %v5922_v1, 0.0 }
0x12bc   :  { %v11287_v4 = vpop.f32.mrf.mxu1  ;;  %v11289_v58 = vpop.f32.mrf.mxu0  ;;  %8754 = vmatprep.subr.bf16.mxu1 %v9512_v28  ;;  %8782 = vmatprep.subr.bf16.mxu0 %v9513_v9  ;;  %v5918_v28 = vadd.f32 %v11262_v42, %v5468_v18  ;;  %v9541_v1 = vld [vmem:[%s11055_s17 + $0x3e8] sm:$0xff]  }
0x12bd   :  { %v6112_v15 = vmax.f32 %v5924_v12, 0.0  ;;  %v6114_v7 = vmax.f32 %v5975_v53, 0.0  ;;  %v9532_v53 = vld [vmem:[%s11055_s17 + $0x378] sm:$0xff]  }
0x12be   :  { %v5929_v20 = vpop.f32.mrf.mxu1  ;;  %v5980_v43 = vpop.f32.mrf.mxu0 }
0x12bf   :  { %v6144_v21 = vpack.c.bf16 %v6112_v15, %v6096_v10  ;;  %v6146_v22 = vpack.c.bf16 %v6114_v7, %v6098_v49  ;;  %8755 = vmatpush3.bf16.msra.mxu1 %v9514_v26  ;;  %8783 = vmatpush3.bf16.msra.mxu0 %v9515_v63  ;;  %v5930_v40 = vadd.f32 %v5929_v20, %v11270_v59  ;;  %v9531_v59 = vld [vmem:[%s11055_s17 + $0x280] sm:$0xff]   ;;  %v6113_v26 = vmax.f32 %v5973_v31, 0.0 }
0x12c0   :  { %v5931_v56 = vpop.f32.mrf.mxu1  ;;  %v5982_v41 = vpop.f32.mrf.mxu0  ;;  %8756 = vmatprep.subr.bf16.mxu1 %v9516_v46  ;;  %8784 = vmatprep.subr.bf16.mxu0 %v9517_v33  ;;  %v5981_v47 = vadd.f32 %v5980_v43, %v11274_v8  ;;  %v9533_v8 = vld [vmem:[%s11055_s17 + $0x3f8] sm:$0xff]   ;;  %v6095_v63 = vmax.f32 %v5918_v28, 0.0  ;;  %v6097_v49 = vmax.f32 %v5969_v6, 0.0  ;;  %v11339_v15 = vrot.slane %v11260_v16, %v10424_v61  ;;  %v9543_v28 = vld [vmem:[%s11055_s17 + $0x3a8] sm:$0xff]   ;;  %v9546_v6 = vld [vmem:[%s11055_s17 + $0x320] sm:$0xff]  }
0x12c1   :  { %7422 = vmatprep.mubr.bf16.mxu1 %v6144_v21  ;;  %7470 = vmatprep.mubr.bf16.mxu0 %v6146_v22  ;;  %v6128_v42 = vmax.f32 %v5930_v40, 0.0  ;;  %v5928_v33 = vadd.f32 %v11287_v4, %v5468_v18  ;;  %v11344_v20 = vrot.slane %v11260_v16, %v10427_v2  ;;  %v9534_v22 = vld [vmem:[%s11055_s17 + $0x338] sm:$0xff]   ;;  %v5979_v56 = vadd.f32 %v11289_v58, %v5476_v38  ;;  %v9536_v4 = vld [vmem:[%s11055_s17 + $0x370] sm:$0xff]  }
0x12c2   :  { %v5932_v48 = vpop.f32.mrf.mxu1  ;;  %v5983_v29 = vpop.f32.mrf.mxu0  ;;  %v6130_v46 = vmax.f32 %v5981_v47, 0.0  ;;  %v6143_v7 = vpack.c.bf16 %v6111_v44, %v6095_v63  ;;  %v9539_v38 = vld [vmem:[%s11055_s17 + $0x3b0] sm:$0xff]   ;;  %v9544_v47 = vld [vmem:[%s11055_s17 + $0x360] sm:$0xff]   ;;  %v9548_v44 = vld [vmem:[%s11055_s17 + $0x358] sm:$0xff]  }
0x12c3   :  { %8757 = vmatpush3.bf16.msra.mxu1 %v9518_v13  ;;  %8785 = vmatpush3.bf16.msra.mxu0 %v9519_v60  ;;  %v6145_v13 = vpack.c.bf16 %v6113_v26, %v6097_v49  ;;  %v6160_v61 = vpack.c.bf16 %v6128_v42, %v6128_v42  ;;  %v9535_v60 = vld [vmem:[%s11055_s17 + $0x3b8] sm:$0xff]   ;;  %v9537_v29 = vld [vmem:[%s11055_s17 + $0x3f0] sm:$0xff]   ;;  %v6127_v58 = vmax.f32 %v5928_v33, 0.0  ;;  %v9556_v49 = vld [vmem:[%s11055_s17 + $0x348] sm:$0xff]   ;;  %v5484_v33 = vrot.slane %v11260_v16, %v10430_v3 }
0x12c4   :  { %v11299_v11 = vpop.f32.mrf.mxu1  ;;  %v11301_v23 = vpop.f32.mrf.mxu0  ;;  %8758 = vmatprep.subr.bf16.mxu1 %v9520_v35  ;;  %8786 = vmatprep.subr.bf16.mxu0 %v9521_v36  ;;  %v6162_v35 = vpack.c.bf16 %v6130_v46, %v6130_v46  ;;  %v9551_v26 = vld [vmem:[%s11055_s17 + $0x398] sm:$0xff]   ;;  %v9552_v42 = vld [vmem:[%s11055_s17 + $0x350] sm:$0xff]   ;;  %v9561_v3 = vld [vmem:[%s11055_s17 + $0x3c0] sm:$0xff]  }
0x12c5   :  { %v9554_v63 = vld [vmem:[%s11055_s17 + $0x310] sm:$0xff]  }
0x12c6   :  { %v6021_v62 = vpop.f32.mrf.mxu1  ;;  %v11308_v17 = vpop.f32.mrf.mxu0  ;;  %v9555_v46 = vld [vmem:[%s11055_s17 + $0x390] sm:$0xff]  }
0x12c7   :  { %8759 = vmatpush3.bf16.msra.mxu1 %v9522_v34  ;;  %8787 = vmatpush3.bf16.msra.mxu0 %v9523_v54  ;;  %v6022_v34 = vadd.f32 %v6021_v62, %v11339_v15  ;;  %v6073_v54 = vadd.f32 %v11308_v17, %v11344_v20  ;;  %v9542_v17 = vld [vmem:[%s11055_s17 + $0x328] sm:$0xff]  }
0x12c8   :  { %v11313_v27 = vpop.f32.mrf.mxu1  ;;  %v11315_v57 = vpop.f32.mrf.mxu0  ;;  %8760 = vmatprep.subr.bf16.mxu1 %v9524_v25  ;;  %8788 = vmatprep.subr.bf16.mxu0 %v9525_v55  ;;  %v9538_v25 = vld [vmem:[%s11055_s17 + $0x330] sm:$0xff]   ;;  %v6129_v55 = vmax.f32 %v5979_v56, 0.0  ;;  %v9560_v56 = vld [vmem:[%s11055_s17 + $0x340] sm:$0xff]  }
0x12c9   :  { %v6102_v31 = vmax.f32 %v6073_v54, 0.0 }
0x12ca   :  { %v6025_v9 = vpop.f32.mrf.mxu1  ;;  %v6076_v30 = vpop.f32.mrf.mxu0  ;;  %v6161_v40 = vpack.c.bf16 %v6129_v55, %v6129_v55  ;;  %v8120_v55 = vld [vmem:[%s7776_s5] ss:$0 sm:$0xff] }
0x12cb   :  { %8761 = vmatpush3.bf16.msra.mxu1 %v9526_v51  ;;  %8789 = vmatpush3.bf16.msra.mxu0 %v9527_v24  ;;  %v6026_v41 = vadd.f32 %v6025_v9, %v11339_v15  ;;  %v6077_v2 = vadd.f32 %v6076_v30, %v11344_v20  ;;  %v9540_v51 = vld [vmem:[%s11055_s17 + $0x368] sm:$0xff]   ;;  %v6100_v24 = vmax.f32 %v6022_v34, 0.0  ;;  %v9545_v30 = vld [vmem:[%s11055_s17 + $0x3e0] sm:$0xff]  }
0x12cc   :  { %v11326_v32 = vpop.f32.mrf.mxu1  ;;  %v11328_v12 = vpop.f32.mrf.mxu0  ;;  %8762 = vmatprep.subr.bf16.mxu1 %v9528_v45  ;;  %8790 = vmatprep.subr.bf16.mxu0 %v9529_v14  ;;  %v6159_v45 = vpack.c.bf16 %v6127_v58, %v6127_v58 }
0x12cd   :  { %v6116_v18 = vmax.f32 %v6026_v41, 0.0  ;;  %v6118_v62 = vmax.f32 %v6077_v2, 0.0 }
0x12ce   :  { %v11333_v10 = vpop.f32.mrf.mxu1  ;;  %v11335_v39 = vpop.f32.mrf.mxu0 }
0x12cf   :  { %8763 = vmatpush3.bf16.msra.mxu1 %v9530_v52  ;;  %8791 = vmatpush3.bf16.msra.mxu0 %v9531_v59  ;;  %v6148_v14 = vpack.c.bf16 %v6116_v18, %v6100_v24  ;;  %v6150_v9 = vpack.c.bf16 %v6118_v62, %v6102_v31  ;;  %v9547_v52 = vld [vmem:[%s11055_s17 + $0x3a0] sm:$0xff]   ;;  %v9549_v59 = vld [vmem:[%s11055_s17 + $0x3d8] sm:$0xff]   ;;  %v6032_v41 = vadd.f32 %v11333_v10, %v11339_v15 }
0x12d0   :  { %v6033_v43 = vpop.f32.mrf.mxu1  ;;  %v6084_v21 = vpop.f32.mrf.mxu0  ;;  %8804 = vmatprep.subr.bf16.mxu1 %v9532_v53  ;;  %8832 = vmatprep.subr.bf16.mxu0 %v9533_v8  ;;  %v9550_v53 = vld [vmem:[%s11055_s17 + $0x318] sm:$0xff]   ;;  %v9553_v8 = vld [vmem:[%s11055_s17 + $0x3d0] sm:$0xff]  }
0x12d1   :  { %v5492_v43 = vrot.slane %v11260_v16, %v10433_v37  ;;  %v9558_v21 = vld [vmem:[%s11055_s17 + $0x308] sm:$0xff]   ;;  %v6083_v37 = vadd.f32 %v11335_v39, %v11344_v20 }
0x12d2   :  { %7423 = vmatmul.mubr.bf16.vlgmr.msra.gmra.mxu1 %v6143_v7  ;;  %v6034_v36 = vpop.f32.mrf.mxu1  ;;  %v6085_v48 = vpop.f32.mrf.mxu0  ;;  %7471 = vmatmul.mubr.bf16.vlgmr.msra.gmra.mxu0 %v6145_v13  ;;  %v9557_v7 = vld [vmem:[%s11055_s17 + $0x3c8] sm:$0xff]  }
0x12d3   :  { %7430 = vmatprep.mubr.bf16.mxu1 %v6160_v61  ;;  %7478 = vmatprep.mubr.bf16.mxu0 %v6162_v35  ;;  %v9559_v13 = vld [vmem:[%s11055_s17 + $0x388] sm:$0xff]   ;;  %v6075_v61 = vadd.f32 %v11315_v57, %v5492_v43  ;;  %v6071_v16 = vadd.f32 %v11301_v23, %v5492_v43  ;;  %v9563_v35 = vld [vmem:[%s11055_s17 + $0x380] sm:$0xff]   ;;  %v6132_v57 = vmax.f32 %v6032_v41, 0.0  ;;  %v6134_v10 = vmax.f32 %v6083_v37, 0.0 }
0x12d4   :  { %8805 = vmatpush3.bf16.msra.mxu1 %v9534_v22  ;;  %8833 = vmatpush3.bf16.msra.mxu0 %v9535_v60  ;;  %v6024_v22 = vadd.f32 %v11313_v27, %v5484_v33  ;;  %v6020_v60 = vadd.f32 %v11299_v11, %v5484_v33  ;;  %v9562_v27 = vld [vmem:[%s11055_s17 + $0x300] sm:$0xff]   ;;  %v6030_v11 = vadd.f32 %v11326_v32, %v5484_v33 }
0x12d5   :  { %8806 = vmatprep.subr.bf16.mxu1 %v9536_v4  ;;  %8834 = vmatprep.subr.bf16.mxu0 %v9537_v29  ;;  %v6117_v2 = vmax.f32 %v6075_v61, 0.0  ;;  %v6101_v15 = vmax.f32 %v6071_v16, 0.0  ;;  %v6081_v39 = vadd.f32 %v11328_v12, %v5492_v43  ;;  %v6164_v20 = vpack.c.bf16 %v6132_v57, %v6132_v57 }
0x12d6   :  { %v6115_v4 = vmax.f32 %v6024_v22, 0.0  ;;  %v6099_v36 = vmax.f32 %v6020_v60, 0.0  ;;  %v6166_v29 = vpack.c.bf16 %v6134_v10, %v6134_v10  ;;  %v6131_v34 = vmax.f32 %v6030_v11, 0.0 }
0x12d7   :  { %v6149_v23 = vpack.c.bf16 %v6117_v2, %v6101_v15  ;;  %v6133_v58 = vmax.f32 %v6081_v39, 0.0 }
0x12d8   :  { %8807 = vmatpush3.bf16.msra.mxu1 %v9538_v25  ;;  %8835 = vmatpush3.bf16.msra.mxu0 %v9539_v38  ;;  %v6147_v48 = vpack.c.bf16 %v6115_v4, %v6099_v36  ;;  %v6163_v54 = vpack.c.bf16 %v6131_v34, %v6131_v34 }
0x12d9   :  { %8808 = vmatprep.subr.bf16.mxu1 %v9540_v51  ;;  %8836 = vmatprep.subr.bf16.mxu0 %v9541_v1  ;;  %v6165_v25 = vpack.c.bf16 %v6133_v58, %v6133_v58 }
0x12da   :  { %7431 = vmatmul.mubr.bf16.gmra.mxu1 %v6159_v45  ;;  %7479 = vmatmul.mubr.bf16.gmra.mxu0 %v6161_v40 }
0x12db   :  { %7518 = vmatprep.mubr.bf16.mxu1 %v6148_v14  ;;  %7566 = vmatprep.mubr.bf16.mxu0 %v6150_v9 }
0x12dc   :  { %8809 = vmatpush3.bf16.msra.mxu1 %v9542_v17  ;;  %8837 = vmatpush3.bf16.msra.mxu0 %v9543_v28 }
0x12dd   :  { %8810 = vmatprep.subr.bf16.mxu1 %v9544_v47  ;;  %8838 = vmatprep.subr.bf16.mxu0 %v9545_v30 }
0x12e0   :  { %8811 = vmatpush3.bf16.msra.mxu1 %v9546_v6  ;;  %8839 = vmatpush3.bf16.msra.mxu0 %v9547_v52 }
0x12e1   :  { %8812 = vmatprep.subr.bf16.mxu1 %v9548_v44  ;;  %8840 = vmatprep.subr.bf16.mxu0 %v9549_v59 }
0x12e4   :  { %8813 = vmatpush3.bf16.msra.mxu1 %v9550_v53  ;;  %8841 = vmatpush3.bf16.msra.mxu0 %v9551_v26 }
0x12e5   :  { %8814 = vmatprep.subr.bf16.mxu1 %v9552_v42  ;;  %8842 = vmatprep.subr.bf16.mxu0 %v9553_v8 }
0x12e8   :  { %8815 = vmatpush3.bf16.msra.mxu1 %v9554_v63  ;;  %8843 = vmatpush3.bf16.msra.mxu0 %v9555_v46 }
0x12e9   :  { %8816 = vmatprep.subr.bf16.mxu1 %v9556_v49  ;;  %8844 = vmatprep.subr.bf16.mxu0 %v9557_v7 }
0x12ec   :  { %8817 = vmatpush3.bf16.msra.mxu1 %v9558_v21  ;;  %8845 = vmatpush3.bf16.msra.mxu0 %v9559_v13 }
0x12ed   :  { %8818 = vmatprep.subr.bf16.mxu1 %v9560_v56  ;;  %8846 = vmatprep.subr.bf16.mxu0 %v9561_v3 }
0x12f0   :  { %8819 = vmatpush3.bf16.msra.mxu1 %v9562_v27  ;;  %8847 = vmatpush3.bf16.msra.mxu0 %v9563_v35 }
0x12f1   :  { %9255 = vmatprep.subr.mxu1 %v9687_v0 }
0x12f3   :  { %7519 = vmatmul.mubr.bf16.vlgmr.msra.gmra.mxu1 %v6147_v48  ;;  %7567 = vmatmul.mubr.bf16.vlgmr.msra.gmra.mxu0 %v6149_v23 }
0x12f4   :  { %7526 = vmatprep.mubr.bf16.mxu1 %v6164_v20  ;;  %7574 = vmatprep.mubr.bf16.mxu0 %v6166_v29 }
0x12fb   :  { %7527 = vmatmul.mubr.bf16.gmra.mxu1 %v6163_v54  ;;  %7575 = vmatmul.mubr.bf16.gmra.mxu0 %v6165_v25 }
0x12fc   :  { %9261 = vmatprep.mubr.msk.f32.mxu1 %vm9689_vm0, %v9687_v0 }
0x132e   :  { %v8652_v32 = vpop.f32.mrf.mxu1  ;;  %v8680_v12 = vpop.f32.mrf.mxu0 }
0x1330   :  { %v8653_v18 = vpop.f32.mrf.mxu1  ;;  %v8681_v38 = vpop.f32.mrf.mxu0 }
0x1331   :  { %v8654_v51 = vadd.f32 %v8653_v18, %v8652_v32  ;;  %v8682_v62 = vadd.f32 %v8681_v38, %v8680_v12 }
0x1332   :  { %v8655_v1 = vpop.f32.mrf.mxu1  ;;  %v8683_v24 = vpop.f32.mrf.mxu0 }
0x1333   :  { %v7233_v45 = vadd.f32 %v8654_v51, %v8120_v55 }
0x1334   :  { %v8656_v31 = vpop.f32.mrf.mxu1  ;;  %v8684_v17 = vpop.f32.mrf.mxu0 }
0x1335   :  { %v7281_v40 = vadd.f32 %v8682_v62, %v7233_v45  ;;  %v8657_v14 = vadd.f32 %v8656_v31, %v8655_v1  ;;  %v8685_v28 = vadd.f32 %v8684_v17, %v8683_v24 }
0x1337   :  { %v7236_v47 = vadd.f32 %v8657_v14, %v8120_v55 }
0x1339   :  { %v7284_v9 = vadd.f32 %v8685_v28, %v7236_v47 }
0x1366   :  { %v8658_v30 = vpop.f32.mrf.mxu1  ;;  %v8686_v6 = vpop.f32.mrf.mxu0 }
0x1368   :  { %v8659_v52 = vpop.f32.mrf.mxu1  ;;  %v8687_v44 = vpop.f32.mrf.mxu0 }
0x1369   :  { %v8660_v59 = vadd.f32 %v8659_v52, %v8658_v30  ;;  %v8688_v53 = vadd.f32 %v8687_v44, %v8686_v6 }
0x136a   :  { %v8661_v26 = vpop.f32.mrf.mxu1  ;;  %v8689_v42 = vpop.f32.mrf.mxu0 }
0x136b   :  { %v7241_v8 = vadd.f32 %v8660_v59, %v8120_v55 }
0x136c   :  { %v8662_v63 = vpop.f32.mrf.mxu1  ;;  %v8690_v46 = vpop.f32.mrf.mxu0 }
0x136d   :  { %v7289_v49 = vadd.f32 %v8688_v53, %v7241_v8 }
0x1372   :  { %v8708_v7 = vpop.f32.mrf.mxu1  ;;  %v8736_v33 = vpop.f32.mrf.mxu0 }
0x1374   :  { %v8709_v43 = vpop.f32.mrf.mxu1  ;;  %v8737_v21 = vpop.f32.mrf.mxu0 }
0x1375   :  { %v8710_v22 = vadd.f32 %v8709_v43, %v8708_v7  ;;  %v8738_v13 = vadd.f32 %v8737_v21, %v8736_v33 }
0x1376   :  { %v8711_v56 = vpop.f32.mrf.mxu1  ;;  %v8739_v61 = vpop.f32.mrf.mxu0 }
0x1377   :  { %v7329_v41 = vadd.f32 %v8710_v22, %v7281_v40 }
0x1378   :  { %v8712_v3 = vpop.f32.mrf.mxu1  ;;  %v8740_v60 = vpop.f32.mrf.mxu0 }
0x1379   :  { %v7377_v37 = vadd.f32 %v8738_v13, %v7329_v41  ;;  %v8713_v51 = vadd.f32 %v8712_v3, %v8711_v56  ;;  %v8741_v24 = vadd.f32 %v8740_v60, %v8739_v61 }
0x137a   :  { %v8714_v16 = vpop.f32.mrf.mxu1  ;;  %v8742_v27 = vpop.f32.mrf.mxu0 }
0x137b   :  { %v7332_v62 = vadd.f32 %v8713_v51, %v7284_v9 }
0x137c   :  { %v8715_v4 = vpop.f32.mrf.mxu1  ;;  %v8743_v35 = vpop.f32.mrf.mxu0 }
0x137d   :  { %v8716_v1 = vadd.f32 %v8715_v4, %v8714_v16  ;;  %v7380_v17 = vadd.f32 %v8741_v24, %v7332_v62  ;;  %v8744_v30 = vadd.f32 %v8743_v35, %v8742_v27 }
0x137e   :  { %v8717_v2 = vpop.f32.mrf.mxu1  ;;  %v8745_v57 = vpop.f32.mrf.mxu0 }
0x137f   :  { %v7337_v40 = vadd.f32 %v8716_v1, %v7289_v49 }
0x1380   :  { %v8718_v36 = vpop.f32.mrf.mxu1  ;;  %v8746_v10 = vpop.f32.mrf.mxu0 }
0x1381   :  { %v7385_v53 = vadd.f32 %v8744_v30, %v7337_v40 }
0x1392   :  { %v8764_v15 = vpop.f32.mrf.mxu1  ;;  %v8792_v48 = vpop.f32.mrf.mxu0 }
0x1394   :  { %v8765_v11 = vpop.f32.mrf.mxu1  ;;  %v8793_v23 = vpop.f32.mrf.mxu0 }
0x1395   :  { %v8766_v14 = vadd.f32 %v8765_v11, %v8764_v15  ;;  %v8794_v63 = vadd.f32 %v8793_v23, %v8792_v48 }
0x1396   :  { %v8767_v39 = vpop.f32.mrf.mxu1  ;;  %v8795_v20 = vpop.f32.mrf.mxu0 }
0x1397   :  { %v7425_v26 = vadd.f32 %v8766_v14, %v7377_v37 }
0x1398   :  { %v8768_v29 = vpop.f32.mrf.mxu1  ;;  %v8796_v34 = vpop.f32.mrf.mxu0 }
0x1399   :  { %v8769_v45 = vadd.f32 %v8768_v29, %v8767_v39  ;;  %v8797_v42 = vadd.f32 %v8796_v34, %v8795_v20  ;;  %v7473_v22 = vadd.f32 %v8794_v63, %v7425_v26 }
0x139a   :  { %v8770_v58 = vpop.f32.mrf.mxu1  ;;  %v8798_v54 = vpop.f32.mrf.mxu0 }
0x139b   :  { %v7428_v6 = vadd.f32 %v8769_v45, %v7380_v17 }
0x139c   :  { %v8771_v25 = vpop.f32.mrf.mxu1  ;;  %v8799_v32 = vpop.f32.mrf.mxu0 }
0x139d   :  { %v8772_v52 = vadd.f32 %v8771_v25, %v8770_v58  ;;  %v7476_v46 = vadd.f32 %v8797_v42, %v7428_v6  ;;  %v8800_v13 = vadd.f32 %v8799_v32, %v8798_v54  ;;  %v8249_v42 = vld [vmem:[%s7777_s11] ss:$0 sm:$0xff] }
0x139e   :  { %v8773_v12 = vpop.f32.mrf.mxu1  ;;  %v8801_v55 = vpop.f32.mrf.mxu0 }
0x139f   :  { %v7433_v7 = vadd.f32 %v8772_v52, %v7385_v53 }
0x13a0   :  { %v8774_v18 = vpop.f32.mrf.mxu1  ;;  %v8802_v38 = vpop.f32.mrf.mxu0 }
0x13a1   :  { %v7481_v60 = vadd.f32 %v8800_v13, %v7433_v7  ;;  %v8250_v7 = vld [vmem:[%s7778_s3] ss:$0 sm:$0xff] }
0x13a2   :  { %v7644_v13 = vld [vmem:[%s7745_s9] sm:$0x3] }
0x13b3   :  { %v8820_v31 = vpop.f32.mrf.mxu1  ;;  %v8848_v28 = vpop.f32.mrf.mxu0 }
0x13b5   :  { %v8821_v47 = vpop.f32.mrf.mxu1  ;;  %v8849_v44 = vpop.f32.mrf.mxu0 }
0x13b6   :  { %v8822_v33 = vadd.f32 %v8821_v47, %v8820_v31  ;;  %v8850_v2 = vadd.f32 %v8849_v44, %v8848_v28 }
0x13b7   :  { %v8823_v59 = vpop.f32.mrf.mxu1  ;;  %v8851_v8 = vpop.f32.mrf.mxu0 }
0x13b8   :  { %v7521_v16 = vadd.f32 %v8822_v33, %v7473_v22 }
0x13b9   :  { %v8824_v9 = vpop.f32.mrf.mxu1  ;;  %v8852_v21 = vpop.f32.mrf.mxu0 }
0x13ba   :  { %v8825_v43 = vadd.f32 %v8824_v9, %v8823_v59  ;;  %v8853_v61 = vadd.f32 %v8852_v21, %v8851_v8  ;;  %v7569_v11 = vadd.f32 %v8850_v2, %v7521_v16 }
0x13bb   :  { %v8826_v49 = vpop.f32.mrf.mxu1  ;;  %v8854_v41 = vpop.f32.mrf.mxu0 }
0x13bc   :  { %v7524_v56 = vadd.f32 %v8825_v43, %v7476_v46  ;;  %v7582_v58 = vadd.f32 %v7569_v11, %v11065_v19 }
0x13bd   :  { %v8827_v3 = vpop.f32.mrf.mxu1  ;;  %v8855_v4 = vpop.f32.mrf.mxu0 }
0x13be   :  { %v7572_v27 = vadd.f32 %v8853_v61, %v7524_v56  ;;  %v8828_v37 = vadd.f32 %v8827_v3, %v8826_v49  ;;  %v8856_v36 = vadd.f32 %v8855_v4, %v8854_v41  ;;  %v7587_v54 = vsel %vm271_vm2, %v7582_v58, 0.0  ;;  %v8252_v61 = vld [vmem:[%s7779_s21] ss:$0 sm:$0xff] }
0x13bf   :  { %v8829_v35 = vpop.f32.mrf.mxu1  ;;  %v8857_v10 = vpop.f32.mrf.mxu0  ;;  %v82_v56 = vstv %s7780_s16 }
0x13c0   :  { %v7529_v57 = vadd.f32 %v8828_v37, %v7481_v60  ;;  %v7583_v15 = vadd.f32 %v7572_v27, %v11067_v50  ;;  %83 = vst [vmem:[#allocation2] sm:$0x1] %v82_v56 }
0x13c1   :  { %v8830_v48 = vpop.f32.mrf.mxu1  ;;  %v8858_v39 = vpop.f32.mrf.mxu0 }
0x13c2   :  { %v7577_v23 = vadd.f32 %v8856_v36, %v7529_v57  ;;  %v7590_v20 = vsel %vm271_vm2, %v7583_v15, 0.0 }
0x13c3   :  { %7591 = vadd.xlane.f32.xlu0 %v7590_v20 }
0x13c4   :  { %v7584_v29 = vadd.f32 %v7577_v23, %v11085_v5 }
0x13c6   :  { %v7593_v34 = vsel %vm271_vm2, %v7584_v29, 0.0 }
0x13c7   :  { %7594 = vadd.xlane.f32.xlu1 %v7593_v34  ;;  %v8253_v16 = vld [vmem:[#allocation2] ss:$0 sm:$0xff] }
0x13cb   :  { %7588 = vadd.xlane.f32.xlu1 %v7587_v54 }
0x144c   :  { %v7592_v25 = vpop.xlane.xlu0 %7591 }
0x144d   :  { %v7597_v32 = vmul.f32 0.03125, %v7592_v25 }
0x144f   :  { %v7600_v50 = vsub.f32 %v7583_v15, %v7597_v32 }
0x1450   :  { %v7595_v12 = vpop.xlane.xlu1 %7594 }
0x1451   :  { %v7598_v55 = vmul.f32 0.03125, %v7595_v12  ;;  %v7603_v18 = vmul.f32 %v7600_v50, %v7600_v50 }
0x1453   :  { %v7601_v38 = vsub.f32 %v7584_v29, %v7598_v55  ;;  %v7608_v51 = vsel %vm271_vm2, %v7603_v18, 0.0 }
0x1454   :  { %7609 = vadd.xlane.f32.xlu1 %v7608_v51  ;;  %v7589_v62 = vpop.xlane.xlu1 %7588 }
0x1455   :  { %v7596_v5 = vmul.f32 0.03125, %v7589_v62  ;;  %v7604_v1 = vmul.f32 %v7601_v38, %v7601_v38 }
0x1457   :  { %v7599_v24 = vsub.f32 %v7582_v58, %v7596_v5  ;;  %v7611_v19 = vsel %vm271_vm2, %v7604_v1, 0.0 }
0x1458   :  { %7612 = vadd.xlane.f32.xlu0 %v7611_v19 }
0x1459   :  { %v7602_v45 = vmul.f32 %v7599_v24, %v7599_v24 }
0x145b   :  { %v7605_v31 = vsel %vm271_vm2, %v7602_v45, 0.0 }
0x145c   :  { %7606 = vadd.xlane.f32.xlu0 %v7605_v31 }
0x14dd   :  { %v7610_v17 = vpop.xlane.xlu1 %7609 }
0x14de   :  { %v7615_v40 = vmul.f32 0.03125, %v7610_v17 }
0x14e0   :  { %v7618_v14 = vadd.f32 1e-05, %v7615_v40 }
0x14e1   :  { %v7613_v28 = vpop.xlane.xlu0 %7612 }
0x14e2   :  { %9678 = vrsqrt.f32 %v7618_v14  ;;  %v7616_v47 = vmul.f32 0.03125, %v7613_v28 }
0x14e4   :  { %v7619_v30 = vadd.f32 1e-05, %v7616_v47 }
0x14e5   :  { %v7607_v6 = vpop.xlane.xlu0 %7606 }
0x14e6   :  { %9680 = vrsqrt.f32 %v7619_v30  ;;  %v7614_v52 = vmul.f32 0.03125, %v7607_v6 }
0x14e8   :  { %v7617_v44 = vadd.f32 1e-05, %v7614_v52 }
0x14ea   :  { %9682 = vrsqrt.f32 %v7617_v44 }
0x14ef   :  { %v9679_v59 = vpop.eup %9678 }
0x14f0   :  { %v7624_v53 = vmul.f32 %v9679_v59, %v7600_v50 }
0x14f2   :  { %v7633_v9 = vmul.f32 %v8249_v42, %v7624_v53 }
0x14f3   :  { %v9681_v26 = vpop.eup %9680 }
0x14f4   :  { %v7625_v8 = vmul.f32 %v9681_v26, %v7601_v38  ;;  %v7642_v21 = vadd.f32 %v8250_v7, %v7633_v9 }
0x14f6   :  { %v7634_v63 = vmul.f32 %v8249_v42, %v7625_v8 }
0x14f7   :  { %v9683_v46 = vpop.eup %9682 }
0x14f8   :  { %v7643_v33 = vadd.f32 %v8250_v7, %v7634_v63  ;;  %v7623_v43 = vmul.f32 %v9683_v46, %v7599_v24 }
0x14fa   :  { %9256 = vmatpush3.msra.mxu1 %v7643_v33  ;;  %v7632_v49 = vmul.f32 %v8249_v42, %v7623_v43 }
0x14fb   :  { %9257 = vmatprep.subr.mxu1 %v9687_v0 }
0x14fc   :  { %9258 = vmatpush3.msra.mxu1 %v7642_v21  ;;  %v7641_v22 = vadd.f32 %v8250_v7, %v7632_v49 }
0x14fd   :  { %9259 = vmatprep.subr.mxu1 %v9687_v0 }
0x14fe   :  { %9260 = vmatpush3.msra.mxu1 %v7641_v22 }
0x14ff   :  { %9262 = vmatmul.mubr.msk.f32.vlgmr.msra.gmra.mxu1 %vm170_vm1, %v7644_v13 }
0x15bf   :  { %v7714_v41 = vpop.f32.mrf.mxu1 }
0x15c0   :  { %v7725_v3 = vmul.f32 %v8252_v61, %v7714_v41 }
0x15c1   :  { %v9263_v0 = vpop.f32.mrf.mxu1 }
0x15c2   :  { %v7727_v60 = vsel %vm7726_vm5, %v7725_v3, 0.0 }
0x15c3   :  { %7728 = vadd.xlane.f32.xlu1 %v7727_v60 }
0x164c   :  { %v7729_v27 = vpop.xlane.xlu1 %7728 }
0x164d   :  { %v7737_v37 = vadd.f32 %v8253_v16, %v7729_v27 }
0x164f   :  { %7739 = vst.msk [vmem:[%s7781_s25] sm:$0x3] %vm7738_vm6, %v7737_v37 }

</bundles_post_ra>
